<compile_context>
chip_gen: v7x
topology: tpu7x:2x2x1
jax: 0.10.0
libtpu: 0.0.40
codegen_flags: <defaults>
</compile_context>

<pallas_src>
from functools import partial

import numpy as np
import jax
import jax.numpy as jnp
from jax.experimental import pallas as pl
from jax.experimental.pallas import tpu as pltpu


def _round_up(x, m):
    return (x + m - 1) // m * m


def _pick_chunk(T, max_chunk=8):
    c = min(T, max_chunk)
    while T % c:
        c -= 1
    return c


# ----------------------------------------------------------------------------
# Fused bidirectional LSTM recurrence kernel (one layer, both directions).
# Grid = (T // chunk,), sequential ("arbitrary") because of the time recurrence.
# Inputs are the precomputed x-projections (natural time order for BOTH
# directions); the backward direction's reversal lives in the index_map.
# ----------------------------------------------------------------------------
def _bilstm_chunk_kernel(gxf_ref, gxb_ref, whhf_ref, whhb_ref,
                         outf_ref, outb_ref, hf_last_ref, hb_last_ref,
                         hf_s, cf_s, hb_s, cb_s, *, hidden_p, chunk):
    s = pl.program_id(0)

    @pl.when(s == 0)
    def _():
        hf_s[...] = jnp.zeros_like(hf_s)
        cf_s[...] = jnp.zeros_like(cf_s)
        hb_s[...] = jnp.zeros_like(hb_s)
        cb_s[...] = jnp.zeros_like(cb_s)

    H = hidden_p                      # padded hidden: multiple of 128 -> lane-aligned
    whh_f = whhf_ref[...]             # (Hp, 4Hp)
    whh_b = whhb_ref[...]

    def cell(gx, h, c, whh):
        gates = gx + jnp.dot(h, whh, preferred_element_type=jnp.float32)  # (Bp, 4Hp)
        # PyTorch LSTMCell gate order: i, f, g, o (lane-aligned slices).
        i = jax.nn.sigmoid(gates[:, 0 * H:1 * H])
        f = jax.nn.sigmoid(gates[:, 1 * H:2 * H])
        g = jnp.tanh(gates[:, 2 * H:3 * H])
        o = jax.nn.sigmoid(gates[:, 3 * H:4 * H])
        c_new = f * c + i * g
        h_new = o * jnp.tanh(c_new)
        return h_new, c_new

    h_f, c_f = hf_s[...], cf_s[...]
    h_b, c_b = hb_s[...], cb_s[...]

    # Fully-unrolled chunk loop (chunk is a small static constant); the two
    # independent direction chains interleave for ILP.
    for l in range(chunk):
        h_f, c_f = cell(gxf_ref[l], h_f, c_f, whh_f)
        outf_ref[l] = h_f
        lb = chunk - 1 - l            # backward chain walks the chunk in reverse
        h_b, c_b = cell(gxb_ref[lb], h_b, c_b, whh_b)
        outb_ref[lb] = h_b

    hf_s[...], cf_s[...] = h_f, c_f
    hb_s[...], cb_s[...] = h_b, c_b

    @pl.when(s == pl.num_programs(0) - 1)
    def _():
        hf_last_ref[...] = h_f
        hb_last_ref[...] = h_b


def _bilstm_layer(gx_f, gx_b, whh_f_t, whh_b_t, chunk):
    """Run one fused bidirectional LSTM layer over precomputed input gates.

    gx_f, gx_b : (T, Bp, 4*Hp) natural time order (backward reversal is done
                 by the index_map).
    Returns (out_f, out_b, h_f_last, h_b_last); out_b is already in natural
    (un-reversed) time order, matching the module's post-reverse out_b.
    """
    T, Bp, G = gx_f.shape
    Hp = G // 4
    nchunks = T // chunk
    kernel = partial(_bilstm_chunk_kernel, hidden_p=Hp, chunk=chunk)
    return pl.pallas_call(
        kernel,
        out_shape=(jax.ShapeDtypeStruct((T, Bp, Hp), jnp.float32),
                   jax.ShapeDtypeStruct((T, Bp, Hp), jnp.float32),
                   jax.ShapeDtypeStruct((Bp, Hp), jnp.float32),
                   jax.ShapeDtypeStruct((Bp, Hp), jnp.float32)),
        grid=(nchunks,),
        in_specs=[pl.BlockSpec((chunk, Bp, G), lambda s: (s, 0, 0)),
                  pl.BlockSpec((chunk, Bp, G), lambda s: (nchunks - 1 - s, 0, 0)),
                  pl.BlockSpec((Hp, G), lambda s: (0, 0)),
                  pl.BlockSpec((Hp, G), lambda s: (0, 0))],
        out_specs=(pl.BlockSpec((chunk, Bp, Hp), lambda s: (s, 0, 0)),
                   pl.BlockSpec((chunk, Bp, Hp), lambda s: (nchunks - 1 - s, 0, 0)),
                   pl.BlockSpec((Bp, Hp), lambda s: (0, 0)),
                   pl.BlockSpec((Bp, Hp), lambda s: (0, 0))),
        scratch_shapes=[pltpu.VMEM((Bp, Hp), jnp.float32)] * 4,
        compiler_params=pltpu.CompilerParams(dimension_semantics=("arbitrary",)),
    )(gx_f, gx_b, whh_f_t, whh_b_t)


# ----------------------------------------------------------------------------
# Parameter init (raw PyTorch nn.LSTMCell layout) + kernel-side packing.
# ----------------------------------------------------------------------------
def init_params(key, input_size, hidden_size, num_layers):
    params = {"f": [], "b": []}
    k = 1.0 / np.sqrt(hidden_size)
    d_in = input_size
    for _layer in range(num_layers):
        for direction in ("f", "b"):
            key, k1, k2, k3, k4 = jax.random.split(key, 5)
            params[direction].append(dict(
                w_ih=jax.random.uniform(k1, (4 * hidden_size, d_in), jnp.float32, -k, k),
                w_hh=jax.random.uniform(k2, (4 * hidden_size, hidden_size), jnp.float32, -k, k),
                b_ih=jax.random.uniform(k3, (4 * hidden_size,), jnp.float32, -k, k),
                b_hh=jax.random.uniform(k4, (4 * hidden_size,), jnp.float32, -k, k),
            ))
        d_in = hidden_size
    return params


def pack_params(params, input_size, hidden_size, num_layers):
    """Transpose + gate-wise zero-pad (H -> Hp multiple of 128) for the kernel."""
    H = hidden_size
    Hp = _round_up(H, 128)
    packed = {"f": [], "b": []}
    for j in range(num_layers):
        d_in = input_size if j == 0 else H
        d_in_p = input_size if j == 0 else Hp   # hidden inputs come padded from the kernel
        for direction in ("f", "b"):
            p = params[direction][j]
            w_ih = p["w_ih"].reshape(4, H, d_in)
            w_ih = jnp.pad(w_ih, ((0, 0), (0, Hp - H), (0, d_in_p - d_in)))
            w_ih_t = jnp.transpose(w_ih, (2, 0, 1)).reshape(d_in_p, 4 * Hp)

            w_hh = p["w_hh"].reshape(4, H, H)
            w_hh = jnp.pad(w_hh, ((0, 0), (0, Hp - H), (0, Hp - H)))
            w_hh_t = jnp.transpose(w_hh, (2, 0, 1)).reshape(Hp, 4 * Hp)

            bias = (p["b_ih"] + p["b_hh"]).reshape(4, H)
            bias = jnp.pad(bias, ((0, 0), (0, Hp - H))).reshape(4 * Hp)

            packed[direction].append(dict(w_ih_t=w_ih_t, w_hh_t=w_hh_t, bias=bias))
    return packed


# ----------------------------------------------------------------------------
# Forward pass matching Bidirectional_LSTM_Encoder.forward
# ----------------------------------------------------------------------------
@partial(jax.jit, static_argnums=(2, 3))
def bidirectional_lstm_encoder(x, packed, hidden_size, num_layers):
    """x: (B, T, D) batch-first, as in the PyTorch module."""
    B, T, D = x.shape
    H = hidden_size
    Hp = _round_up(H, 128)
    Bp = _round_up(B, 8)
    chunk = _pick_chunk(T)

    x_p = jnp.pad(x, ((0, Bp - B), (0, 0), (0, 0)))   # (Bp, T, D)

    out_f = out_b = None
    h_f_list, h_b_list = [], []
    for j in range(num_layers):
        pf, pb = packed["f"][j], packed["b"][j]
        if j == 0:
            # Project the raw batch-first input straight into time-major gates
            # (layout change fused into the matmul; no standalone transpose pass).
            gx_f = jnp.einsum('btd,dg->tbg', x_p, pf["w_ih_t"]) + pf["bias"]
            gx_b = jnp.einsum('btd,dg->tbg', x_p, pb["w_ih_t"]) + pb["bias"]
        else:
            gx_f = jnp.einsum('tbh,hg->tbg', out_f, pf["w_ih_t"]) + pf["bias"]
            gx_b = jnp.einsum('tbh,hg->tbg', out_b, pb["w_ih_t"]) + pb["bias"]
        out_f, out_b, h_f, h_b = _bilstm_layer(gx_f, gx_b,
                                               pf["w_hh_t"], pb["w_hh_t"], chunk)
        h_f_list.append(h_f)
        h_b_list.append(h_b)

    # out_b from the kernel is already in natural (un-reversed) time order.
    out_f_bt = jnp.transpose(out_f[:, :B, :H], (1, 0, 2))   # (B, T, H)
    out_b_bt = jnp.transpose(out_b[:, :B, :H], (1, 0, 2))
    out = jnp.concatenate([out_f_bt, out_b_bt], axis=2)     # (B, T, 2H)

    h_f_out = jnp.stack(h_f_list, axis=0)[:, :B, :H]        # (L, B, H)
    h_b_out = jnp.stack(h_b_list, axis=0)[:, :B, :H]
    h = jnp.concatenate([h_f_out, h_b_out], axis=2)         # (L, B, 2H)
    # NOTE: the original module builds `c` from h_f_in/h_b_in (not the cell
    # states) — reproduced exactly here, so c == h.
    c = h
    return out, (h, c)


# ----------------------------------------------------------------------------
# Pure-JAX reference (direct transcription of the PyTorch loop) for checking.
# ----------------------------------------------------------------------------
def _ref_cell(x, h, c, p, H):
    gates = x @ p["w_ih"].T + h @ p["w_hh"].T + p["b_ih"] + p["b_hh"]
    i = jax.nn.sigmoid(gates[:, :H])
    f = jax.nn.sigmoid(gates[:, H:2 * H])
    g = jnp.tanh(gates[:, 2 * H:3 * H])
    o = jax.nn.sigmoid(gates[:, 3 * H:])
    c_new = f * c + i * g
    return o * jnp.tanh(c_new), c_new


def reference_forward(x, params, hidden_size, num_layers):
    B, T, _ = x.shape
    H = hidden_size
    z = jnp.zeros((B, H), jnp.float32)
    h_f_in = [z] * num_layers
    h_b_in = [z] * num_layers
    c_f_in = [z] * num_layers
    c_b_in = [z] * num_layers
    rev = x[:, ::-1, :]
    out_f, out_b = [], []
    for i in range(T):
        h_f = x[:, i, :]
        h_b = rev[:, i, :]
        for j in range(num_layers):
            h_f, c_f = _ref_cell(h_f, h_f_in[j], c_f_in[j], params["f"][j], H)
            h_b, c_b = _ref_cell(h_b, h_b_in[j], c_b_in[j], params["b"][j], H)
            h_f_in[j], c_f_in[j] = h_f, c_f
            h_b_in[j], c_b_in[j] = h_b, c_b
        out_f.append(h_f)
        out_b.append(h_b)
    out_f = jnp.stack(out_f, axis=1)
    out_b = jnp.stack(out_b, axis=1)[:, ::-1, :]
    out = jnp.concatenate([out_f, out_b], axis=2)
    h = jnp.concatenate([jnp.stack(h_f_in, 0), jnp.stack(h_b_in, 0)], axis=2)
    return out, (h, h)


if __name__ == "__main__":
    B, T, D, H, L = 4, 16, 16, 32, 2

    key = jax.random.PRNGKey(0)
    key, kx, kp = jax.random.split(key, 3)
    x = jax.random.normal(kx, (B, T, D), jnp.float32)
    params = init_params(kp, D, H, L)
    packed = pack_params(params, D, H, L)

    out, (h, c) = bidirectional_lstm_encoder(x, packed, H, L)
    out = jax.block_until_ready(out)
    h = jax.block_until_ready(h)
    c = jax.block_until_ready(c)

    ref_out, (ref_h, ref_c) = reference_forward(x, params, H, L)

    assert out.shape == (B, T, 2 * H)
    assert h.shape == (L, B, 2 * H)
    assert c.shape == (L, B, 2 * H)
    np.testing.assert_allclose(np.asarray(out), np.asarray(ref_out), rtol=1e-4, atol=1e-4)
    np.testing.assert_allclose(np.asarray(h), np.asarray(ref_h), rtol=1e-4, atol=1e-4)
    np.testing.assert_allclose(np.asarray(c), np.asarray(ref_c), rtol=1e-4, atol=1e-4)

    print("KERNEL_OK")
</pallas_src>

<mosaic_0001>
module attributes {stable_mosaic.version = 11 : i64} {
  func.func @_bilstm_chunk_kernel(%arg0: i32, %arg1: memref<8x8x512xf32, #tpu.memory_space<vmem>>, %arg2: memref<8x8x512xf32, #tpu.memory_space<vmem>>, %arg3: memref<128x512xf32, #tpu.memory_space<vmem>>, %arg4: memref<128x512xf32, #tpu.memory_space<vmem>>, %arg5: memref<8x8x128xf32, #tpu.memory_space<vmem>>, %arg6: memref<8x8x128xf32, #tpu.memory_space<vmem>>, %arg7: memref<8x128xf32, #tpu.memory_space<vmem>>, %arg8: memref<8x128xf32, #tpu.memory_space<vmem>>, %arg9: memref<8x128xf32, #tpu.memory_space<vmem>>, %arg10: memref<8x128xf32, #tpu.memory_space<vmem>>, %arg11: memref<8x128xf32, #tpu.memory_space<vmem>>, %arg12: memref<8x128xf32, #tpu.memory_space<vmem>>) attributes {dimension_semantics = [#tpu.dimension_semantics<arbitrary>], iteration_bounds = array<i64: 2>, scalar_prefetch = 0 : i64, scratch_operands = 4 : i64, tpu.core_type = #tpu.core_type<tc>, window_params = [{transform_indices = @transform_0, window_bounds = array<i64: 8, 8, 512>}, {transform_indices = @transform_1, window_bounds = array<i64: 8, 8, 512>}, {pipeline_mode = #tpu.pipeline_mode<synchronous>, transform_indices = @transform_2, window_bounds = array<i64: 128, 512>}, {pipeline_mode = #tpu.pipeline_mode<synchronous>, transform_indices = @transform_3, window_bounds = array<i64: 128, 512>}, {transform_indices = @transform_4, window_bounds = array<i64: 8, 8, 128>}, {transform_indices = @transform_5, window_bounds = array<i64: 8, 8, 128>}, {pipeline_mode = #tpu.pipeline_mode<synchronous>, transform_indices = @transform_6, window_bounds = array<i64: 8, 128>}, {pipeline_mode = #tpu.pipeline_mode<synchronous>, transform_indices = @transform_7, window_bounds = array<i64: 8, 128>}]} {
    %c0_i32 = arith.constant 0 : i32
    %0 = arith.cmpi eq, %arg0, %c0_i32 : i32
    %1 = arith.extui %0 : i1 to i32
    %c0_i32_0 = arith.constant 0 : i32
    %2 = arith.cmpi ne, %1, %c0_i32_0 : i32
    scf.if %2 {
      %cst_173 = arith.constant 0.000000e+00 : f32
      %528 = vector.broadcast %cst_173 : f32 to vector<8x128xf32>
      %c0_174 = arith.constant 0 : index
      %c0_175 = arith.constant 0 : index
      %529 = vector.load %arg9[%c0_174, %c0_175] : memref<8x128xf32, #tpu.memory_space<vmem>>, vector<8x128xf32>
      tpu.vector_store %arg9[%c0_174, %c0_175], %528 {strides = array<i32>} : memref<8x128xf32, #tpu.memory_space<vmem>>, vector<8x128xf32>,
      %cst_176 = arith.constant 0.000000e+00 : f32
      %530 = vector.broadcast %cst_176 : f32 to vector<8x128xf32>
      %c0_177 = arith.constant 0 : index
      %c0_178 = arith.constant 0 : index
      %531 = vector.load %arg10[%c0_177, %c0_178] : memref<8x128xf32, #tpu.memory_space<vmem>>, vector<8x128xf32>
      tpu.vector_store %arg10[%c0_177, %c0_178], %530 {strides = array<i32>} : memref<8x128xf32, #tpu.memory_space<vmem>>, vector<8x128xf32>,
      %cst_179 = arith.constant 0.000000e+00 : f32
      %532 = vector.broadcast %cst_179 : f32 to vector<8x128xf32>
      %c0_180 = arith.constant 0 : index
      %c0_181 = arith.constant 0 : index
      %533 = vector.load %arg11[%c0_180, %c0_181] : memref<8x128xf32, #tpu.memory_space<vmem>>, vector<8x128xf32>
      tpu.vector_store %arg11[%c0_180, %c0_181], %532 {strides = array<i32>} : memref<8x128xf32, #tpu.memory_space<vmem>>, vector<8x128xf32>,
      %cst_182 = arith.constant 0.000000e+00 : f32
      %534 = vector.broadcast %cst_182 : f32 to vector<8x128xf32>
      %c0_183 = arith.constant 0 : index
      %c0_184 = arith.constant 0 : index
      %535 = vector.load %arg12[%c0_183, %c0_184] : memref<8x128xf32, #tpu.memory_space<vmem>>, vector<8x128xf32>
      tpu.vector_store %arg12[%c0_183, %c0_184], %534 {strides = array<i32>} : memref<8x128xf32, #tpu.memory_space<vmem>>, vector<8x128xf32>,
    } else {
    }
    %c0 = arith.constant 0 : index
    %c0_1 = arith.constant 0 : index
    %3 = vector.load %arg3[%c0, %c0_1] : memref<128x512xf32, #tpu.memory_space<vmem>>, vector<128x512xf32>
    %c0_2 = arith.constant 0 : index
    %c0_3 = arith.constant 0 : index
    %4 = vector.load %arg4[%c0_2, %c0_3] : memref<128x512xf32, #tpu.memory_space<vmem>>, vector<128x512xf32>
    %c0_4 = arith.constant 0 : index
    %c0_5 = arith.constant 0 : index
    %5 = vector.load %arg9[%c0_4, %c0_5] : memref<8x128xf32, #tpu.memory_space<vmem>>, vector<8x128xf32>
    %c0_6 = arith.constant 0 : index
    %c0_7 = arith.constant 0 : index
    %6 = vector.load %arg10[%c0_6, %c0_7] : memref<8x128xf32, #tpu.memory_space<vmem>>, vector<8x128xf32>
    %c0_8 = arith.constant 0 : index
    %c0_9 = arith.constant 0 : index
    %7 = vector.load %arg11[%c0_8, %c0_9] : memref<8x128xf32, #tpu.memory_space<vmem>>, vector<8x128xf32>
    %c0_10 = arith.constant 0 : index
    %c0_11 = arith.constant 0 : index
    %8 = vector.load %arg12[%c0_10, %c0_11] : memref<8x128xf32, #tpu.memory_space<vmem>>, vector<8x128xf32>
    %c0_12 = arith.constant 0 : index
    %c0_13 = arith.constant 0 : index
    %c0_14 = arith.constant 0 : index
    %9 = vector.load %arg1[%c0_12, %c0_13, %c0_14] : memref<8x8x512xf32, #tpu.memory_space<vmem>>, vector<1x8x512xf32>
    %10 = vector.shape_cast %9 : vector<1x8x512xf32> to vector<8x512xf32>
    %cst = arith.constant dense<0.000000e+00> : vector<8x512xf32>
    %11 = tpu.matmul %5, %3, %cst {dimension_numbers = #tpu.dot_dimension_numbers<[1], [0], [0], [1], [0, 0, 1, 1], [], []>} : vector<8x128xf32>, vector<128x512xf32>, vector<8x512xf32> -> vector<8x512xf32>
    %12 = arith.addf %10, %11 : vector<8x512xf32>
    %13 = vector.extract_strided_slice %12 {offsets = [0, 0], sizes = [8, 128], strides = [1, 1]} : vector<8x512xf32> to vector<8x128xf32>
    %14 = arith.negf %13 : vector<8x128xf32>
    %15 = math.exp %14 : vector<8x128xf32>
    %cst_15 = arith.constant 1.000000e+00 : f32
    %16 = vector.broadcast %cst_15 : f32 to vector<8x128xf32>
    %17 = arith.addf %16, %15 : vector<8x128xf32>
    %18 = arith.divf %16, %17 : vector<8x128xf32>
    %19 = vector.extract_strided_slice %12 {offsets = [0, 128], sizes = [8, 128], strides = [1, 1]} : vector<8x512xf32> to vector<8x128xf32>
    %20 = arith.negf %19 : vector<8x128xf32>
    %21 = math.exp %20 : vector<8x128xf32>
    %cst_16 = arith.constant 1.000000e+00 : f32
    %22 = vector.broadcast %cst_16 : f32 to vector<8x128xf32>
    %23 = arith.addf %22, %21 : vector<8x128xf32>
    %24 = arith.divf %22, %23 : vector<8x128xf32>
    %25 = vector.extract_strided_slice %12 {offsets = [0, 256], sizes = [8, 128], strides = [1, 1]} : vector<8x512xf32> to vector<8x128xf32>
    %26 = math.tanh %25 : vector<8x128xf32>
    %27 = vector.extract_strided_slice %12 {offsets = [0, 384], sizes = [8, 128], strides = [1, 1]} : vector<8x512xf32> to vector<8x128xf32>
    %28 = arith.negf %27 : vector<8x128xf32>
    %29 = math.exp %28 : vector<8x128xf32>
    %cst_17 = arith.constant 1.000000e+00 : f32
    %30 = vector.broadcast %cst_17 : f32 to vector<8x128xf32>
    %31 = arith.addf %30, %29 : vector<8x128xf32>
    %32 = arith.divf %30, %31 : vector<8x128xf32>
    %33 = arith.mulf %24, %6 : vector<8x128xf32>
    %34 = arith.mulf %18, %26 : vector<8x128xf32>
    %35 = arith.addf %33, %34 : vector<8x128xf32>
    %36 = math.tanh %35 : vector<8x128xf32>
    %37 = arith.mulf %32, %36 : vector<8x128xf32>
    %c0_18 = arith.constant 0 : index
    %c0_19 = arith.constant 0 : index
    %c0_20 = arith.constant 0 : index
    %38 = vector.load %arg5[%c0_18, %c0_19, %c0_20] : memref<8x8x128xf32, #tpu.memory_space<vmem>>, vector<1x8x128xf32>
    %39 = vector.shape_cast %38 : vector<1x8x128xf32> to vector<8x128xf32>
    %40 = vector.shape_cast %37 : vector<8x128xf32> to vector<1x8x128xf32>
    tpu.vector_store %arg5[%c0_18, %c0_19, %c0_20], %40 {strides = array<i32>} : memref<8x8x128xf32, #tpu.memory_space<vmem>>, vector<1x8x128xf32>,
    %c7 = arith.constant 7 : index
    %c0_21 = arith.constant 0 : index
    %c0_22 = arith.constant 0 : index
    %41 = vector.load %arg2[%c7, %c0_21, %c0_22] : memref<8x8x512xf32, #tpu.memory_space<vmem>>, vector<1x8x512xf32>
    %42 = vector.shape_cast %41 : vector<1x8x512xf32> to vector<8x512xf32>
    %cst_23 = arith.constant dense<0.000000e+00> : vector<8x512xf32>
    %43 = tpu.matmul %7, %4, %cst_23 {dimension_numbers = #tpu.dot_dimension_numbers<[1], [0], [0], [1], [0, 0, 1, 1], [], []>} : vector<8x128xf32>, vector<128x512xf32>, vector<8x512xf32> -> vector<8x512xf32>
    %44 = arith.addf %42, %43 : vector<8x512xf32>
    %45 = vector.extract_strided_slice %44 {offsets = [0, 0], sizes = [8, 128], strides = [1, 1]} : vector<8x512xf32> to vector<8x128xf32>
    %46 = arith.negf %45 : vector<8x128xf32>
    %47 = math.exp %46 : vector<8x128xf32>
    %cst_24 = arith.constant 1.000000e+00 : f32
    %48 = vector.broadcast %cst_24 : f32 to vector<8x128xf32>
    %49 = arith.addf %48, %47 : vector<8x128xf32>
    %50 = arith.divf %48, %49 : vector<8x128xf32>
    %51 = vector.extract_strided_slice %44 {offsets = [0, 128], sizes = [8, 128], strides = [1, 1]} : vector<8x512xf32> to vector<8x128xf32>
    %52 = arith.negf %51 : vector<8x128xf32>
    %53 = math.exp %52 : vector<8x128xf32>
    %cst_25 = arith.constant 1.000000e+00 : f32
    %54 = vector.broadcast %cst_25 : f32 to vector<8x128xf32>
    %55 = arith.addf %54, %53 : vector<8x128xf32>
    %56 = arith.divf %54, %55 : vector<8x128xf32>
    %57 = vector.extract_strided_slice %44 {offsets = [0, 256], sizes = [8, 128], strides = [1, 1]} : vector<8x512xf32> to vector<8x128xf32>
    %58 = math.tanh %57 : vector<8x128xf32>
    %59 = vector.extract_strided_slice %44 {offsets = [0, 384], sizes = [8, 128], strides = [1, 1]} : vector<8x512xf32> to vector<8x128xf32>
    %60 = arith.negf %59 : vector<8x128xf32>
    %61 = math.exp %60 : vector<8x128xf32>
    %cst_26 = arith.constant 1.000000e+00 : f32
    %62 = vector.broadcast %cst_26 : f32 to vector<8x128xf32>
    %63 = arith.addf %62, %61 : vector<8x128xf32>
    %64 = arith.divf %62, %63 : vector<8x128xf32>
    %65 = arith.mulf %56, %8 : vector<8x128xf32>
    %66 = arith.mulf %50, %58 : vector<8x128xf32>
    %67 = arith.addf %65, %66 : vector<8x128xf32>
    %68 = math.tanh %67 : vector<8x128xf32>
    %69 = arith.mulf %64, %68 : vector<8x128xf32>
    %c7_27 = arith.constant 7 : index
    %c0_28 = arith.constant 0 : index
    %c0_29 = arith.constant 0 : index
    %70 = vector.load %arg6[%c7_27, %c0_28, %c0_29] : memref<8x8x128xf32, #tpu.memory_space<vmem>>, vector<1x8x128xf32>
    %71 = vector.shape_cast %70 : vector<1x8x128xf32> to vector<8x128xf32>
    %72 = vector.shape_cast %69 : vector<8x128xf32> to vector<1x8x128xf32>
    tpu.vector_store %arg6[%c7_27, %c0_28, %c0_29], %72 {strides = array<i32>} : memref<8x8x128xf32, #tpu.memory_space<vmem>>, vector<1x8x128xf32>,
    %c1 = arith.constant 1 : index
    %c0_30 = arith.constant 0 : index
    %c0_31 = arith.constant 0 : index
    %73 = vector.load %arg1[%c1, %c0_30, %c0_31] : memref<8x8x512xf32, #tpu.memory_space<vmem>>, vector<1x8x512xf32>
    %74 = vector.shape_cast %73 : vector<1x8x512xf32> to vector<8x512xf32>
    %cst_32 = arith.constant dense<0.000000e+00> : vector<8x512xf32>
    %75 = tpu.matmul %37, %3, %cst_32 {dimension_numbers = #tpu.dot_dimension_numbers<[1], [0], [0], [1], [0, 0, 1, 1], [], []>} : vector<8x128xf32>, vector<128x512xf32>, vector<8x512xf32> -> vector<8x512xf32>
    %76 = arith.addf %74, %75 : vector<8x512xf32>
    %77 = vector.extract_strided_slice %76 {offsets = [0, 0], sizes = [8, 128], strides = [1, 1]} : vector<8x512xf32> to vector<8x128xf32>
    %78 = arith.negf %77 : vector<8x128xf32>
    %79 = math.exp %78 : vector<8x128xf32>
    %cst_33 = arith.constant 1.000000e+00 : f32
    %80 = vector.broadcast %cst_33 : f32 to vector<8x128xf32>
    %81 = arith.addf %80, %79 : vector<8x128xf32>
    %82 = arith.divf %80, %81 : vector<8x128xf32>
    %83 = vector.extract_strided_slice %76 {offsets = [0, 128], sizes = [8, 128], strides = [1, 1]} : vector<8x512xf32> to vector<8x128xf32>
    %84 = arith.negf %83 : vector<8x128xf32>
    %85 = math.exp %84 : vector<8x128xf32>
    %cst_34 = arith.constant 1.000000e+00 : f32
    %86 = vector.broadcast %cst_34 : f32 to vector<8x128xf32>
    %87 = arith.addf %86, %85 : vector<8x128xf32>
    %88 = arith.divf %86, %87 : vector<8x128xf32>
    %89 = vector.extract_strided_slice %76 {offsets = [0, 256], sizes = [8, 128], strides = [1, 1]} : vector<8x512xf32> to vector<8x128xf32>
    %90 = math.tanh %89 : vector<8x128xf32>
    %91 = vector.extract_strided_slice %76 {offsets = [0, 384], sizes = [8, 128], strides = [1, 1]} : vector<8x512xf32> to vector<8x128xf32>
    %92 = arith.negf %91 : vector<8x128xf32>
    %93 = math.exp %92 : vector<8x128xf32>
    %cst_35 = arith.constant 1.000000e+00 : f32
    %94 = vector.broadcast %cst_35 : f32 to vector<8x128xf32>
    %95 = arith.addf %94, %93 : vector<8x128xf32>
    %96 = arith.divf %94, %95 : vector<8x128xf32>
    %97 = arith.mulf %88, %35 : vector<8x128xf32>
    %98 = arith.mulf %82, %90 : vector<8x128xf32>
    %99 = arith.addf %97, %98 : vector<8x128xf32>
    %100 = math.tanh %99 : vector<8x128xf32>
    %101 = arith.mulf %96, %100 : vector<8x128xf32>
    %c1_36 = arith.constant 1 : index
    %c0_37 = arith.constant 0 : index
    %c0_38 = arith.constant 0 : index
    %102 = vector.load %arg5[%c1_36, %c0_37, %c0_38] : memref<8x8x128xf32, #tpu.memory_space<vmem>>, vector<1x8x128xf32>
    %103 = vector.shape_cast %102 : vector<1x8x128xf32> to vector<8x128xf32>
    %104 = vector.shape_cast %101 : vector<8x128xf32> to vector<1x8x128xf32>
    tpu.vector_store %arg5[%c1_36, %c0_37, %c0_38], %104 {strides = array<i32>} : memref<8x8x128xf32, #tpu.memory_space<vmem>>, vector<1x8x128xf32>,
    %c6 = arith.constant 6 : index
    %c0_39 = arith.constant 0 : index
    %c0_40 = arith.constant 0 : index
    %105 = vector.load %arg2[%c6, %c0_39, %c0_40] : memref<8x8x512xf32, #tpu.memory_space<vmem>>, vector<1x8x512xf32>
    %106 = vector.shape_cast %105 : vector<1x8x512xf32> to vector<8x512xf32>
    %cst_41 = arith.constant dense<0.000000e+00> : vector<8x512xf32>
    %107 = tpu.matmul %69, %4, %cst_41 {dimension_numbers = #tpu.dot_dimension_numbers<[1], [0], [0], [1], [0, 0, 1, 1], [], []>} : vector<8x128xf32>, vector<128x512xf32>, vector<8x512xf32> -> vector<8x512xf32>
    %108 = arith.addf %106, %107 : vector<8x512xf32>
    %109 = vector.extract_strided_slice %108 {offsets = [0, 0], sizes = [8, 128], strides = [1, 1]} : vector<8x512xf32> to vector<8x128xf32>
    %110 = arith.negf %109 : vector<8x128xf32>
    %111 = math.exp %110 : vector<8x128xf32>
    %cst_42 = arith.constant 1.000000e+00 : f32
    %112 = vector.broadcast %cst_42 : f32 to vector<8x128xf32>
    %113 = arith.addf %112, %111 : vector<8x128xf32>
    %114 = arith.divf %112, %113 : vector<8x128xf32>
    %115 = vector.extract_strided_slice %108 {offsets = [0, 128], sizes = [8, 128], strides = [1, 1]} : vector<8x512xf32> to vector<8x128xf32>
    %116 = arith.negf %115 : vector<8x128xf32>
    %117 = math.exp %116 : vector<8x128xf32>
    %cst_43 = arith.constant 1.000000e+00 : f32
    %118 = vector.broadcast %cst_43 : f32 to vector<8x128xf32>
    %119 = arith.addf %118, %117 : vector<8x128xf32>
    %120 = arith.divf %118, %119 : vector<8x128xf32>
    %121 = vector.extract_strided_slice %108 {offsets = [0, 256], sizes = [8, 128], strides = [1, 1]} : vector<8x512xf32> to vector<8x128xf32>
    %122 = math.tanh %121 : vector<8x128xf32>
    %123 = vector.extract_strided_slice %108 {offsets = [0, 384], sizes = [8, 128], strides = [1, 1]} : vector<8x512xf32> to vector<8x128xf32>
    %124 = arith.negf %123 : vector<8x128xf32>
    %125 = math.exp %124 : vector<8x128xf32>
    %cst_44 = arith.constant 1.000000e+00 : f32
    %126 = vector.broadcast %cst_44 : f32 to vector<8x128xf32>
    %127 = arith.addf %126, %125 : vector<8x128xf32>
    %128 = arith.divf %126, %127 : vector<8x128xf32>
    %129 = arith.mulf %120, %67 : vector<8x128xf32>
    %130 = arith.mulf %114, %122 : vector<8x128xf32>
    %131 = arith.addf %129, %130 : vector<8x128xf32>
    %132 = math.tanh %131 : vector<8x128xf32>
    %133 = arith.mulf %128, %132 : vector<8x128xf32>
    %c6_45 = arith.constant 6 : index
    %c0_46 = arith.constant 0 : index
    %c0_47 = arith.constant 0 : index
    %134 = vector.load %arg6[%c6_45, %c0_46, %c0_47] : memref<8x8x128xf32, #tpu.memory_space<vmem>>, vector<1x8x128xf32>
    %135 = vector.shape_cast %134 : vector<1x8x128xf32> to vector<8x128xf32>
    %136 = vector.shape_cast %133 : vector<8x128xf32> to vector<1x8x128xf32>
    tpu.vector_store %arg6[%c6_45, %c0_46, %c0_47], %136 {strides = array<i32>} : memref<8x8x128xf32, #tpu.memory_space<vmem>>, vector<1x8x128xf32>,
    %c2 = arith.constant 2 : index
    %c0_48 = arith.constant 0 : index
    %c0_49 = arith.constant 0 : index
    %137 = vector.load %arg1[%c2, %c0_48, %c0_49] : memref<8x8x512xf32, #tpu.memory_space<vmem>>, vector<1x8x512xf32>
    %138 = vector.shape_cast %137 : vector<1x8x512xf32> to vector<8x512xf32>
    %cst_50 = arith.constant dense<0.000000e+00> : vector<8x512xf32>
    %139 = tpu.matmul %101, %3, %cst_50 {dimension_numbers = #tpu.dot_dimension_numbers<[1], [0], [0], [1], [0, 0, 1, 1], [], []>} : vector<8x128xf32>, vector<128x512xf32>, vector<8x512xf32> -> vector<8x512xf32>
    %140 = arith.addf %138, %139 : vector<8x512xf32>
    %141 = vector.extract_strided_slice %140 {offsets = [0, 0], sizes = [8, 128], strides = [1, 1]} : vector<8x512xf32> to vector<8x128xf32>
    %142 = arith.negf %141 : vector<8x128xf32>
    %143 = math.exp %142 : vector<8x128xf32>
    %cst_51 = arith.constant 1.000000e+00 : f32
    %144 = vector.broadcast %cst_51 : f32 to vector<8x128xf32>
    %145 = arith.addf %144, %143 : vector<8x128xf32>
    %146 = arith.divf %144, %145 : vector<8x128xf32>
    %147 = vector.extract_strided_slice %140 {offsets = [0, 128], sizes = [8, 128], strides = [1, 1]} : vector<8x512xf32> to vector<8x128xf32>
    %148 = arith.negf %147 : vector<8x128xf32>
    %149 = math.exp %148 : vector<8x128xf32>
    %cst_52 = arith.constant 1.000000e+00 : f32
    %150 = vector.broadcast %cst_52 : f32 to vector<8x128xf32>
    %151 = arith.addf %150, %149 : vector<8x128xf32>
    %152 = arith.divf %150, %151 : vector<8x128xf32>
    %153 = vector.extract_strided_slice %140 {offsets = [0, 256], sizes = [8, 128], strides = [1, 1]} : vector<8x512xf32> to vector<8x128xf32>
    %154 = math.tanh %153 : vector<8x128xf32>
    %155 = vector.extract_strided_slice %140 {offsets = [0, 384], sizes = [8, 128], strides = [1, 1]} : vector<8x512xf32> to vector<8x128xf32>
    %156 = arith.negf %155 : vector<8x128xf32>
    %157 = math.exp %156 : vector<8x128xf32>
    %cst_53 = arith.constant 1.000000e+00 : f32
    %158 = vector.broadcast %cst_53 : f32 to vector<8x128xf32>
    %159 = arith.addf %158, %157 : vector<8x128xf32>
    %160 = arith.divf %158, %159 : vector<8x128xf32>
    %161 = arith.mulf %152, %99 : vector<8x128xf32>
    %162 = arith.mulf %146, %154 : vector<8x128xf32>
    %163 = arith.addf %161, %162 : vector<8x128xf32>
    %164 = math.tanh %163 : vector<8x128xf32>
    %165 = arith.mulf %160, %164 : vector<8x128xf32>
    %c2_54 = arith.constant 2 : index
    %c0_55 = arith.constant 0 : index
    %c0_56 = arith.constant 0 : index
    %166 = vector.load %arg5[%c2_54, %c0_55, %c0_56] : memref<8x8x128xf32, #tpu.memory_space<vmem>>, vector<1x8x128xf32>
    %167 = vector.shape_cast %166 : vector<1x8x128xf32> to vector<8x128xf32>
    %168 = vector.shape_cast %165 : vector<8x128xf32> to vector<1x8x128xf32>
    tpu.vector_store %arg5[%c2_54, %c0_55, %c0_56], %168 {strides = array<i32>} : memref<8x8x128xf32, #tpu.memory_space<vmem>>, vector<1x8x128xf32>,
    %c5 = arith.constant 5 : index
    %c0_57 = arith.constant 0 : index
    %c0_58 = arith.constant 0 : index
    %169 = vector.load %arg2[%c5, %c0_57, %c0_58] : memref<8x8x512xf32, #tpu.memory_space<vmem>>, vector<1x8x512xf32>
    %170 = vector.shape_cast %169 : vector<1x8x512xf32> to vector<8x512xf32>
    %cst_59 = arith.constant dense<0.000000e+00> : vector<8x512xf32>
    %171 = tpu.matmul %133, %4, %cst_59 {dimension_numbers = #tpu.dot_dimension_numbers<[1], [0], [0], [1], [0, 0, 1, 1], [], []>} : vector<8x128xf32>, vector<128x512xf32>, vector<8x512xf32> -> vector<8x512xf32>
    %172 = arith.addf %170, %171 : vector<8x512xf32>
    %173 = vector.extract_strided_slice %172 {offsets = [0, 0], sizes = [8, 128], strides = [1, 1]} : vector<8x512xf32> to vector<8x128xf32>
    %174 = arith.negf %173 : vector<8x128xf32>
    %175 = math.exp %174 : vector<8x128xf32>
    %cst_60 = arith.constant 1.000000e+00 : f32
    %176 = vector.broadcast %cst_60 : f32 to vector<8x128xf32>
    %177 = arith.addf %176, %175 : vector<8x128xf32>
    %178 = arith.divf %176, %177 : vector<8x128xf32>
    %179 = vector.extract_strided_slice %172 {offsets = [0, 128], sizes = [8, 128], strides = [1, 1]} : vector<8x512xf32> to vector<8x128xf32>
    %180 = arith.negf %179 : vector<8x128xf32>
    %181 = math.exp %180 : vector<8x128xf32>
    %cst_61 = arith.constant 1.000000e+00 : f32
    %182 = vector.broadcast %cst_61 : f32 to vector<8x128xf32>
    %183 = arith.addf %182, %181 : vector<8x128xf32>
    %184 = arith.divf %182, %183 : vector<8x128xf32>
    %185 = vector.extract_strided_slice %172 {offsets = [0, 256], sizes = [8, 128], strides = [1, 1]} : vector<8x512xf32> to vector<8x128xf32>
    %186 = math.tanh %185 : vector<8x128xf32>
    %187 = vector.extract_strided_slice %172 {offsets = [0, 384], sizes = [8, 128], strides = [1, 1]} : vector<8x512xf32> to vector<8x128xf32>
    %188 = arith.negf %187 : vector<8x128xf32>
    %189 = math.exp %188 : vector<8x128xf32>
    %cst_62 = arith.constant 1.000000e+00 : f32
    %190 = vector.broadcast %cst_62 : f32 to vector<8x128xf32>
    %191 = arith.addf %190, %189 : vector<8x128xf32>
    %192 = arith.divf %190, %191 : vector<8x128xf32>
    %193 = arith.mulf %184, %131 : vector<8x128xf32>
    %194 = arith.mulf %178, %186 : vector<8x128xf32>
    %195 = arith.addf %193, %194 : vector<8x128xf32>
    %196 = math.tanh %195 : vector<8x128xf32>
    %197 = arith.mulf %192, %196 : vector<8x128xf32>
    %c5_63 = arith.constant 5 : index
    %c0_64 = arith.constant 0 : index
    %c0_65 = arith.constant 0 : index
    %198 = vector.load %arg6[%c5_63, %c0_64, %c0_65] : memref<8x8x128xf32, #tpu.memory_space<vmem>>, vector<1x8x128xf32>
    %199 = vector.shape_cast %198 : vector<1x8x128xf32> to vector<8x128xf32>
    %200 = vector.shape_cast %197 : vector<8x128xf32> to vector<1x8x128xf32>
    tpu.vector_store %arg6[%c5_63, %c0_64, %c0_65], %200 {strides = array<i32>} : memref<8x8x128xf32, #tpu.memory_space<vmem>>, vector<1x8x128xf32>,
    %c3 = arith.constant 3 : index
    %c0_66 = arith.constant 0 : index
    %c0_67 = arith.constant 0 : index
    %201 = vector.load %arg1[%c3, %c0_66, %c0_67] : memref<8x8x512xf32, #tpu.memory_space<vmem>>, vector<1x8x512xf32>
    %202 = vector.shape_cast %201 : vector<1x8x512xf32> to vector<8x512xf32>
    %cst_68 = arith.constant dense<0.000000e+00> : vector<8x512xf32>
    %203 = tpu.matmul %165, %3, %cst_68 {dimension_numbers = #tpu.dot_dimension_numbers<[1], [0], [0], [1], [0, 0, 1, 1], [], []>} : vector<8x128xf32>, vector<128x512xf32>, vector<8x512xf32> -> vector<8x512xf32>
    %204 = arith.addf %202, %203 : vector<8x512xf32>
    %205 = vector.extract_strided_slice %204 {offsets = [0, 0], sizes = [8, 128], strides = [1, 1]} : vector<8x512xf32> to vector<8x128xf32>
    %206 = arith.negf %205 : vector<8x128xf32>
    %207 = math.exp %206 : vector<8x128xf32>
    %cst_69 = arith.constant 1.000000e+00 : f32
    %208 = vector.broadcast %cst_69 : f32 to vector<8x128xf32>
    %209 = arith.addf %208, %207 : vector<8x128xf32>
    %210 = arith.divf %208, %209 : vector<8x128xf32>
    %211 = vector.extract_strided_slice %204 {offsets = [0, 128], sizes = [8, 128], strides = [1, 1]} : vector<8x512xf32> to vector<8x128xf32>
    %212 = arith.negf %211 : vector<8x128xf32>
    %213 = math.exp %212 : vector<8x128xf32>
    %cst_70 = arith.constant 1.000000e+00 : f32
    %214 = vector.broadcast %cst_70 : f32 to vector<8x128xf32>
    %215 = arith.addf %214, %213 : vector<8x128xf32>
    %216 = arith.divf %214, %215 : vector<8x128xf32>
    %217 = vector.extract_strided_slice %204 {offsets = [0, 256], sizes = [8, 128], strides = [1, 1]} : vector<8x512xf32> to vector<8x128xf32>
    %218 = math.tanh %217 : vector<8x128xf32>
    %219 = vector.extract_strided_slice %204 {offsets = [0, 384], sizes = [8, 128], strides = [1, 1]} : vector<8x512xf32> to vector<8x128xf32>
    %220 = arith.negf %219 : vector<8x128xf32>
    %221 = math.exp %220 : vector<8x128xf32>
    %cst_71 = arith.constant 1.000000e+00 : f32
    %222 = vector.broadcast %cst_71 : f32 to vector<8x128xf32>
    %223 = arith.addf %222, %221 : vector<8x128xf32>
    %224 = arith.divf %222, %223 : vector<8x128xf32>
    %225 = arith.mulf %216, %163 : vector<8x128xf32>
    %226 = arith.mulf %210, %218 : vector<8x128xf32>
    %227 = arith.addf %225, %226 : vector<8x128xf32>
    %228 = math.tanh %227 : vector<8x128xf32>
    %229 = arith.mulf %224, %228 : vector<8x128xf32>
    %c3_72 = arith.constant 3 : index
    %c0_73 = arith.constant 0 : index
    %c0_74 = arith.constant 0 : index
    %230 = vector.load %arg5[%c3_72, %c0_73, %c0_74] : memref<8x8x128xf32, #tpu.memory_space<vmem>>, vector<1x8x128xf32>
    %231 = vector.shape_cast %230 : vector<1x8x128xf32> to vector<8x128xf32>
    %232 = vector.shape_cast %229 : vector<8x128xf32> to vector<1x8x128xf32>
    tpu.vector_store %arg5[%c3_72, %c0_73, %c0_74], %232 {strides = array<i32>} : memref<8x8x128xf32, #tpu.memory_space<vmem>>, vector<1x8x128xf32>,
    %c4 = arith.constant 4 : index
    %c0_75 = arith.constant 0 : index
    %c0_76 = arith.constant 0 : index
    %233 = vector.load %arg2[%c4, %c0_75, %c0_76] : memref<8x8x512xf32, #tpu.memory_space<vmem>>, vector<1x8x512xf32>
    %234 = vector.shape_cast %233 : vector<1x8x512xf32> to vector<8x512xf32>
    %cst_77 = arith.constant dense<0.000000e+00> : vector<8x512xf32>
    %235 = tpu.matmul %197, %4, %cst_77 {dimension_numbers = #tpu.dot_dimension_numbers<[1], [0], [0], [1], [0, 0, 1, 1], [], []>} : vector<8x128xf32>, vector<128x512xf32>, vector<8x512xf32> -> vector<8x512xf32>
    %236 = arith.addf %234, %235 : vector<8x512xf32>
    %237 = vector.extract_strided_slice %236 {offsets = [0, 0], sizes = [8, 128], strides = [1, 1]} : vector<8x512xf32> to vector<8x128xf32>
    %238 = arith.negf %237 : vector<8x128xf32>
    %239 = math.exp %238 : vector<8x128xf32>
    %cst_78 = arith.constant 1.000000e+00 : f32
    %240 = vector.broadcast %cst_78 : f32 to vector<8x128xf32>
    %241 = arith.addf %240, %239 : vector<8x128xf32>
    %242 = arith.divf %240, %241 : vector<8x128xf32>
    %243 = vector.extract_strided_slice %236 {offsets = [0, 128], sizes = [8, 128], strides = [1, 1]} : vector<8x512xf32> to vector<8x128xf32>
    %244 = arith.negf %243 : vector<8x128xf32>
    %245 = math.exp %244 : vector<8x128xf32>
    %cst_79 = arith.constant 1.000000e+00 : f32
    %246 = vector.broadcast %cst_79 : f32 to vector<8x128xf32>
    %247 = arith.addf %246, %245 : vector<8x128xf32>
    %248 = arith.divf %246, %247 : vector<8x128xf32>
    %249 = vector.extract_strided_slice %236 {offsets = [0, 256], sizes = [8, 128], strides = [1, 1]} : vector<8x512xf32> to vector<8x128xf32>
    %250 = math.tanh %249 : vector<8x128xf32>
    %251 = vector.extract_strided_slice %236 {offsets = [0, 384], sizes = [8, 128], strides = [1, 1]} : vector<8x512xf32> to vector<8x128xf32>
    %252 = arith.negf %251 : vector<8x128xf32>
    %253 = math.exp %252 : vector<8x128xf32>
    %cst_80 = arith.constant 1.000000e+00 : f32
    %254 = vector.broadcast %cst_80 : f32 to vector<8x128xf32>
    %255 = arith.addf %254, %253 : vector<8x128xf32>
    %256 = arith.divf %254, %255 : vector<8x128xf32>
    %257 = arith.mulf %248, %195 : vector<8x128xf32>
    %258 = arith.mulf %242, %250 : vector<8x128xf32>
    %259 = arith.addf %257, %258 : vector<8x128xf32>
    %260 = math.tanh %259 : vector<8x128xf32>
    %261 = arith.mulf %256, %260 : vector<8x128xf32>
    %c4_81 = arith.constant 4 : index
    %c0_82 = arith.constant 0 : index
    %c0_83 = arith.constant 0 : index
    %262 = vector.load %arg6[%c4_81, %c0_82, %c0_83] : memref<8x8x128xf32, #tpu.memory_space<vmem>>, vector<1x8x128xf32>
    %263 = vector.shape_cast %262 : vector<1x8x128xf32> to vector<8x128xf32>
    %264 = vector.shape_cast %261 : vector<8x128xf32> to vector<1x8x128xf32>
    tpu.vector_store %arg6[%c4_81, %c0_82, %c0_83], %264 {strides = array<i32>} : memref<8x8x128xf32, #tpu.memory_space<vmem>>, vector<1x8x128xf32>,
    %c4_84 = arith.constant 4 : index
    %c0_85 = arith.constant 0 : index
    %c0_86 = arith.constant 0 : index
    %265 = vector.load %arg1[%c4_84, %c0_85, %c0_86] : memref<8x8x512xf32, #tpu.memory_space<vmem>>, vector<1x8x512xf32>
    %266 = vector.shape_cast %265 : vector<1x8x512xf32> to vector<8x512xf32>
    %cst_87 = arith.constant dense<0.000000e+00> : vector<8x512xf32>
    %267 = tpu.matmul %229, %3, %cst_87 {dimension_numbers = #tpu.dot_dimension_numbers<[1], [0], [0], [1], [0, 0, 1, 1], [], []>} : vector<8x128xf32>, vector<128x512xf32>, vector<8x512xf32> -> vector<8x512xf32>
    %268 = arith.addf %266, %267 : vector<8x512xf32>
    %269 = vector.extract_strided_slice %268 {offsets = [0, 0], sizes = [8, 128], strides = [1, 1]} : vector<8x512xf32> to vector<8x128xf32>
    %270 = arith.negf %269 : vector<8x128xf32>
    %271 = math.exp %270 : vector<8x128xf32>
    %cst_88 = arith.constant 1.000000e+00 : f32
    %272 = vector.broadcast %cst_88 : f32 to vector<8x128xf32>
    %273 = arith.addf %272, %271 : vector<8x128xf32>
    %274 = arith.divf %272, %273 : vector<8x128xf32>
    %275 = vector.extract_strided_slice %268 {offsets = [0, 128], sizes = [8, 128], strides = [1, 1]} : vector<8x512xf32> to vector<8x128xf32>
    %276 = arith.negf %275 : vector<8x128xf32>
    %277 = math.exp %276 : vector<8x128xf32>
    %cst_89 = arith.constant 1.000000e+00 : f32
    %278 = vector.broadcast %cst_89 : f32 to vector<8x128xf32>
    %279 = arith.addf %278, %277 : vector<8x128xf32>
    %280 = arith.divf %278, %279 : vector<8x128xf32>
    %281 = vector.extract_strided_slice %268 {offsets = [0, 256], sizes = [8, 128], strides = [1, 1]} : vector<8x512xf32> to vector<8x128xf32>
    %282 = math.tanh %281 : vector<8x128xf32>
    %283 = vector.extract_strided_slice %268 {offsets = [0, 384], sizes = [8, 128], strides = [1, 1]} : vector<8x512xf32> to vector<8x128xf32>
    %284 = arith.negf %283 : vector<8x128xf32>
    %285 = math.exp %284 : vector<8x128xf32>
    %cst_90 = arith.constant 1.000000e+00 : f32
    %286 = vector.broadcast %cst_90 : f32 to vector<8x128xf32>
    %287 = arith.addf %286, %285 : vector<8x128xf32>
    %288 = arith.divf %286, %287 : vector<8x128xf32>
    %289 = arith.mulf %280, %227 : vector<8x128xf32>
    %290 = arith.mulf %274, %282 : vector<8x128xf32>
    %291 = arith.addf %289, %290 : vector<8x128xf32>
    %292 = math.tanh %291 : vector<8x128xf32>
    %293 = arith.mulf %288, %292 : vector<8x128xf32>
    %c4_91 = arith.constant 4 : index
    %c0_92 = arith.constant 0 : index
    %c0_93 = arith.constant 0 : index
    %294 = vector.load %arg5[%c4_91, %c0_92, %c0_93] : memref<8x8x128xf32, #tpu.memory_space<vmem>>, vector<1x8x128xf32>
    %295 = vector.shape_cast %294 : vector<1x8x128xf32> to vector<8x128xf32>
    %296 = vector.shape_cast %293 : vector<8x128xf32> to vector<1x8x128xf32>
    tpu.vector_store %arg5[%c4_91, %c0_92, %c0_93], %296 {strides = array<i32>} : memref<8x8x128xf32, #tpu.memory_space<vmem>>, vector<1x8x128xf32>,
    %c3_94 = arith.constant 3 : index
    %c0_95 = arith.constant 0 : index
    %c0_96 = arith.constant 0 : index
    %297 = vector.load %arg2[%c3_94, %c0_95, %c0_96] : memref<8x8x512xf32, #tpu.memory_space<vmem>>, vector<1x8x512xf32>
    %298 = vector.shape_cast %297 : vector<1x8x512xf32> to vector<8x512xf32>
    %cst_97 = arith.constant dense<0.000000e+00> : vector<8x512xf32>
    %299 = tpu.matmul %261, %4, %cst_97 {dimension_numbers = #tpu.dot_dimension_numbers<[1], [0], [0], [1], [0, 0, 1, 1], [], []>} : vector<8x128xf32>, vector<128x512xf32>, vector<8x512xf32> -> vector<8x512xf32>
    %300 = arith.addf %298, %299 : vector<8x512xf32>
    %301 = vector.extract_strided_slice %300 {offsets = [0, 0], sizes = [8, 128], strides = [1, 1]} : vector<8x512xf32> to vector<8x128xf32>
    %302 = arith.negf %301 : vector<8x128xf32>
    %303 = math.exp %302 : vector<8x128xf32>
    %cst_98 = arith.constant 1.000000e+00 : f32
    %304 = vector.broadcast %cst_98 : f32 to vector<8x128xf32>
    %305 = arith.addf %304, %303 : vector<8x128xf32>
    %306 = arith.divf %304, %305 : vector<8x128xf32>
    %307 = vector.extract_strided_slice %300 {offsets = [0, 128], sizes = [8, 128], strides = [1, 1]} : vector<8x512xf32> to vector<8x128xf32>
    %308 = arith.negf %307 : vector<8x128xf32>
    %309 = math.exp %308 : vector<8x128xf32>
    %cst_99 = arith.constant 1.000000e+00 : f32
    %310 = vector.broadcast %cst_99 : f32 to vector<8x128xf32>
    %311 = arith.addf %310, %309 : vector<8x128xf32>
    %312 = arith.divf %310, %311 : vector<8x128xf32>
    %313 = vector.extract_strided_slice %300 {offsets = [0, 256], sizes = [8, 128], strides = [1, 1]} : vector<8x512xf32> to vector<8x128xf32>
    %314 = math.tanh %313 : vector<8x128xf32>
    %315 = vector.extract_strided_slice %300 {offsets = [0, 384], sizes = [8, 128], strides = [1, 1]} : vector<8x512xf32> to vector<8x128xf32>
    %316 = arith.negf %315 : vector<8x128xf32>
    %317 = math.exp %316 : vector<8x128xf32>
    %cst_100 = arith.constant 1.000000e+00 : f32
    %318 = vector.broadcast %cst_100 : f32 to vector<8x128xf32>
    %319 = arith.addf %318, %317 : vector<8x128xf32>
    %320 = arith.divf %318, %319 : vector<8x128xf32>
    %321 = arith.mulf %312, %259 : vector<8x128xf32>
    %322 = arith.mulf %306, %314 : vector<8x128xf32>
    %323 = arith.addf %321, %322 : vector<8x128xf32>
    %324 = math.tanh %323 : vector<8x128xf32>
    %325 = arith.mulf %320, %324 : vector<8x128xf32>
    %c3_101 = arith.constant 3 : index
    %c0_102 = arith.constant 0 : index
    %c0_103 = arith.constant 0 : index
    %326 = vector.load %arg6[%c3_101, %c0_102, %c0_103] : memref<8x8x128xf32, #tpu.memory_space<vmem>>, vector<1x8x128xf32>
    %327 = vector.shape_cast %326 : vector<1x8x128xf32> to vector<8x128xf32>
    %328 = vector.shape_cast %325 : vector<8x128xf32> to vector<1x8x128xf32>
    tpu.vector_store %arg6[%c3_101, %c0_102, %c0_103], %328 {strides = array<i32>} : memref<8x8x128xf32, #tpu.memory_space<vmem>>, vector<1x8x128xf32>,
    %c5_104 = arith.constant 5 : index
    %c0_105 = arith.constant 0 : index
    %c0_106 = arith.constant 0 : index
    %329 = vector.load %arg1[%c5_104, %c0_105, %c0_106] : memref<8x8x512xf32, #tpu.memory_space<vmem>>, vector<1x8x512xf32>
    %330 = vector.shape_cast %329 : vector<1x8x512xf32> to vector<8x512xf32>
    %cst_107 = arith.constant dense<0.000000e+00> : vector<8x512xf32>
    %331 = tpu.matmul %293, %3, %cst_107 {dimension_numbers = #tpu.dot_dimension_numbers<[1], [0], [0], [1], [0, 0, 1, 1], [], []>} : vector<8x128xf32>, vector<128x512xf32>, vector<8x512xf32> -> vector<8x512xf32>
    %332 = arith.addf %330, %331 : vector<8x512xf32>
    %333 = vector.extract_strided_slice %332 {offsets = [0, 0], sizes = [8, 128], strides = [1, 1]} : vector<8x512xf32> to vector<8x128xf32>
    %334 = arith.negf %333 : vector<8x128xf32>
    %335 = math.exp %334 : vector<8x128xf32>
    %cst_108 = arith.constant 1.000000e+00 : f32
    %336 = vector.broadcast %cst_108 : f32 to vector<8x128xf32>
    %337 = arith.addf %336, %335 : vector<8x128xf32>
    %338 = arith.divf %336, %337 : vector<8x128xf32>
    %339 = vector.extract_strided_slice %332 {offsets = [0, 128], sizes = [8, 128], strides = [1, 1]} : vector<8x512xf32> to vector<8x128xf32>
    %340 = arith.negf %339 : vector<8x128xf32>
    %341 = math.exp %340 : vector<8x128xf32>
    %cst_109 = arith.constant 1.000000e+00 : f32
    %342 = vector.broadcast %cst_109 : f32 to vector<8x128xf32>
    %343 = arith.addf %342, %341 : vector<8x128xf32>
    %344 = arith.divf %342, %343 : vector<8x128xf32>
    %345 = vector.extract_strided_slice %332 {offsets = [0, 256], sizes = [8, 128], strides = [1, 1]} : vector<8x512xf32> to vector<8x128xf32>
    %346 = math.tanh %345 : vector<8x128xf32>
    %347 = vector.extract_strided_slice %332 {offsets = [0, 384], sizes = [8, 128], strides = [1, 1]} : vector<8x512xf32> to vector<8x128xf32>
    %348 = arith.negf %347 : vector<8x128xf32>
    %349 = math.exp %348 : vector<8x128xf32>
    %cst_110 = arith.constant 1.000000e+00 : f32
    %350 = vector.broadcast %cst_110 : f32 to vector<8x128xf32>
    %351 = arith.addf %350, %349 : vector<8x128xf32>
    %352 = arith.divf %350, %351 : vector<8x128xf32>
    %353 = arith.mulf %344, %291 : vector<8x128xf32>
    %354 = arith.mulf %338, %346 : vector<8x128xf32>
    %355 = arith.addf %353, %354 : vector<8x128xf32>
    %356 = math.tanh %355 : vector<8x128xf32>
    %357 = arith.mulf %352, %356 : vector<8x128xf32>
    %c5_111 = arith.constant 5 : index
    %c0_112 = arith.constant 0 : index
    %c0_113 = arith.constant 0 : index
    %358 = vector.load %arg5[%c5_111, %c0_112, %c0_113] : memref<8x8x128xf32, #tpu.memory_space<vmem>>, vector<1x8x128xf32>
    %359 = vector.shape_cast %358 : vector<1x8x128xf32> to vector<8x128xf32>
    %360 = vector.shape_cast %357 : vector<8x128xf32> to vector<1x8x128xf32>
    tpu.vector_store %arg5[%c5_111, %c0_112, %c0_113], %360 {strides = array<i32>} : memref<8x8x128xf32, #tpu.memory_space<vmem>>, vector<1x8x128xf32>,
    %c2_114 = arith.constant 2 : index
    %c0_115 = arith.constant 0 : index
    %c0_116 = arith.constant 0 : index
    %361 = vector.load %arg2[%c2_114, %c0_115, %c0_116] : memref<8x8x512xf32, #tpu.memory_space<vmem>>, vector<1x8x512xf32>
    %362 = vector.shape_cast %361 : vector<1x8x512xf32> to vector<8x512xf32>
    %cst_117 = arith.constant dense<0.000000e+00> : vector<8x512xf32>
    %363 = tpu.matmul %325, %4, %cst_117 {dimension_numbers = #tpu.dot_dimension_numbers<[1], [0], [0], [1], [0, 0, 1, 1], [], []>} : vector<8x128xf32>, vector<128x512xf32>, vector<8x512xf32> -> vector<8x512xf32>
    %364 = arith.addf %362, %363 : vector<8x512xf32>
    %365 = vector.extract_strided_slice %364 {offsets = [0, 0], sizes = [8, 128], strides = [1, 1]} : vector<8x512xf32> to vector<8x128xf32>
    %366 = arith.negf %365 : vector<8x128xf32>
    %367 = math.exp %366 : vector<8x128xf32>
    %cst_118 = arith.constant 1.000000e+00 : f32
    %368 = vector.broadcast %cst_118 : f32 to vector<8x128xf32>
    %369 = arith.addf %368, %367 : vector<8x128xf32>
    %370 = arith.divf %368, %369 : vector<8x128xf32>
    %371 = vector.extract_strided_slice %364 {offsets = [0, 128], sizes = [8, 128], strides = [1, 1]} : vector<8x512xf32> to vector<8x128xf32>
    %372 = arith.negf %371 : vector<8x128xf32>
    %373 = math.exp %372 : vector<8x128xf32>
    %cst_119 = arith.constant 1.000000e+00 : f32
    %374 = vector.broadcast %cst_119 : f32 to vector<8x128xf32>
    %375 = arith.addf %374, %373 : vector<8x128xf32>
    %376 = arith.divf %374, %375 : vector<8x128xf32>
    %377 = vector.extract_strided_slice %364 {offsets = [0, 256], sizes = [8, 128], strides = [1, 1]} : vector<8x512xf32> to vector<8x128xf32>
    %378 = math.tanh %377 : vector<8x128xf32>
    %379 = vector.extract_strided_slice %364 {offsets = [0, 384], sizes = [8, 128], strides = [1, 1]} : vector<8x512xf32> to vector<8x128xf32>
    %380 = arith.negf %379 : vector<8x128xf32>
    %381 = math.exp %380 : vector<8x128xf32>
    %cst_120 = arith.constant 1.000000e+00 : f32
    %382 = vector.broadcast %cst_120 : f32 to vector<8x128xf32>
    %383 = arith.addf %382, %381 : vector<8x128xf32>
    %384 = arith.divf %382, %383 : vector<8x128xf32>
    %385 = arith.mulf %376, %323 : vector<8x128xf32>
    %386 = arith.mulf %370, %378 : vector<8x128xf32>
    %387 = arith.addf %385, %386 : vector<8x128xf32>
    %388 = math.tanh %387 : vector<8x128xf32>
    %389 = arith.mulf %384, %388 : vector<8x128xf32>
    %c2_121 = arith.constant 2 : index
    %c0_122 = arith.constant 0 : index
    %c0_123 = arith.constant 0 : index
    %390 = vector.load %arg6[%c2_121, %c0_122, %c0_123] : memref<8x8x128xf32, #tpu.memory_space<vmem>>, vector<1x8x128xf32>
    %391 = vector.shape_cast %390 : vector<1x8x128xf32> to vector<8x128xf32>
    %392 = vector.shape_cast %389 : vector<8x128xf32> to vector<1x8x128xf32>
    tpu.vector_store %arg6[%c2_121, %c0_122, %c0_123], %392 {strides = array<i32>} : memref<8x8x128xf32, #tpu.memory_space<vmem>>, vector<1x8x128xf32>,
    %c6_124 = arith.constant 6 : index
    %c0_125 = arith.constant 0 : index
    %c0_126 = arith.constant 0 : index
    %393 = vector.load %arg1[%c6_124, %c0_125, %c0_126] : memref<8x8x512xf32, #tpu.memory_space<vmem>>, vector<1x8x512xf32>
    %394 = vector.shape_cast %393 : vector<1x8x512xf32> to vector<8x512xf32>
    %cst_127 = arith.constant dense<0.000000e+00> : vector<8x512xf32>
    %395 = tpu.matmul %357, %3, %cst_127 {dimension_numbers = #tpu.dot_dimension_numbers<[1], [0], [0], [1], [0, 0, 1, 1], [], []>} : vector<8x128xf32>, vector<128x512xf32>, vector<8x512xf32> -> vector<8x512xf32>
    %396 = arith.addf %394, %395 : vector<8x512xf32>
    %397 = vector.extract_strided_slice %396 {offsets = [0, 0], sizes = [8, 128], strides = [1, 1]} : vector<8x512xf32> to vector<8x128xf32>
    %398 = arith.negf %397 : vector<8x128xf32>
    %399 = math.exp %398 : vector<8x128xf32>
    %cst_128 = arith.constant 1.000000e+00 : f32
    %400 = vector.broadcast %cst_128 : f32 to vector<8x128xf32>
    %401 = arith.addf %400, %399 : vector<8x128xf32>
    %402 = arith.divf %400, %401 : vector<8x128xf32>
    %403 = vector.extract_strided_slice %396 {offsets = [0, 128], sizes = [8, 128], strides = [1, 1]} : vector<8x512xf32> to vector<8x128xf32>
    %404 = arith.negf %403 : vector<8x128xf32>
    %405 = math.exp %404 : vector<8x128xf32>
    %cst_129 = arith.constant 1.000000e+00 : f32
    %406 = vector.broadcast %cst_129 : f32 to vector<8x128xf32>
    %407 = arith.addf %406, %405 : vector<8x128xf32>
    %408 = arith.divf %406, %407 : vector<8x128xf32>
    %409 = vector.extract_strided_slice %396 {offsets = [0, 256], sizes = [8, 128], strides = [1, 1]} : vector<8x512xf32> to vector<8x128xf32>
    %410 = math.tanh %409 : vector<8x128xf32>
    %411 = vector.extract_strided_slice %396 {offsets = [0, 384], sizes = [8, 128], strides = [1, 1]} : vector<8x512xf32> to vector<8x128xf32>
    %412 = arith.negf %411 : vector<8x128xf32>
    %413 = math.exp %412 : vector<8x128xf32>
    %cst_130 = arith.constant 1.000000e+00 : f32
    %414 = vector.broadcast %cst_130 : f32 to vector<8x128xf32>
    %415 = arith.addf %414, %413 : vector<8x128xf32>
    %416 = arith.divf %414, %415 : vector<8x128xf32>
    %417 = arith.mulf %408, %355 : vector<8x128xf32>
    %418 = arith.mulf %402, %410 : vector<8x128xf32>
    %419 = arith.addf %417, %418 : vector<8x128xf32>
    %420 = math.tanh %419 : vector<8x128xf32>
    %421 = arith.mulf %416, %420 : vector<8x128xf32>
    %c6_131 = arith.constant 6 : index
    %c0_132 = arith.constant 0 : index
    %c0_133 = arith.constant 0 : index
    %422 = vector.load %arg5[%c6_131, %c0_132, %c0_133] : memref<8x8x128xf32, #tpu.memory_space<vmem>>, vector<1x8x128xf32>
    %423 = vector.shape_cast %422 : vector<1x8x128xf32> to vector<8x128xf32>
    %424 = vector.shape_cast %421 : vector<8x128xf32> to vector<1x8x128xf32>
    tpu.vector_store %arg5[%c6_131, %c0_132, %c0_133], %424 {strides = array<i32>} : memref<8x8x128xf32, #tpu.memory_space<vmem>>, vector<1x8x128xf32>,
    %c1_134 = arith.constant 1 : index
    %c0_135 = arith.constant 0 : index
    %c0_136 = arith.constant 0 : index
    %425 = vector.load %arg2[%c1_134, %c0_135, %c0_136] : memref<8x8x512xf32, #tpu.memory_space<vmem>>, vector<1x8x512xf32>
    %426 = vector.shape_cast %425 : vector<1x8x512xf32> to vector<8x512xf32>
    %cst_137 = arith.constant dense<0.000000e+00> : vector<8x512xf32>
    %427 = tpu.matmul %389, %4, %cst_137 {dimension_numbers = #tpu.dot_dimension_numbers<[1], [0], [0], [1], [0, 0, 1, 1], [], []>} : vector<8x128xf32>, vector<128x512xf32>, vector<8x512xf32> -> vector<8x512xf32>
    %428 = arith.addf %426, %427 : vector<8x512xf32>
    %429 = vector.extract_strided_slice %428 {offsets = [0, 0], sizes = [8, 128], strides = [1, 1]} : vector<8x512xf32> to vector<8x128xf32>
    %430 = arith.negf %429 : vector<8x128xf32>
    %431 = math.exp %430 : vector<8x128xf32>
    %cst_138 = arith.constant 1.000000e+00 : f32
    %432 = vector.broadcast %cst_138 : f32 to vector<8x128xf32>
    %433 = arith.addf %432, %431 : vector<8x128xf32>
    %434 = arith.divf %432, %433 : vector<8x128xf32>
    %435 = vector.extract_strided_slice %428 {offsets = [0, 128], sizes = [8, 128], strides = [1, 1]} : vector<8x512xf32> to vector<8x128xf32>
    %436 = arith.negf %435 : vector<8x128xf32>
    %437 = math.exp %436 : vector<8x128xf32>
    %cst_139 = arith.constant 1.000000e+00 : f32
    %438 = vector.broadcast %cst_139 : f32 to vector<8x128xf32>
    %439 = arith.addf %438, %437 : vector<8x128xf32>
    %440 = arith.divf %438, %439 : vector<8x128xf32>
    %441 = vector.extract_strided_slice %428 {offsets = [0, 256], sizes = [8, 128], strides = [1, 1]} : vector<8x512xf32> to vector<8x128xf32>
    %442 = math.tanh %441 : vector<8x128xf32>
    %443 = vector.extract_strided_slice %428 {offsets = [0, 384], sizes = [8, 128], strides = [1, 1]} : vector<8x512xf32> to vector<8x128xf32>
    %444 = arith.negf %443 : vector<8x128xf32>
    %445 = math.exp %444 : vector<8x128xf32>
    %cst_140 = arith.constant 1.000000e+00 : f32
    %446 = vector.broadcast %cst_140 : f32 to vector<8x128xf32>
    %447 = arith.addf %446, %445 : vector<8x128xf32>
    %448 = arith.divf %446, %447 : vector<8x128xf32>
    %449 = arith.mulf %440, %387 : vector<8x128xf32>
    %450 = arith.mulf %434, %442 : vector<8x128xf32>
    %451 = arith.addf %449, %450 : vector<8x128xf32>
    %452 = math.tanh %451 : vector<8x128xf32>
    %453 = arith.mulf %448, %452 : vector<8x128xf32>
    %c1_141 = arith.constant 1 : index
    %c0_142 = arith.constant 0 : index
    %c0_143 = arith.constant 0 : index
    %454 = vector.load %arg6[%c1_141, %c0_142, %c0_143] : memref<8x8x128xf32, #tpu.memory_space<vmem>>, vector<1x8x128xf32>
    %455 = vector.shape_cast %454 : vector<1x8x128xf32> to vector<8x128xf32>
    %456 = vector.shape_cast %453 : vector<8x128xf32> to vector<1x8x128xf32>
    tpu.vector_store %arg6[%c1_141, %c0_142, %c0_143], %456 {strides = array<i32>} : memref<8x8x128xf32, #tpu.memory_space<vmem>>, vector<1x8x128xf32>,
    %c7_144 = arith.constant 7 : index
    %c0_145 = arith.constant 0 : index
    %c0_146 = arith.constant 0 : index
    %457 = vector.load %arg1[%c7_144, %c0_145, %c0_146] : memref<8x8x512xf32, #tpu.memory_space<vmem>>, vector<1x8x512xf32>
    %458 = vector.shape_cast %457 : vector<1x8x512xf32> to vector<8x512xf32>
    %cst_147 = arith.constant dense<0.000000e+00> : vector<8x512xf32>
    %459 = tpu.matmul %421, %3, %cst_147 {dimension_numbers = #tpu.dot_dimension_numbers<[1], [0], [0], [1], [0, 0, 1, 1], [], []>} : vector<8x128xf32>, vector<128x512xf32>, vector<8x512xf32> -> vector<8x512xf32>
    %460 = arith.addf %458, %459 : vector<8x512xf32>
    %461 = vector.extract_strided_slice %460 {offsets = [0, 0], sizes = [8, 128], strides = [1, 1]} : vector<8x512xf32> to vector<8x128xf32>
    %462 = arith.negf %461 : vector<8x128xf32>
    %463 = math.exp %462 : vector<8x128xf32>
    %cst_148 = arith.constant 1.000000e+00 : f32
    %464 = vector.broadcast %cst_148 : f32 to vector<8x128xf32>
    %465 = arith.addf %464, %463 : vector<8x128xf32>
    %466 = arith.divf %464, %465 : vector<8x128xf32>
    %467 = vector.extract_strided_slice %460 {offsets = [0, 128], sizes = [8, 128], strides = [1, 1]} : vector<8x512xf32> to vector<8x128xf32>
    %468 = arith.negf %467 : vector<8x128xf32>
    %469 = math.exp %468 : vector<8x128xf32>
    %cst_149 = arith.constant 1.000000e+00 : f32
    %470 = vector.broadcast %cst_149 : f32 to vector<8x128xf32>
    %471 = arith.addf %470, %469 : vector<8x128xf32>
    %472 = arith.divf %470, %471 : vector<8x128xf32>
    %473 = vector.extract_strided_slice %460 {offsets = [0, 256], sizes = [8, 128], strides = [1, 1]} : vector<8x512xf32> to vector<8x128xf32>
    %474 = math.tanh %473 : vector<8x128xf32>
    %475 = vector.extract_strided_slice %460 {offsets = [0, 384], sizes = [8, 128], strides = [1, 1]} : vector<8x512xf32> to vector<8x128xf32>
    %476 = arith.negf %475 : vector<8x128xf32>
    %477 = math.exp %476 : vector<8x128xf32>
    %cst_150 = arith.constant 1.000000e+00 : f32
    %478 = vector.broadcast %cst_150 : f32 to vector<8x128xf32>
    %479 = arith.addf %478, %477 : vector<8x128xf32>
    %480 = arith.divf %478, %479 : vector<8x128xf32>
    %481 = arith.mulf %472, %419 : vector<8x128xf32>
    %482 = arith.mulf %466, %474 : vector<8x128xf32>
    %483 = arith.addf %481, %482 : vector<8x128xf32>
    %484 = math.tanh %483 : vector<8x128xf32>
    %485 = arith.mulf %480, %484 : vector<8x128xf32>
    %c7_151 = arith.constant 7 : index
    %c0_152 = arith.constant 0 : index
    %c0_153 = arith.constant 0 : index
    %486 = vector.load %arg5[%c7_151, %c0_152, %c0_153] : memref<8x8x128xf32, #tpu.memory_space<vmem>>, vector<1x8x128xf32>
    %487 = vector.shape_cast %486 : vector<1x8x128xf32> to vector<8x128xf32>
    %488 = vector.shape_cast %485 : vector<8x128xf32> to vector<1x8x128xf32>
    tpu.vector_store %arg5[%c7_151, %c0_152, %c0_153], %488 {strides = array<i32>} : memref<8x8x128xf32, #tpu.memory_space<vmem>>, vector<1x8x128xf32>,
    %c0_154 = arith.constant 0 : index
    %c0_155 = arith.constant 0 : index
    %c0_156 = arith.constant 0 : index
    %489 = vector.load %arg2[%c0_154, %c0_155, %c0_156] : memref<8x8x512xf32, #tpu.memory_space<vmem>>, vector<1x8x512xf32>
    %490 = vector.shape_cast %489 : vector<1x8x512xf32> to vector<8x512xf32>
    %cst_157 = arith.constant dense<0.000000e+00> : vector<8x512xf32>
    %491 = tpu.matmul %453, %4, %cst_157 {dimension_numbers = #tpu.dot_dimension_numbers<[1], [0], [0], [1], [0, 0, 1, 1], [], []>} : vector<8x128xf32>, vector<128x512xf32>, vector<8x512xf32> -> vector<8x512xf32>
    %492 = arith.addf %490, %491 : vector<8x512xf32>
    %493 = vector.extract_strided_slice %492 {offsets = [0, 0], sizes = [8, 128], strides = [1, 1]} : vector<8x512xf32> to vector<8x128xf32>
    %494 = arith.negf %493 : vector<8x128xf32>
    %495 = math.exp %494 : vector<8x128xf32>
    %cst_158 = arith.constant 1.000000e+00 : f32
    %496 = vector.broadcast %cst_158 : f32 to vector<8x128xf32>
    %497 = arith.addf %496, %495 : vector<8x128xf32>
    %498 = arith.divf %496, %497 : vector<8x128xf32>
    %499 = vector.extract_strided_slice %492 {offsets = [0, 128], sizes = [8, 128], strides = [1, 1]} : vector<8x512xf32> to vector<8x128xf32>
    %500 = arith.negf %499 : vector<8x128xf32>
    %501 = math.exp %500 : vector<8x128xf32>
    %cst_159 = arith.constant 1.000000e+00 : f32
    %502 = vector.broadcast %cst_159 : f32 to vector<8x128xf32>
    %503 = arith.addf %502, %501 : vector<8x128xf32>
    %504 = arith.divf %502, %503 : vector<8x128xf32>
    %505 = vector.extract_strided_slice %492 {offsets = [0, 256], sizes = [8, 128], strides = [1, 1]} : vector<8x512xf32> to vector<8x128xf32>
    %506 = math.tanh %505 : vector<8x128xf32>
    %507 = vector.extract_strided_slice %492 {offsets = [0, 384], sizes = [8, 128], strides = [1, 1]} : vector<8x512xf32> to vector<8x128xf32>
    %508 = arith.negf %507 : vector<8x128xf32>
    %509 = math.exp %508 : vector<8x128xf32>
    %cst_160 = arith.constant 1.000000e+00 : f32
    %510 = vector.broadcast %cst_160 : f32 to vector<8x128xf32>
    %511 = arith.addf %510, %509 : vector<8x128xf32>
    %512 = arith.divf %510, %511 : vector<8x128xf32>
    %513 = arith.mulf %504, %451 : vector<8x128xf32>
    %514 = arith.mulf %498, %506 : vector<8x128xf32>
    %515 = arith.addf %513, %514 : vector<8x128xf32>
    %516 = math.tanh %515 : vector<8x128xf32>
    %517 = arith.mulf %512, %516 : vector<8x128xf32>
    %c0_161 = arith.constant 0 : index
    %c0_162 = arith.constant 0 : index
    %c0_163 = arith.constant 0 : index
    %518 = vector.load %arg6[%c0_161, %c0_162, %c0_163] : memref<8x8x128xf32, #tpu.memory_space<vmem>>, vector<1x8x128xf32>
    %519 = vector.shape_cast %518 : vector<1x8x128xf32> to vector<8x128xf32>
    %520 = vector.shape_cast %517 : vector<8x128xf32> to vector<1x8x128xf32>
    tpu.vector_store %arg6[%c0_161, %c0_162, %c0_163], %520 {strides = array<i32>} : memref<8x8x128xf32, #tpu.memory_space<vmem>>, vector<1x8x128xf32>,
    %c0_164 = arith.constant 0 : index
    %c0_165 = arith.constant 0 : index
    %521 = vector.load %arg9[%c0_164, %c0_165] : memref<8x128xf32, #tpu.memory_space<vmem>>, vector<8x128xf32>
    tpu.vector_store %arg9[%c0_164, %c0_165], %485 {strides = array<i32>} : memref<8x128xf32, #tpu.memory_space<vmem>>, vector<8x128xf32>,
    %c0_166 = arith.constant 0 : index
    %c0_167 = arith.constant 0 : index
    %522 = vector.load %arg10[%c0_166, %c0_167] : memref<8x128xf32, #tpu.memory_space<vmem>>, vector<8x128xf32>
    tpu.vector_store %arg10[%c0_166, %c0_167], %483 {strides = array<i32>} : memref<8x128xf32, #tpu.memory_space<vmem>>, vector<8x128xf32>,
    %c0_168 = arith.constant 0 : index
    %c0_169 = arith.constant 0 : index
    %523 = vector.load %arg11[%c0_168, %c0_169] : memref<8x128xf32, #tpu.memory_space<vmem>>, vector<8x128xf32>
    tpu.vector_store %arg11[%c0_168, %c0_169], %517 {strides = array<i32>} : memref<8x128xf32, #tpu.memory_space<vmem>>, vector<8x128xf32>,
    %c0_170 = arith.constant 0 : index
    %c0_171 = arith.constant 0 : index
    %524 = vector.load %arg12[%c0_170, %c0_171] : memref<8x128xf32, #tpu.memory_space<vmem>>, vector<8x128xf32>
    tpu.vector_store %arg12[%c0_170, %c0_171], %515 {strides = array<i32>} : memref<8x128xf32, #tpu.memory_space<vmem>>, vector<8x128xf32>,
    %c1_i32 = arith.constant 1 : i32
    %525 = arith.cmpi eq, %arg0, %c1_i32 : i32
    %526 = arith.extui %525 : i1 to i32
    %c0_i32_172 = arith.constant 0 : i32
    %527 = arith.cmpi ne, %526, %c0_i32_172 : i32
    scf.if %527 {
      %c0_173 = arith.constant 0 : index
      %c0_174 = arith.constant 0 : index
      %528 = vector.load %arg7[%c0_173, %c0_174] : memref<8x128xf32, #tpu.memory_space<vmem>>, vector<8x128xf32>
      tpu.vector_store %arg7[%c0_173, %c0_174], %485 {strides = array<i32>} : memref<8x128xf32, #tpu.memory_space<vmem>>, vector<8x128xf32>,
      %c0_175 = arith.constant 0 : index
      %c0_176 = arith.constant 0 : index
      %529 = vector.load %arg8[%c0_175, %c0_176] : memref<8x128xf32, #tpu.memory_space<vmem>>, vector<8x128xf32>
      tpu.vector_store %arg8[%c0_175, %c0_176], %517 {strides = array<i32>} : memref<8x128xf32, #tpu.memory_space<vmem>>, vector<8x128xf32>,
    } else {
    }
    return
  }
  func.func @transform_0(%arg0: i32) -> (i32, i32, i32) {
    %c0_i32 = arith.constant 0 : i32
    %c0_i32_0 = arith.constant 0 : i32
    %c0_i32_1 = arith.constant 0 : i32
    return %arg0, %c0_i32, %c0_i32_0 : i32, i32, i32
  }
  func.func @transform_1(%arg0: i32) -> (i32, i32, i32) {
    %c1_i32 = arith.constant 1 : i32
    %0 = arith.subi %c1_i32, %arg0 : i32
    %c0_i32 = arith.constant 0 : i32
    %c0_i32_0 = arith.constant 0 : i32
    %c0_i32_1 = arith.constant 0 : i32
    return %0, %c0_i32, %c0_i32_0 : i32, i32, i32
  }
  func.func @transform_2(%arg0: i32) -> (i32, i32) {
    %c0_i32 = arith.constant 0 : i32
    %c0_i32_0 = arith.constant 0 : i32
    %c0_i32_1 = arith.constant 0 : i32
    return %c0_i32, %c0_i32_0 : i32, i32
  }
  func.func @transform_3(%arg0: i32) -> (i32, i32) {
    %c0_i32 = arith.constant 0 : i32
    %c0_i32_0 = arith.constant 0 : i32
    %c0_i32_1 = arith.constant 0 : i32
    return %c0_i32, %c0_i32_0 : i32, i32
  }
  func.func @transform_4(%arg0: i32) -> (i32, i32, i32) {
    %c0_i32 = arith.constant 0 : i32
    %c0_i32_0 = arith.constant 0 : i32
    %c0_i32_1 = arith.constant 0 : i32
    return %arg0, %c0_i32, %c0_i32_0 : i32, i32, i32
  }
  func.func @transform_5(%arg0: i32) -> (i32, i32, i32) {
    %c1_i32 = arith.constant 1 : i32
    %0 = arith.subi %c1_i32, %arg0 : i32
    %c0_i32 = arith.constant 0 : i32
    %c0_i32_0 = arith.constant 0 : i32
    %c0_i32_1 = arith.constant 0 : i32
    return %0, %c0_i32, %c0_i32_0 : i32, i32, i32
  }
  func.func @transform_6(%arg0: i32) -> (i32, i32) {
    %c0_i32 = arith.constant 0 : i32
    %c0_i32_0 = arith.constant 0 : i32
    %c0_i32_1 = arith.constant 0 : i32
    return %c0_i32, %c0_i32_0 : i32, i32
  }
  func.func @transform_7(%arg0: i32) -> (i32, i32) {
    %c0_i32 = arith.constant 0 : i32
    %c0_i32_0 = arith.constant 0 : i32
    %c0_i32_1 = arith.constant 0 : i32
    return %c0_i32, %c0_i32_0 : i32, i32
  }
}

</mosaic_0001>

<bundles_post_ra>
// kernel: bidirectional_lstm_encoder.2
= control target key start
LH: loop header
LB: loop body
LE: loop exit
PB: predicated region body
PF: predicated region fallthrough
CT: control target
= control target key end

     0   :  { %s4904_s24 = smov 0   ;;  %s6139_s0 = inlined_call_operand.vmem [shape: f32[16,8,512], index: 0, kind: input, shape index: {}]   ;;  %s6140_s1 = inlined_call_operand.vmem [shape: f32[16,8,512], index: 1, kind: input, shape index: {}]   ;;  %s6141_s2 = inlined_call_operand.vmem [shape: f32[128,512], index: 2, kind: input, shape index: {}]   ;;  %s6142_s3 = inlined_call_operand.vmem [shape: f32[128,512], index: 3, kind: input, shape index: {}]   ;;  %s6143_s4 = inlined_call_operand.vmem [shape: f32[16,8,128], index: 4, kind: output, shape index: {0}]   ;;  %s6144_s5 = inlined_call_operand.vmem [shape: f32[16,8,128], index: 5, kind: output, shape index: {1}]   ;;  %s6145_s6 = inlined_call_operand.vmem [shape: f32[8,128], index: 6, kind: output, shape index: {2}]   ;;  %s6146_s7 = inlined_call_operand.vmem [shape: f32[8,128], index: 7, kind: output, shape index: {3}]  }
   0x1 LB: > { %s4910_s25 = sadd.s32 4294967295, %s4860_s24   ;;  %p3429_p0 = scmp.ge.s32.totalorder %s4860_s24, 1  ;;  %s4860_s24 = sphi %s4904_s24, %s18_s24  }
   0x2   : > { %p254_p1 = scmp.lt.s32.totalorder %s4860_s24, 3 }
   0x4   : > { %p255_p2 = pnand %p3429_p0, %p254_p1 }
   0x6   : > { %258 = sbr.rel (%p255_p2) target bundleno = 2162 (0x872), region = 36 }
   0xd   : > { %s3430_s26 = sshll.u32 %s4910_s25, 3  ;;  %s307_s27 = ssub.s32 1, %s4910_s25 }
   0xe   : > { %p301_p3 = scmp.lt.s32.totalorder %s3430_s26, 15  ;;  %s3433_s28 = sshll.u32 %s307_s27, 3 }
   0xf   : > { %p309_p4 = scmp.lt.s32.totalorder %s3433_s28, 15  ;;  %p3440_p5 = scmp.ne.s32.totalorder %s4910_s25, 0 }
  0x10   : > { %s6368_s26 = smov (!%p301_p3, %s3430_s26), 15  ;;  %v4862_v0 = vmov (!%p3440_p5), 0.0  }
  0x11   : > { %s6370_s28 = smov (!%p309_p4, %s3433_s28), 15  ;;  %s3562_s29 = sshll.u32 %s6368_s26, 5  ;;  %334 = vst [vmem:[#allocation2] sm:$0xff] (!%p3440_p5), %v4862_v0  ;;  %335 = vst [vmem:[#allocation3] sm:$0xff] (!%p3440_p5), %v4862_v0 }
  0x12   : > { %s3437_s30 = sshll.u32 %s6368_s26, 3  ;;  %s4919_s10 = scalar_lea.vmem %s6139_s0, %s3562_s29  ;;  %336 = vst [vmem:[#allocation4] sm:$0xff] (!%p3440_p5), %v4862_v0  ;;  %337 = vst [vmem:[#allocation5] sm:$0xff] (!%p3440_p5), %v4862_v0 }
  0x13   : > { %s3563_s11 = sshll.u32 %s6370_s28, 5  ;;  %s4929_s17 = scalar_lea.vmem %s6143_s4, %s3437_s30 }
  0x14   : > { %s4924_s14 = scalar_lea.vmem %s6140_s1, %s3563_s11  ;;  %s3439_s18 = sshll.u32 %s6370_s28, 3 }
  0x15   : > { %s4934_s21 = scalar_lea.vmem %s6144_s5, %s3439_s18  ;;  %333 = sbr.rel (%p3440_p5) target bundleno = 28 (0x1c), region = 40 }
  0x1c PF: > { %v339_v1 = vld [vmem:[%s6141_s2 + $0x8] sm:$0xff]  ;;  %v338_v3 = vld [vmem:[%s6141_s2] sm:$0xff]  ;;  %v6147_v8 = vmov 0.0   ;;  %v341_v20 = vld [vmem:[%s6141_s2 + $0x18] sm:$0xff]  ;;  %p3559_p6 = scmp.ne.s32.totalorder %s4910_s25, 1 }
  0x1d   : > { %v343_v2 = vld [vmem:[%s6141_s2 + $0x28] sm:$0xff]  ;;  %v342_v5 = vld [vmem:[%s6141_s2 + $0x20] sm:$0xff]  ;;  %538 = vmatprep.mubr.f32.mxu0 %v6147_v8  ;;  %609 = vmatprep.mubr.f32.mxu1 %v6147_v8  ;;  %v345_v21 = vld [vmem:[%s6141_s2 + $0x38] sm:$0xff] }
  0x1e   : > { %v4946_v4 = vpack.c.bf16 %v343_v2, %v339_v1  ;;  %v347_v6 = vld [vmem:[%s6141_s2 + $0x48] sm:$0xff]  ;;  %v4959_v9 = vpack.c.bf16 %v342_v5, %v338_v3  ;;  %v346_v11 = vld [vmem:[%s6141_s2 + $0x40] sm:$0xff]  ;;  %v5000_v23 = vpack.c.bf16 %v345_v21, %v341_v20  ;;  %v340_v24 = vld [vmem:[%s6141_s2 + $0x10] sm:$0xff] }
  0x1f   : > { %v351_v7 = vld [vmem:[%s6141_s2 + $0x68] sm:$0xff]  ;;  %v350_v12 = vld [vmem:[%s6141_s2 + $0x60] sm:$0xff]  ;;  %v344_v25 = vld [vmem:[%s6141_s2 + $0x30] sm:$0xff] }
  0x20   : > { %v4961_v10 = vpack.c.bf16 %v351_v7, %v347_v6  ;;  %v355_v13 = vld [vmem:[%s6141_s2 + $0x88] sm:$0xff]  ;;  %3565 = vmatprep.subr.bf16.mxu0 %v4946_v4  ;;  %v4977_v15 = vpack.c.bf16 %v350_v12, %v346_v11  ;;  %v354_v16 = vld [vmem:[%s6141_s2 + $0x80] sm:$0xff]  ;;  %v5008_v26 = vpack.c.bf16 %v344_v25, %v340_v24  ;;  %3597 = vmatprep.subr.bf16.mxu1 %v5000_v23  ;;  %v349_v28 = vld [vmem:[%s6141_s2 + $0x58] sm:$0xff] }
  0x21   : > { %v359_v14 = vld [vmem:[%s6141_s2 + $0xa8] sm:$0xff]  ;;  %3567 = vmatpush1.bf16.msra.mxu0 %v4959_v9  ;;  %v358_v17 = vld [vmem:[%s6141_s2 + $0xa0] sm:$0xff]  ;;  %v353_v29 = vld [vmem:[%s6141_s2 + $0x78] sm:$0xff] }
  0x22   : > { %3569 = vmatprep.subr.bf16.mxu0 %v4961_v10  ;;  %v4986_v18 = vpack.c.bf16 %v359_v14, %v355_v13  ;;  %v363_v19 = vld [vmem:[%s6141_s2 + $0xc8] sm:$0xff]  ;;  %v5011_v27 = vpack.c.bf16 %v358_v17, %v354_v16  ;;  %v348_v30 = vld [vmem:[%s6141_s2 + $0x50] sm:$0xff]  ;;  %v362_v32 = vld [vmem:[%s6141_s2 + $0xc0] sm:$0xff]  ;;  %3599 = vmatpush1.bf16.msra.mxu1 %v5008_v26  ;;  %v5033_v34 = vpack.c.bf16 %v353_v29, %v349_v28 }
  0x23   : > { %v367_v22 = vld [vmem:[%s6141_s2 + $0xe8] sm:$0xff]  ;;  %v366_v33 = vld [vmem:[%s6141_s2 + $0xe0] sm:$0xff]  ;;  %v352_v35 = vld [vmem:[%s6141_s2 + $0x70] sm:$0xff] }
  0x24   : > { %v5024_v31 = vpack.c.bf16 %v367_v22, %v363_v19  ;;  %v371_v36 = vld [vmem:[%s6141_s2 + $0x108] sm:$0xff]  ;;  %v5044_v38 = vpack.c.bf16 %v352_v35, %v348_v30  ;;  %v357_v39 = vld [vmem:[%s6141_s2 + $0x98] sm:$0xff]  ;;  %3601 = vmatprep.subr.bf16.mxu1 %v5033_v34  ;;  %v356_v41 = vld [vmem:[%s6141_s2 + $0x90] sm:$0xff]  ;;  %v5060_v43 = vpack.c.bf16 %v366_v33, %v362_v32 }
  0x25   : > { %3571 = vmatpush1.bf16.msra.mxu0 %v4977_v15  ;;  %v375_v37 = vld [vmem:[%s6141_s2 + $0x128] sm:$0xff]  ;;  %v361_v40 = vld [vmem:[%s6141_s2 + $0xb8] sm:$0xff]  ;;  %v360_v42 = vld [vmem:[%s6141_s2 + $0xb0] sm:$0xff] }
  0x26   : > { %3573 = vmatprep.subr.bf16.mxu0 %v4986_v18  ;;  %6207 = vst [vmem:[#allocation6_spill] sm:$0xff] %v5024_v31  ;;  %6208 = vst [vmem:[#allocation7_spill] sm:$0xff] %v5060_v43  ;;  %v370_v44 = vld [vmem:[%s6141_s2 + $0x100] sm:$0xff]  ;;  %v5068_v46 = vpack.c.bf16 %v361_v40, %v357_v39  ;;  %v5071_v47 = vpack.c.bf16 %v375_v37, %v371_v36  ;;  %3603 = vmatpush1.bf16.msra.mxu1 %v5044_v38  ;;  %v379_v48 = vld [vmem:[%s6141_s2 + $0x148] sm:$0xff] }
  0x27   : > { %v374_v45 = vld [vmem:[%s6141_s2 + $0x120] sm:$0xff]  ;;  %v5077_v49 = vpack.c.bf16 %v360_v42, %v356_v41  ;;  %v365_v50 = vld [vmem:[%s6141_s2 + $0xd8] sm:$0xff]  ;;  %v383_v52 = vld [vmem:[%s6141_s2 + $0x168] sm:$0xff] }
  0x28   : > { %6209 = vst [vmem:[#allocation8_spill] sm:$0xff] %v5071_v47  ;;  %v369_v51 = vld [vmem:[%s6141_s2 + $0xf8] sm:$0xff]  ;;  %3605 = vmatprep.subr.bf16.mxu1 %v5068_v46  ;;  %v364_v54 = vld [vmem:[%s6141_s2 + $0xd0] sm:$0xff]  ;;  %v5098_v56 = vpack.c.bf16 %v374_v45, %v370_v44  ;;  %v5107_v59 = vpack.c.bf16 %v383_v52, %v379_v48  ;;  %v378_v60 = vld [vmem:[%s6141_s2 + $0x140] sm:$0xff] }
  0x29   : > { %3575 = vmatpush1.bf16.msra.mxu0 %v5011_v27  ;;  %v5089_v53 = vpack.c.bf16 %v369_v51, %v365_v50  ;;  %v368_v55 = vld [vmem:[%s6141_s2 + $0xf0] sm:$0xff]  ;;  %v373_v57 = vld [vmem:[%s6141_s2 + $0x118] sm:$0xff]  ;;  %v382_v61 = vld [vmem:[%s6141_s2 + $0x160] sm:$0xff] }
  0x2a   : > { %3577 = vmatprep.subr.bf16.mxu0 %v5024_v31  ;;  %6211 = vst [vmem:[#allocation10_spill] sm:$0xff] %v5098_v56  ;;  %v377_v58 = vld [vmem:[%s6141_s2 + $0x138] sm:$0xff]  ;;  %6212 = vst [vmem:[#allocation11_spill] sm:$0xff] %v5107_v59  ;;  %3607 = vmatpush1.bf16.msra.mxu1 %v5077_v49  ;;  %v387_v62 = vld [vmem:[%s6141_s2 + $0x188] sm:$0xff]  ;;  %v5119_v63 = vpack.c.bf16 %v368_v55, %v364_v54  ;;  %v5140_v7 = vpack.c.bf16 %v382_v61, %v378_v60 }
  0x2b   : > { %6210 = vst [vmem:[#allocation9_spill] sm:$0xff] %v5089_v53  ;;  %v391_v0 = vld [vmem:[%s6141_s2 + $0x1a8] sm:$0xff]  ;;  %3609 = vmatprep.subr.bf16.mxu1 %v5089_v53  ;;  %v5125_v1 = vpack.c.bf16 %v377_v58, %v373_v57  ;;  %v372_v2 = vld [vmem:[%s6141_s2 + $0x110] sm:$0xff]  ;;  %v381_v5 = vld [vmem:[%s6141_s2 + $0x158] sm:$0xff] }
  0x2c   : > { %6213 = vst [vmem:[#allocation12_spill] sm:$0xff] %v5119_v63  ;;  %v376_v3 = vld [vmem:[%s6141_s2 + $0x130] sm:$0xff]  ;;  %v385_v6 = vld [vmem:[%s6141_s2 + $0x178] sm:$0xff]  ;;  %6215 = vst [vmem:[#allocation14_spill] sm:$0xff] %v5140_v7  ;;  %v5143_v11 = vpack.c.bf16 %v391_v0, %v387_v62 }
  0x2d   : > { %3579 = vmatpush1.bf16.msra.mxu0 %v5060_v43  ;;  %6214 = vst [vmem:[#allocation13_spill] sm:$0xff] %v5125_v1  ;;  %v386_v12 = vld [vmem:[%s6141_s2 + $0x180] sm:$0xff]  ;;  %v395_v14 = vld [vmem:[%s6141_s2 + $0x1c8] sm:$0xff]  ;;  %v5155_v16 = vpack.c.bf16 %v376_v3, %v372_v2  ;;  %v5161_v19 = vpack.c.bf16 %v385_v6, %v381_v5  ;;  %v380_v20 = vld [vmem:[%s6141_s2 + $0x150] sm:$0xff] }
  0x2e   : > { %3581 = vmatprep.subr.bf16.mxu0 %v5071_v47  ;;  %6216 = vst [vmem:[#allocation15_spill] sm:$0xff] %v5143_v11  ;;  %v390_v13 = vld [vmem:[%s6141_s2 + $0x1a0] sm:$0xff]  ;;  %3611 = vmatpush1.bf16.msra.mxu1 %v5119_v63  ;;  %v399_v17 = vld [vmem:[%s6141_s2 + $0x1e8] sm:$0xff]  ;;  %v384_v21 = vld [vmem:[%s6141_s2 + $0x170] sm:$0xff] }
  0x2f   : > { %6217 = vst [vmem:[#allocation16_spill] sm:$0xff] %v5155_v16  ;;  %3613 = vmatprep.subr.bf16.mxu1 %v5125_v1  ;;  %6218 = vst [vmem:[#allocation17_spill] sm:$0xff] %v5161_v19  ;;  %v389_v22 = vld [vmem:[%s6141_s2 + $0x198] sm:$0xff]  ;;  %v5176_v25 = vpack.c.bf16 %v390_v13, %v386_v12  ;;  %v5179_v28 = vpack.c.bf16 %v399_v17, %v395_v14  ;;  %v394_v29 = vld [vmem:[%s6141_s2 + $0x1c0] sm:$0xff]  ;;  %v5191_v33 = vpack.c.bf16 %v384_v21, %v380_v20 }
  0x30   : > { %v393_v24 = vld [vmem:[%s6141_s2 + $0x1b8] sm:$0xff]  ;;  %v398_v30 = vld [vmem:[%s6141_s2 + $0x1e0] sm:$0xff]  ;;  %v403_v32 = vld [vmem:[%s6142_s3 + $0x8] sm:$0xff] }
  0x31   : > { %3583 = vmatpush1.bf16.msra.mxu0 %v5098_v56  ;;  %6219 = vst [vmem:[#allocation18_spill] sm:$0xff] %v5176_v25  ;;  %6220 = vst [vmem:[#allocation19_spill] sm:$0xff] %v5179_v28  ;;  %v407_v35 = vld [vmem:[%s6142_s3 + $0x28] sm:$0xff]  ;;  %v5197_v36 = vpack.c.bf16 %v393_v24, %v389_v22  ;;  %v388_v37 = vld [vmem:[%s6141_s2 + $0x190] sm:$0xff]  ;;  %v5212_v42 = vpack.c.bf16 %v398_v30, %v394_v29 }
  0x32   : > { %3585 = vmatprep.subr.bf16.mxu0 %v5107_v59  ;;  %3615 = vmatpush1.bf16.msra.mxu1 %v5155_v16  ;;  %6221 = vst [vmem:[#allocation20_spill] sm:$0xff] %v5191_v33  ;;  %v392_v39 = vld [vmem:[%s6141_s2 + $0x1b0] sm:$0xff]  ;;  %v397_v40 = vld [vmem:[%s6141_s2 + $0x1d8] sm:$0xff]  ;;  %v5215_v44 = vpack.c.bf16 %v407_v35, %v403_v32  ;;  %v402_v45 = vld [vmem:[%s6142_s3] sm:$0xff] }
  0x33   : > { %3617 = vmatprep.subr.bf16.mxu1 %v5161_v19  ;;  %6222 = vst [vmem:[#allocation21_spill] sm:$0xff] %v5197_v36  ;;  %v401_v41 = vld [vmem:[%s6141_s2 + $0x1f8] sm:$0xff]  ;;  %6223 = vst [vmem:[#allocation22_spill] sm:$0xff] %v5212_v42  ;;  %v406_v48 = vld [vmem:[%s6142_s3 + $0x20] sm:$0xff]  ;;  %v5227_v51 = vpack.c.bf16 %v392_v39, %v388_v37 }
  0x34   : > { %6224 = vst [vmem:[#allocation23_spill] sm:$0xff] %v5215_v44  ;;  %v411_v50 = vld [vmem:[%s6142_s3 + $0x48] sm:$0xff]  ;;  %v5233_v54 = vpack.c.bf16 %v401_v41, %v397_v40  ;;  %v396_v55 = vld [vmem:[%s6141_s2 + $0x1d0] sm:$0xff]  ;;  %v405_v58 = vld [vmem:[%s6142_s3 + $0x18] sm:$0xff]  ;;  %v5248_v62 = vpack.c.bf16 %v406_v48, %v402_v45 }
  0x35   : > { %3587 = vmatpush1.bf16.msra.mxu0 %v5140_v7  ;;  %6225 = vst [vmem:[#allocation24_spill] sm:$0xff] %v5227_v51  ;;  %v415_v52 = vld [vmem:[%s6142_s3 + $0x68] sm:$0xff]  ;;  %v400_v57 = vld [vmem:[%s6141_s2 + $0x1f0] sm:$0xff]  ;;  %v409_v60 = vld [vmem:[%s6142_s3 + $0x38] sm:$0xff] }
  0x36   : > { %3589 = vmatprep.subr.bf16.mxu0 %v5143_v11  ;;  %3619 = vmatpush1.bf16.msra.mxu1 %v5191_v33  ;;  %6226 = vst [vmem:[#allocation25_spill] sm:$0xff] %v5233_v54  ;;  %v466_v61 = vld [vmem:[#allocation2] sm:$0xff]  ;;  %v5251_v0 = vpack.c.bf16 %v415_v52, %v411_v50  ;;  %v419_v5 = vld [vmem:[%s6142_s3 + $0x88] sm:$0xff]  ;;  %v5263_v6 = vpack.c.bf16 %v400_v57, %v396_v55  ;;  %v404_v14 = vld [vmem:[%s6142_s3 + $0x10] sm:$0xff] }
  0x37   : > { %3621 = vmatprep.subr.bf16.mxu1 %v5197_v36  ;;  %v410_v2 = vld [vmem:[%s6142_s3 + $0x40] sm:$0xff]  ;;  %v423_v12 = vld [vmem:[%s6142_s3 + $0xa8] sm:$0xff]  ;;  %v5269_v13 = vpack.c.bf16 %v409_v60, %v405_v58  ;;  %v408_v17 = vld [vmem:[%s6142_s3 + $0x30] sm:$0xff] }
  0x38   : > { %v414_v3 = vld [vmem:[%s6142_s3 + $0x60] sm:$0xff]  ;;  %6227 = vst [vmem:[#allocation26_spill] sm:$0xff] %v5263_v6  ;;  %v413_v20 = vld [vmem:[%s6142_s3 + $0x58] sm:$0xff]  ;;  %v5288_v24 = vpack.c.bf16 %v423_v12, %v419_v5  ;;  %v427_v32 = vld [vmem:[%s6142_s3 + $0xc8] sm:$0xff]  ;;  %v5300_v35 = vpack.c.bf16 %v408_v17, %v404_v14 }
  0x39   : > { %3591 = vmatpush1.bf16.msra.mxu0 %v5176_v25  ;;  %6228 = vst [vmem:[#allocation27_spill] sm:$0xff] %v5269_v13  ;;  %v417_v21 = vld [vmem:[%s6142_s3 + $0x78] sm:$0xff]  ;;  %v5284_v22 = vpack.c.bf16 %v414_v3, %v410_v2  ;;  %v418_v29 = vld [vmem:[%s6142_s3 + $0x80] sm:$0xff]  ;;  %v431_v37 = vld [vmem:[%s6142_s3 + $0xe8] sm:$0xff] }
  0x3a   : > { %3593 = vmatprep.subr.bf16.mxu0 %v5179_v28  ;;  %3623 = vmatpush1.bf16.msra.mxu1 %v5227_v51  ;;  %v422_v30 = vld [vmem:[%s6142_s3 + $0xa0] sm:$0xff]  ;;  %v5306_v39 = vpack.c.bf16 %v417_v21, %v413_v20  ;;  %v412_v40 = vld [vmem:[%s6142_s3 + $0x50] sm:$0xff]  ;;  %v421_v45 = vld [vmem:[%s6142_s3 + $0x98] sm:$0xff]  ;;  %v5324_v52 = vpack.c.bf16 %v431_v37, %v427_v32 }
  0x3b   : > { %3625 = vmatprep.subr.bf16.mxu1 %v5233_v54  ;;  %v416_v41 = vld [vmem:[%s6142_s3 + $0x70] sm:$0xff]  ;;  %v425_v48 = vld [vmem:[%s6142_s3 + $0xb8] sm:$0xff]  ;;  %v5321_v50 = vpack.c.bf16 %v422_v30, %v418_v29  ;;  %v426_v55 = vld [vmem:[%s6142_s3 + $0xc0] sm:$0xff] }
  0x3c   : > { %v430_v57 = vld [vmem:[%s6142_s3 + $0xe0] sm:$0xff]  ;;  %v435_v58 = vld [vmem:[%s6142_s3 + $0x108] sm:$0xff]  ;;  %v5336_v60 = vpack.c.bf16 %v416_v41, %v412_v40  ;;  %v5342_v2 = vpack.c.bf16 %v425_v48, %v421_v45  ;;  %v420_v3 = vld [vmem:[%s6142_s3 + $0x90] sm:$0xff] }
  0x3d   : > { %3595 = vmatpush1.bf16.msra.mxu0 %v5212_v42  ;;  %v424_v5 = vld [vmem:[%s6142_s3 + $0xb0] sm:$0xff]  ;;  %v429_v12 = vld [vmem:[%s6142_s3 + $0xd8] sm:$0xff]  ;;  %v5358_v17 = vpack.c.bf16 %v430_v57, %v426_v55  ;;  %v434_v21 = vld [vmem:[%s6142_s3 + $0x100] sm:$0xff] }
  0x3e   : > { %3629 = vmatprep.subr.bf16.mxu0 %v5215_v44  ;;  %3627 = vmatpush1.bf16.msra.mxu1 %v5263_v6  ;;  %v433_v14 = vld [vmem:[%s6142_s3 + $0xf8] sm:$0xff]  ;;  %v438_v29 = vld [vmem:[%s6142_s3 + $0x120] sm:$0xff]  ;;  %v443_v30 = vld [vmem:[%s6142_s3 + $0x148] sm:$0xff]  ;;  %v5373_v32 = vpack.c.bf16 %v424_v5, %v420_v3 }
  0x3f   : > { %3661 = vmatprep.subr.bf16.mxu1 %v5269_v13  ;;  %v447_v37 = vld [vmem:[%s6142_s3 + $0x168] sm:$0xff]  ;;  %v5379_v40 = vpack.c.bf16 %v433_v14, %v429_v12  ;;  %v428_v41 = vld [vmem:[%s6142_s3 + $0xd0] sm:$0xff]  ;;  %v437_v48 = vld [vmem:[%s6142_s3 + $0x118] sm:$0xff]  ;;  %v5394_v57 = vpack.c.bf16 %v438_v29, %v434_v21 }
  0x40   : > { %539 = vmatmul.mubr.f32.vlgmr.msra.gmra.mrb[0].mxu0 %v466_v61  ;;  %v432_v45 = vld [vmem:[%s6142_s3 + $0xf0] sm:$0xff]  ;;  %v441_v55 = vld [vmem:[%s6142_s3 + $0x138] sm:$0xff]  ;;  %v446_v3 = vld [vmem:[%s6142_s3 + $0x160] sm:$0xff] }
  0x41   : > { %3631 = vmatpush1.bf16.msra.mxu0 %v5248_v62  ;;  %714 = vmatprep.mubr.f32.mxu0 %v6147_v8  ;;  %6230 = vst [vmem:[#allocation29_spill] sm:$0xff] %v5394_v57  ;;  %v451_v5 = vld [vmem:[%s6142_s3 + $0x188] sm:$0xff]  ;;  %v5409_v12 = vpack.c.bf16 %v432_v45, %v428_v41  ;;  %v5415_v21 = vpack.c.bf16 %v441_v55, %v437_v48  ;;  %v436_v29 = vld [vmem:[%s6142_s3 + $0x110] sm:$0xff]  ;;  %v449_v41 = vld [vmem:[%s6142_s3 + $0x178] sm:$0xff] }
  0x42   : > { %3633 = vmatprep.subr.bf16.mxu0 %v5251_v0  ;;  %610 = vmatmul.mubr.f32.vlgmr.msra.gmra.mrb[0].mxu1 %v466_v61  ;;  %v439_v61 = vld [vmem:[%s6142_s3 + $0x128] sm:$0xff]  ;;  %v450_v55 = vld [vmem:[%s6142_s3 + $0x180] sm:$0xff] }
  0x43   : > { %3663 = vmatpush1.bf16.msra.mxu1 %v5300_v35  ;;  %785 = vmatprep.mubr.f32.mxu1 %v6147_v8  ;;  %v5361_v20 = vpack.c.bf16 %v439_v61, %v435_v58  ;;  %v5397_v58 = vpack.c.bf16 %v447_v37, %v443_v30  ;;  %v442_v61 = vld [vmem:[%s6142_s3 + $0x140] sm:$0xff]  ;;  %6232 = vst [vmem:[#allocation31_spill] sm:$0xff] %v5409_v12  ;;  %v455_v14 = vld [vmem:[%s6142_s3 + $0x1a8] sm:$0xff]  ;;  %6233 = vst [vmem:[#allocation32_spill] sm:$0xff] %v5415_v21 }
  0x44   : > { %3665 = vmatprep.subr.bf16.mxu1 %v5306_v39  ;;  %v440_v30 = vld [vmem:[%s6142_s3 + $0x130] sm:$0xff]  ;;  %v445_v37 = vld [vmem:[%s6142_s3 + $0x158] sm:$0xff]  ;;  %v5430_v45 = vpack.c.bf16 %v446_v3, %v442_v61  ;;  %v5433_v48 = vpack.c.bf16 %v455_v14, %v451_v5  ;;  %v454_v8 = vld [vmem:[%s6142_s3 + $0x1a0] sm:$0xff] }
  0x45   : > { %3635 = vmatpush1.bf16.msra.mxu0 %v5284_v22  ;;  %6229 = vst [vmem:[#allocation28_spill] sm:$0xff] %v5361_v20  ;;  %6231 = vst [vmem:[#allocation30_spill] sm:$0xff] %v5397_v58  ;;  %v5445_v61 = vpack.c.bf16 %v440_v30, %v436_v29  ;;  %v463_v3 = vld [vmem:[%s6142_s3 + $0x1e8] sm:$0xff]  ;;  %v5451_v5 = vpack.c.bf16 %v449_v41, %v445_v37  ;;  %v444_v14 = vld [vmem:[%s6142_s3 + $0x150] sm:$0xff]  ;;  %v5466_v37 = vpack.c.bf16 %v454_v8, %v450_v55 }
  0x46   : > { %3637 = vmatprep.subr.bf16.mxu0 %v5288_v24  ;;  %6234 = vst [vmem:[#allocation33_spill] sm:$0xff] %v5433_v48  ;;  %v453_v29 = vld [vmem:[%s6142_s3 + $0x198] sm:$0xff]  ;;  %v456_v55 = vld [vmem:[%s6142_s3 + $0x1b0] sm:$0xff] }
  0x47   : > { %3667 = vmatpush1.bf16.msra.mxu1 %v5336_v60  ;;  %v457_v30 = vld [vmem:[%s6142_s3 + $0x1b8] sm:$0xff]  ;;  %6235 = vst [vmem:[#allocation34_spill] sm:$0xff] %v5466_v37 }
  0x48   : > { %3669 = vmatprep.subr.bf16.mxu1 %v5342_v2  ;;  %v5481_v8 = vpack.c.bf16 %v457_v30, %v453_v29 }
  0x49   : > { %3639 = vmatpush1.bf16.msra.mxu0 %v5321_v50 }
  0x4a   : > { %3641 = vmatprep.subr.bf16.mxu0 %v5324_v52 }
  0x4b   : > { %3671 = vmatpush1.bf16.msra.mxu1 %v5373_v32 }
  0x4c   : > { %3673 = vmatprep.subr.bf16.mxu1 %v5379_v40 }
  0x4d   : > { %3643 = vmatpush1.bf16.msra.mxu0 %v5358_v17 }
  0x4e   : > { %3645 = vmatprep.subr.bf16.mxu0 %v5361_v20  ;;  %v462_v20 = vld [vmem:[%s6142_s3 + $0x1e0] sm:$0xff] }
  0x4f   : > { %3675 = vmatpush1.bf16.msra.mxu1 %v5409_v12 }
  0x50   : > { %3677 = vmatprep.subr.bf16.mxu1 %v5415_v21  ;;  %v458_v21 = vld [vmem:[%s6142_s3 + $0x1c0] sm:$0xff] }
  0x51   : > { %3647 = vmatpush1.bf16.msra.mxu0 %v5394_v57  ;;  %v459_v57 = vld [vmem:[%s6142_s3 + $0x1c8] sm:$0xff] }
  0x52   : > { %3649 = vmatprep.subr.bf16.mxu0 %v5397_v58  ;;  %v448_v58 = vld [vmem:[%s6142_s3 + $0x170] sm:$0xff]  ;;  %v5469_v41 = vpack.c.bf16 %v463_v3, %v459_v57  ;;  %v461_v3 = vld [vmem:[%s6142_s3 + $0x1d8] sm:$0xff] }
  0x53   : > { %3679 = vmatpush1.bf16.msra.mxu1 %v5445_v61  ;;  %v5478_v12 = vpack.c.bf16 %v448_v58, %v444_v14  ;;  %v452_v57 = vld [vmem:[%s6142_s3 + $0x190] sm:$0xff]  ;;  %v465_v58 = vld [vmem:[%s6142_s3 + $0x1f8] sm:$0xff]  ;;  %v5496_v14 = vpack.c.bf16 %v462_v20, %v458_v21 }
  0x54   : > { %3681 = vmatprep.subr.bf16.mxu1 %v5451_v5  ;;  %v5500_v29 = vpack.c.bf16 %v456_v55, %v452_v57  ;;  %v5503_v30 = vpack.c.bf16 %v465_v58, %v461_v3  ;;  %v468_v20 = vld [vmem:[#allocation4] sm:$0xff]  ;;  %v6236_v57 = vmov 0.0  }
  0x55   : > { %3651 = vmatpush1.bf16.msra.mxu0 %v5430_v45 }
  0x56   : > { %3653 = vmatprep.subr.bf16.mxu0 %v5433_v48  ;;  %v460_v48 = vld [vmem:[%s6142_s3 + $0x1d0] sm:$0xff] }
  0x57   : > { %3683 = vmatpush1.bf16.msra.mxu1 %v5478_v12 }
  0x58   : > { %3685 = vmatprep.subr.bf16.mxu1 %v5481_v8 }
  0x59   : > { %3655 = vmatpush1.bf16.msra.mxu0 %v5466_v37  ;;  %v464_v37 = vld [vmem:[%s6142_s3 + $0x1f0] sm:$0xff] }
  0x5a   : > { %3657 = vmatprep.subr.bf16.mxu0 %v5469_v41  ;;  %v5513_v21 = vpack.c.bf16 %v464_v37, %v460_v48  ;;  %v470_v48 = vld [vmem:[%s4919_s10] sm:$0xff]  ;;  %v471_v37 = vld [vmem:[%s4919_s10 + $0x8] sm:$0xff] }
  0x5b   : > { %3687 = vmatpush1.bf16.msra.mxu1 %v5500_v29 }
  0x5c   : > { %3689 = vmatprep.subr.bf16.mxu1 %v5503_v30 }
  0x5d   : > { %3659 = vmatpush1.bf16.msra.mxu0 %v5496_v14 }
  0x5e   : > { %3693 = vmatprep.subr.bf16.mxu0 %v4946_v4 }
  0x5f   : > { %3691 = vmatpush1.bf16.msra.mxu1 %v5513_v21 }
  0x60   : > { %715 = vmatmul.mubr.f32.vlgmr.msra.gmra.mrb[2].mxu0 %v468_v20  ;;  %3725 = vmatprep.subr.bf16.mxu1 %v5000_v23 }
  0x61   : > { %3695 = vmatpush1.bf16.msra.mxu0 %v4959_v9  ;;  %891 = vmatprep.mubr.f32.mxu0 %v6236_v57 }
  0x62   : > { %3697 = vmatprep.subr.bf16.mxu0 %v4961_v10  ;;  %786 = vmatmul.mubr.f32.vlgmr.msra.gmra.mrb[2].mxu1 %v468_v20 }
  0x63   : > { %3727 = vmatpush1.bf16.msra.mxu1 %v5008_v26  ;;  %962 = vmatprep.mubr.f32.mxu1 %v6236_v57 }
  0x64   : > { %3729 = vmatprep.subr.bf16.mxu1 %v5033_v34 }
  0x65   : > { %3699 = vmatpush1.bf16.msra.mxu0 %v4977_v15 }
  0x66   : > { %3701 = vmatprep.subr.bf16.mxu0 %v4986_v18 }
  0x67   : > { %3731 = vmatpush1.bf16.msra.mxu1 %v5044_v38 }
  0x68   : > { %3733 = vmatprep.subr.bf16.mxu1 %v5068_v46 }
  0x69   : > { %3703 = vmatpush1.bf16.msra.mxu0 %v5011_v27 }
  0x6a   : > { %3705 = vmatprep.subr.bf16.mxu0 %v5024_v31 }
  0x6b   : > { %3735 = vmatpush1.bf16.msra.mxu1 %v5077_v49 }
  0x6c   : > { %3737 = vmatprep.subr.bf16.mxu1 %v5089_v53 }
  0x6d   : > { %3707 = vmatpush1.bf16.msra.mxu0 %v5060_v43 }
  0x6e   : > { %3709 = vmatprep.subr.bf16.mxu0 %v5071_v47 }
  0x6f   : > { %3739 = vmatpush1.bf16.msra.mxu1 %v5119_v63 }
  0x70   : > { %3741 = vmatprep.subr.bf16.mxu1 %v5125_v1 }
  0x71   : > { %3711 = vmatpush1.bf16.msra.mxu0 %v5098_v56 }
  0x72   : > { %3713 = vmatprep.subr.bf16.mxu0 %v5107_v59 }
  0x73   : > { %3743 = vmatpush1.bf16.msra.mxu1 %v5155_v16 }
  0x74   : > { %3745 = vmatprep.subr.bf16.mxu1 %v5161_v19 }
  0x75   : > { %3715 = vmatpush1.bf16.msra.mxu0 %v5140_v7 }
  0x76   : > { %3717 = vmatprep.subr.bf16.mxu0 %v5143_v11 }
  0x77   : > { %3747 = vmatpush1.bf16.msra.mxu1 %v5191_v33 }
  0x78   : > { %3749 = vmatprep.subr.bf16.mxu1 %v5197_v36 }
  0x79   : > { %3719 = vmatpush1.bf16.msra.mxu0 %v5176_v25 }
  0x7a   : > { %3721 = vmatprep.subr.bf16.mxu0 %v5179_v28 }
  0x7b   : > { %3751 = vmatpush1.bf16.msra.mxu1 %v5227_v51 }
  0x7c   : > { %3753 = vmatprep.subr.bf16.mxu1 %v5233_v54  ;;  %v472_v54 = vld [vmem:[%s4919_s10 + $0x10] sm:$0xff] }
  0x7d   : > { %3723 = vmatpush1.bf16.msra.mxu0 %v5212_v42  ;;  %v473_v42 = vld [vmem:[%s4919_s10 + $0x18] sm:$0xff] }
  0x7e   : > { %3757 = vmatprep.subr.bf16.mxu0 %v5215_v44 }
  0x7f   : > { %3755 = vmatpush1.bf16.msra.mxu1 %v5263_v6 }
  0x80   : > { %3789 = vmatprep.subr.bf16.mxu1 %v5269_v13 }
 0x113   : > { %v540_v55 = vpop.f32.mrb[0].mxu0 }
 0x114   : > { %v616_v3 = vadd.f32 %v540_v55, %v470_v48  ;;  %v542_v58 = vpop.f32.mrb[1].mxu0 }
 0x115   : > { %v617_v20 = vadd.f32 %v542_v58, %v471_v37  ;;  %v611_v51 = vpop.f32.mrb[0].mxu1 }
 0x116   : > { %v3441_v28 = vmul.f32 -1.442695, %v616_v3  ;;  %v613_v44 = vpop.f32.mrb[1].mxu1  ;;  %v618_v6 = vadd.f32 %v611_v51, %v472_v54  ;;  %v3444_v51 = vld [vmem:[%s4924_s14 + $0xe0] sm:$0xff]  ;;  %v3445_v54 = vld [vmem:[%s4924_s14 + $0xe8] sm:$0xff] }
 0x117   : > { %v3442_v25 = vmul.f32 -1.442695, %v617_v20  ;;  %v619_v36 = vadd.f32 %v613_v44, %v473_v42 }
 0x118   : > { %4598 = vpow2.f32 %v3441_v28  ;;  %v467_v28 = vld [vmem:[#allocation3] sm:$0xff] }
 0x119   : > { %4600 = vpow2.f32 %v3442_v25  ;;  %v3443_v11 = vmul.f32 -1.442695, %v619_v36 }
 0x11b   : > { %4602 = vpow2.f32 %v3443_v11 }
 0x11c   : > { %4604 = vtanh.f32 %v618_v6 }
 0x122   : > { %v4599_v33 = vpop.eup %4598 }
 0x123   : > { %v4601_v13 = vpop.eup %4600  ;;  %v623_v7 = vadd.f32 1.0, %v4599_v33 }
 0x124   : > { %v629_v48 = vadd.f32 1.0, %v4601_v13 }
 0x125   : > { %4606 = vrcp.f32 %v623_v7  ;;  %v4603_v37 = vpop.eup %4602 }
 0x126   : > { %4608 = vrcp.f32 %v629_v48  ;;  %v4605_v55 = vpop.eup %4604  ;;  %v636_v25 = vadd.f32 1.0, %v4603_v37  ;;  %v3447_v48 = vld [vmem:[%s4924_s14 + $0xf8] sm:$0xff] }
 0x128   : > { %4610 = vrcp.f32 %v636_v25 }
 0x12f   : > { %v4607_v3 = vpop.eup %4606 }
 0x130   : > { %v4609_v42 = vpop.eup %4608  ;;  %v640_v44 = vmul.f32 %v4607_v3, %v4605_v55  ;;  %v3446_v3 = vld [vmem:[%s4924_s14 + $0xf0] sm:$0xff] }
 0x131   : > { %v639_v36 = vmul.f32 %v4609_v42, %v467_v28 }
 0x132   : > { %v4611_v42 = vpop.eup %4610 }
 0x133   : > { %v5559_v11 = vadd.f32 %v640_v44, %v639_v36  ;;  %v716_v33 = vpop.f32.mrb[2].mxu0 }
 0x134   : > { %v792_v6 = vadd.f32 %v3444_v51, %v716_v33  ;;  %v718_v13 = vpop.f32.mrb[3].mxu0 }
 0x135   : > { %4612 = vtanh.f32 %v5559_v11  ;;  %v793_v7 = vadd.f32 %v3445_v54, %v718_v13  ;;  %v787_v37 = vpop.f32.mrb[2].mxu1 }
 0x136   : > { %v3448_v58 = vmul.f32 -1.442695, %v792_v6  ;;  %v789_v55 = vpop.f32.mrb[3].mxu1  ;;  %v794_v25 = vadd.f32 %v3446_v3, %v787_v37  ;;  %v6239_v3 = vld [vmem:[#allocation32_spill] sm:$0xff] }
 0x137   : > { %v3449_v20 = vmul.f32 -1.442695, %v793_v7  ;;  %v795_v28 = vadd.f32 %v3447_v48, %v789_v55  ;;  %v469_v7 = vld [vmem:[#allocation5] sm:$0xff]  ;;  %v6237_v48 = vld [vmem:[#allocation31_spill] sm:$0xff] }
 0x138   : > { %4614 = vpow2.f32 %v3448_v58 }
 0x139   : > { %4616 = vpow2.f32 %v3449_v20  ;;  %v3450_v44 = vmul.f32 -1.442695, %v795_v28  ;;  %v6238_v28 = vld [vmem:[#allocation28_spill] sm:$0xff] }
 0x13b   : > { %4618 = vpow2.f32 %v3450_v44 }
 0x13c   : > { %4620 = vtanh.f32 %v794_v25  ;;  %v6241_v25 = vld [vmem:[#allocation30_spill] sm:$0xff] }
 0x13f   : > { %v4613_v36 = vpop.eup %4612 }
 0x140   : > { %v643_v19 = vmul.f32 %v4613_v36, %v4611_v42  ;;  %v6240_v36 = vld [vmem:[#allocation29_spill] sm:$0xff] }
 0x142   : > { %v4615_v51 = vpop.eup %4614  ;;  %644 = vst [vmem:[%s4929_s17] sm:$0xff] %v643_v19  ;;  %892 = vmatmul.mubr.f32.vlgmr.msra.gmra.mrb[4].mxu0 %v643_v19  ;;  %963 = vmatmul.mubr.f32.vlgmr.msra.gmra.mrb[4].mxu1 %v643_v19 }
 0x143   : > { %v4617_v54 = vpop.eup %4616  ;;  %v799_v33 = vadd.f32 1.0, %v4615_v51  ;;  %3759 = vmatpush1.bf16.msra.mxu0 %v5248_v62  ;;  %3791 = vmatpush1.bf16.msra.mxu1 %v5300_v35  ;;  %v6242_v51 = vld [vmem:[#allocation33_spill] sm:$0xff] }
 0x144   : > { %v805_v6 = vadd.f32 1.0, %v4617_v54  ;;  %3761 = vmatprep.subr.bf16.mxu0 %v5251_v0  ;;  %3793 = vmatprep.subr.bf16.mxu1 %v5306_v39  ;;  %v6243_v54 = vld [vmem:[#allocation34_spill] sm:$0xff] }
 0x145   : > { %4622 = vrcp.f32 %v799_v33  ;;  %1068 = vmatprep.mubr.f32.mxu0 %v6236_v57  ;;  %1139 = vmatprep.mubr.f32.mxu1 %v6236_v57  ;;  %v4619_v19 = vpop.eup %4618 }
 0x146   : > { %4624 = vrcp.f32 %v805_v6  ;;  %v4621_v13 = vpop.eup %4620  ;;  %v812_v20 = vadd.f32 1.0, %v4619_v19 }
 0x147   : > { %3763 = vmatpush1.bf16.msra.mxu0 %v5284_v22  ;;  %3795 = vmatpush1.bf16.msra.mxu1 %v5336_v60 }
 0x148   : > { %3765 = vmatprep.subr.bf16.mxu0 %v5288_v24  ;;  %3797 = vmatprep.subr.bf16.mxu1 %v5342_v2  ;;  %4626 = vrcp.f32 %v812_v20  ;;  %v6247_v20 = vld [vmem:[#allocation15_spill] sm:$0xff] }
 0x14b   : > { %3767 = vmatpush1.bf16.msra.mxu0 %v5321_v50  ;;  %3799 = vmatpush1.bf16.msra.mxu1 %v5373_v32 }
 0x14c   : > { %3769 = vmatprep.subr.bf16.mxu0 %v5324_v52  ;;  %3801 = vmatprep.subr.bf16.mxu1 %v5379_v40 }
 0x14f   : > { %v4623_v58 = vpop.eup %4622  ;;  %3771 = vmatpush1.bf16.msra.mxu0 %v5358_v17  ;;  %3803 = vmatpush1.bf16.msra.mxu1 %v6237_v48 }
 0x150   : > { %v4625_v37 = vpop.eup %4624  ;;  %v816_v55 = vmul.f32 %v4623_v58, %v4621_v13  ;;  %3773 = vmatprep.subr.bf16.mxu0 %v6238_v28  ;;  %3805 = vmatprep.subr.bf16.mxu1 %v6239_v3  ;;  %v6244_v13 = vld [vmem:[#allocation17_spill] sm:$0xff]  ;;  %v6246_v58 = vld [vmem:[#allocation20_spill] sm:$0xff] }
 0x151   : > { %v815_v42 = vmul.f32 %v4625_v37, %v469_v7  ;;  %v6245_v7 = vld [vmem:[#allocation14_spill] sm:$0xff]  ;;  %v6248_v37 = vld [vmem:[#allocation21_spill] sm:$0xff] }
 0x152   : > { %v4627_v33 = vpop.eup %4626 }
 0x153   : > { %v5583_v44 = vadd.f32 %v816_v55, %v815_v42  ;;  %3775 = vmatpush1.bf16.msra.mxu0 %v6240_v36  ;;  %3807 = vmatpush1.bf16.msra.mxu1 %v5445_v61  ;;  %v6249_v55 = vld [vmem:[#allocation18_spill] sm:$0xff]  ;;  %v6250_v42 = vld [vmem:[#allocation24_spill] sm:$0xff] }
 0x154   : > { %3777 = vmatprep.subr.bf16.mxu0 %v6241_v25  ;;  %3809 = vmatprep.subr.bf16.mxu1 %v5451_v5 }
 0x155   : > { %4628 = vtanh.f32 %v5583_v44 }
 0x157   : > { %3779 = vmatpush1.bf16.msra.mxu0 %v5430_v45  ;;  %3811 = vmatpush1.bf16.msra.mxu1 %v5478_v12 }
 0x158   : > { %3781 = vmatprep.subr.bf16.mxu0 %v6242_v51  ;;  %3813 = vmatprep.subr.bf16.mxu1 %v5481_v8 }
 0x15b   : > { %3783 = vmatpush1.bf16.msra.mxu0 %v6243_v54  ;;  %3815 = vmatpush1.bf16.msra.mxu1 %v5500_v29 }
 0x15c   : > { %3785 = vmatprep.subr.bf16.mxu0 %v5469_v41  ;;  %3817 = vmatprep.subr.bf16.mxu1 %v5503_v30 }
 0x15f   : > { %v4629_v6 = vpop.eup %4628  ;;  %3787 = vmatpush1.bf16.msra.mxu0 %v5496_v14  ;;  %3819 = vmatpush1.bf16.msra.mxu1 %v5513_v21 }
 0x160   : > { %v819_v19 = vmul.f32 %v4629_v6, %v4627_v33  ;;  %3821 = vmatprep.subr.bf16.mxu0 %v4946_v4  ;;  %3853 = vmatprep.subr.bf16.mxu1 %v5000_v23  ;;  %v6251_v33 = vld [vmem:[#allocation19_spill] sm:$0xff]  ;;  %v6252_v6 = vld [vmem:[#allocation25_spill] sm:$0xff] }
 0x162   : > { %3451 = vst [vmem:[%s4934_s21 + $0x38] sm:$0xff] %v819_v19  ;;  %1069 = vmatmul.mubr.f32.vlgmr.msra.gmra.mrb[6].mxu0 %v819_v19  ;;  %1140 = vmatmul.mubr.f32.vlgmr.msra.gmra.mrb[6].mxu1 %v819_v19  ;;  %v6253_v19 = vld [vmem:[#allocation22_spill] sm:$0xff] }
 0x163   : > { %3823 = vmatpush1.bf16.msra.mxu0 %v4959_v9  ;;  %3855 = vmatpush1.bf16.msra.mxu1 %v5008_v26 }
 0x164   : > { %3825 = vmatprep.subr.bf16.mxu0 %v4961_v10  ;;  %3857 = vmatprep.subr.bf16.mxu1 %v5033_v34 }
 0x165   : > { %1245 = vmatprep.mubr.f32.mxu0 %v6236_v57  ;;  %1316 = vmatprep.mubr.f32.mxu1 %v6236_v57 }
 0x167   : > { %3827 = vmatpush1.bf16.msra.mxu0 %v4977_v15  ;;  %3859 = vmatpush1.bf16.msra.mxu1 %v5044_v38 }
 0x168   : > { %3829 = vmatprep.subr.bf16.mxu0 %v4986_v18  ;;  %3861 = vmatprep.subr.bf16.mxu1 %v5068_v46 }
 0x16b   : > { %3831 = vmatpush1.bf16.msra.mxu0 %v5011_v27  ;;  %3863 = vmatpush1.bf16.msra.mxu1 %v5077_v49 }
 0x16c   : > { %3833 = vmatprep.subr.bf16.mxu0 %v5024_v31  ;;  %3865 = vmatprep.subr.bf16.mxu1 %v5089_v53 }
 0x16f   : > { %3835 = vmatpush1.bf16.msra.mxu0 %v5060_v43  ;;  %3867 = vmatpush1.bf16.msra.mxu1 %v5119_v63 }
 0x170   : > { %3837 = vmatprep.subr.bf16.mxu0 %v5071_v47  ;;  %3869 = vmatprep.subr.bf16.mxu1 %v5125_v1  ;;  %v3455_v47 = vld [vmem:[%s4919_s10 + $0x38] sm:$0xff] }
 0x173   : > { %3839 = vmatpush1.bf16.msra.mxu0 %v5098_v56  ;;  %3871 = vmatpush1.bf16.msra.mxu1 %v5155_v16 }
 0x174   : > { %3841 = vmatprep.subr.bf16.mxu0 %v5107_v59  ;;  %3873 = vmatprep.subr.bf16.mxu1 %v6244_v13  ;;  %v6254_v13 = vld [vmem:[#allocation26_spill] sm:$0xff] }
 0x177   : > { %3843 = vmatpush1.bf16.msra.mxu0 %v6245_v7  ;;  %3875 = vmatpush1.bf16.msra.mxu1 %v6246_v58  ;;  %v6255_v7 = vld [vmem:[#allocation23_spill] sm:$0xff] }
 0x178   : > { %3845 = vmatprep.subr.bf16.mxu0 %v6247_v20  ;;  %3877 = vmatprep.subr.bf16.mxu1 %v6248_v37  ;;  %v6256_v58 = vld [vmem:[#allocation27_spill] sm:$0xff]  ;;  %v3452_v20 = vld [vmem:[%s4919_s10 + $0x20] sm:$0xff] }
 0x179   : > { %v3453_v37 = vld [vmem:[%s4919_s10 + $0x28] sm:$0xff] }
 0x17b   : > { %3847 = vmatpush1.bf16.msra.mxu0 %v6249_v55  ;;  %3879 = vmatpush1.bf16.msra.mxu1 %v6250_v42 }
 0x17c   : > { %3849 = vmatprep.subr.bf16.mxu0 %v6251_v33  ;;  %3881 = vmatprep.subr.bf16.mxu1 %v6252_v6 }
 0x17f   : > { %3851 = vmatpush1.bf16.msra.mxu0 %v6253_v19  ;;  %3883 = vmatpush1.bf16.msra.mxu1 %v6254_v13  ;;  %v3454_v13 = vld [vmem:[%s4919_s10 + $0x30] sm:$0xff] }
 0x180   : > { %3885 = vmatprep.subr.bf16.mxu0 %v6255_v7  ;;  %3917 = vmatprep.subr.bf16.mxu1 %v6256_v58 }
 0x215   : > { %v893_v59 = vpop.f32.mrb[4].mxu0  ;;  %v964_v55 = vpop.f32.mrb[4].mxu1 }
 0x216   : > { %v969_v16 = vadd.f32 %v3452_v20, %v893_v59  ;;  %v895_v42 = vpop.f32.mrb[5].mxu0  ;;  %v966_v56 = vpop.f32.mrb[5].mxu1  ;;  %v971_v7 = vadd.f32 %v3454_v13, %v964_v55  ;;  %v3461_v13 = vld [vmem:[%s4924_s14 + $0xc8] sm:$0xff] }
 0x217   : > { %v970_v33 = vadd.f32 %v3453_v37, %v895_v42  ;;  %v972_v19 = vadd.f32 %v3455_v47, %v966_v56  ;;  %v3460_v56 = vld [vmem:[%s4924_s14 + $0xc0] sm:$0xff] }
 0x218   : > { %v3456_v1 = vmul.f32 -1.442695, %v969_v16 }
 0x219   : > { %v3457_v6 = vmul.f32 -1.442695, %v970_v33  ;;  %v3458_v63 = vmul.f32 -1.442695, %v972_v19 }
 0x21a   : > { %4630 = vpow2.f32 %v3456_v1 }
 0x21b   : > { %4632 = vpow2.f32 %v3457_v6 }
 0x21c   : > { %4634 = vpow2.f32 %v3458_v63 }
 0x21d   : > { %4636 = vtanh.f32 %v971_v7 }
 0x224   : > { %v4631_v43 = vpop.eup %4630 }
 0x225   : > { %v4633_v58 = vpop.eup %4632  ;;  %v976_v53 = vadd.f32 1.0, %v4631_v43 }
 0x226   : > { %v982_v59 = vadd.f32 1.0, %v4633_v58  ;;  %v4635_v20 = vpop.eup %4634 }
 0x227   : > { %4638 = vrcp.f32 %v976_v53  ;;  %v4637_v16 = vpop.eup %4636  ;;  %v989_v33 = vadd.f32 1.0, %v4635_v20  ;;  %v3463_v20 = vld [vmem:[%s4924_s14 + $0xd8] sm:$0xff] }
 0x228   : > { %4640 = vrcp.f32 %v982_v59 }
 0x229   : > { %4642 = vrcp.f32 %v989_v33 }
 0x231   : > { %v4639_v37 = vpop.eup %4638 }
 0x232   : > { %v4641_v1 = vpop.eup %4640  ;;  %v993_v42 = vmul.f32 %v4639_v37, %v4637_v16  ;;  %v3462_v16 = vld [vmem:[%s4924_s14 + $0xd0] sm:$0xff] }
 0x233   : > { %v992_v47 = vmul.f32 %v4641_v1, %v5559_v11  ;;  %v4643_v37 = vpop.eup %4642 }
 0x235   : > { %v5644_v55 = vadd.f32 %v993_v42, %v992_v47  ;;  %v1070_v43 = vpop.f32.mrb[6].mxu0  ;;  %v1141_v63 = vpop.f32.mrb[6].mxu1 }
 0x236   : > { %v1146_v7 = vadd.f32 %v3460_v56, %v1070_v43  ;;  %v1072_v53 = vpop.f32.mrb[7].mxu0  ;;  %v1143_v58 = vpop.f32.mrb[7].mxu1  ;;  %v1148_v47 = vadd.f32 %v3462_v16, %v1141_v63  ;;  %v6257_v16 = vld [vmem:[#allocation6_spill] sm:$0xff] }
 0x237   : > { %v1147_v6 = vadd.f32 %v3461_v13, %v1072_v53  ;;  %4644 = vtanh.f32 %v5644_v55  ;;  %v1149_v11 = vadd.f32 %v3463_v20, %v1143_v58 }
 0x238   : > { %v3464_v19 = vmul.f32 -1.442695, %v1146_v7 }
 0x239   : > { %v3465_v59 = vmul.f32 -1.442695, %v1147_v6  ;;  %v3466_v42 = vmul.f32 -1.442695, %v1149_v11 }
 0x23a   : > { %4646 = vpow2.f32 %v3464_v19 }
 0x23b   : > { %4648 = vpow2.f32 %v3465_v59 }
 0x23c   : > { %4650 = vpow2.f32 %v3466_v42  ;;  %v6260_v42 = vld [vmem:[#allocation12_spill] sm:$0xff] }
 0x23d   : > { %4652 = vtanh.f32 %v1148_v47  ;;  %v6261_v47 = vld [vmem:[#allocation8_spill] sm:$0xff] }
 0x241   : > { %v4645_v1 = vpop.eup %4644 }
 0x242   : > { %v996_v31 = vmul.f32 %v4645_v1, %v4643_v37  ;;  %v6258_v37 = vld [vmem:[#allocation9_spill] sm:$0xff]  ;;  %v6259_v1 = vld [vmem:[#allocation7_spill] sm:$0xff] }
 0x244   : > { %v4647_v33 = vpop.eup %4646  ;;  %3459 = vst [vmem:[%s4929_s17 + $0x8] sm:$0xff] %v996_v31  ;;  %1246 = vmatmul.mubr.f32.vlgmr.msra.gmra.mrb[8].mxu0 %v996_v31  ;;  %1317 = vmatmul.mubr.f32.vlgmr.msra.gmra.mrb[8].mxu1 %v996_v31 }
 0x245   : > { %v4649_v56 = vpop.eup %4648  ;;  %v1153_v13 = vadd.f32 1.0, %v4647_v33  ;;  %3887 = vmatpush1.bf16.msra.mxu0 %v5248_v62  ;;  %3919 = vmatpush1.bf16.msra.mxu1 %v5300_v35  ;;  %v6262_v33 = vld [vmem:[#allocation13_spill] sm:$0xff] }
 0x246   : > { %v1159_v43 = vadd.f32 1.0, %v4649_v56  ;;  %3889 = vmatprep.subr.bf16.mxu0 %v5251_v0  ;;  %3921 = vmatprep.subr.bf16.mxu1 %v5306_v39  ;;  %v4651_v31 = vpop.eup %4650  ;;  %v6263_v56 = vld [vmem:[#allocation10_spill] sm:$0xff] }
 0x247   : > { %4654 = vrcp.f32 %v1153_v13  ;;  %1422 = vmatprep.mubr.f32.mxu0 %v6236_v57  ;;  %1493 = vmatprep.mubr.f32.mxu1 %v6236_v57  ;;  %v4653_v63 = vpop.eup %4652  ;;  %v1166_v6 = vadd.f32 1.0, %v4651_v31  ;;  %v6264_v13 = vld [vmem:[#allocation16_spill] sm:$0xff]  ;;  %v6266_v31 = vld [vmem:[#allocation17_spill] sm:$0xff] }
 0x248   : > { %4656 = vrcp.f32 %v1159_v43  ;;  %v6265_v43 = vld [vmem:[#allocation11_spill] sm:$0xff] }
 0x249   : > { %3891 = vmatpush1.bf16.msra.mxu0 %v5284_v22  ;;  %3923 = vmatpush1.bf16.msra.mxu1 %v5336_v60  ;;  %4658 = vrcp.f32 %v1166_v6  ;;  %v6271_v6 = vld [vmem:[#allocation18_spill] sm:$0xff] }
 0x24a   : > { %3893 = vmatprep.subr.bf16.mxu0 %v5288_v24  ;;  %3925 = vmatprep.subr.bf16.mxu1 %v5342_v2 }
 0x24d   : > { %3895 = vmatpush1.bf16.msra.mxu0 %v5321_v50  ;;  %3927 = vmatpush1.bf16.msra.mxu1 %v5373_v32 }
 0x24e   : > { %3897 = vmatprep.subr.bf16.mxu0 %v5324_v52  ;;  %3929 = vmatprep.subr.bf16.mxu1 %v5379_v40 }
 0x251   : > { %v4655_v7 = vpop.eup %4654  ;;  %3899 = vmatpush1.bf16.msra.mxu0 %v5358_v17  ;;  %3931 = vmatpush1.bf16.msra.mxu1 %v6237_v48 }
 0x252   : > { %v4657_v53 = vpop.eup %4656  ;;  %v1170_v58 = vmul.f32 %v4655_v7, %v4653_v63  ;;  %3901 = vmatprep.subr.bf16.mxu0 %v6238_v28  ;;  %3933 = vmatprep.subr.bf16.mxu1 %v6239_v3  ;;  %v6267_v63 = vld [vmem:[#allocation14_spill] sm:$0xff]  ;;  %v6268_v7 = vld [vmem:[#allocation20_spill] sm:$0xff] }
 0x253   : > { %v1169_v19 = vmul.f32 %v4657_v53, %v5583_v44  ;;  %v4659_v44 = vpop.eup %4658  ;;  %v6269_v53 = vld [vmem:[#allocation15_spill] sm:$0xff] }
 0x255   : > { %v5669_v59 = vadd.f32 %v1170_v58, %v1169_v19  ;;  %3903 = vmatpush1.bf16.msra.mxu0 %v6240_v36  ;;  %3935 = vmatpush1.bf16.msra.mxu1 %v5445_v61  ;;  %v6270_v58 = vld [vmem:[#allocation21_spill] sm:$0xff]  ;;  %v6272_v19 = vld [vmem:[#allocation24_spill] sm:$0xff] }
 0x256   : > { %3905 = vmatprep.subr.bf16.mxu0 %v6241_v25  ;;  %3937 = vmatprep.subr.bf16.mxu1 %v5451_v5 }
 0x257   : > { %4660 = vtanh.f32 %v5669_v59 }
 0x259   : > { %3907 = vmatpush1.bf16.msra.mxu0 %v5430_v45  ;;  %3939 = vmatpush1.bf16.msra.mxu1 %v5478_v12 }
 0x25a   : > { %3909 = vmatprep.subr.bf16.mxu0 %v6242_v51  ;;  %3941 = vmatprep.subr.bf16.mxu1 %v5481_v8 }
 0x25d   : > { %3911 = vmatpush1.bf16.msra.mxu0 %v6243_v54  ;;  %3943 = vmatpush1.bf16.msra.mxu1 %v5500_v29 }
 0x25e   : > { %3913 = vmatprep.subr.bf16.mxu0 %v5469_v41  ;;  %3945 = vmatprep.subr.bf16.mxu1 %v5503_v30 }
 0x261   : > { %v4661_v20 = vpop.eup %4660  ;;  %3915 = vmatpush1.bf16.msra.mxu0 %v5496_v14  ;;  %3947 = vmatpush1.bf16.msra.mxu1 %v5513_v21 }
 0x262   : > { %v1173_v11 = vmul.f32 %v4661_v20, %v4659_v44  ;;  %3949 = vmatprep.subr.bf16.mxu0 %v4946_v4  ;;  %3981 = vmatprep.subr.bf16.mxu1 %v5000_v23  ;;  %v6273_v44 = vld [vmem:[#allocation19_spill] sm:$0xff]  ;;  %v6274_v20 = vld [vmem:[#allocation25_spill] sm:$0xff] }
 0x264   : > { %3467 = vst [vmem:[%s4934_s21 + $0x30] sm:$0xff] %v1173_v11  ;;  %1423 = vmatmul.mubr.f32.vlgmr.msra.gmra.mrb[10].mxu0 %v1173_v11  ;;  %1494 = vmatmul.mubr.f32.vlgmr.msra.gmra.mrb[10].mxu1 %v1173_v11  ;;  %v6275_v11 = vld [vmem:[#allocation22_spill] sm:$0xff] }
 0x265   : > { %3951 = vmatpush1.bf16.msra.mxu0 %v4959_v9  ;;  %3983 = vmatpush1.bf16.msra.mxu1 %v5008_v26 }
 0x266   : > { %3953 = vmatprep.subr.bf16.mxu0 %v4961_v10  ;;  %3985 = vmatprep.subr.bf16.mxu1 %v5033_v34 }
 0x267   : > { %1599 = vmatprep.mubr.f32.mxu0 %v6236_v57  ;;  %1670 = vmatprep.mubr.f32.mxu1 %v6236_v57 }
 0x269   : > { %3955 = vmatpush1.bf16.msra.mxu0 %v4977_v15  ;;  %3987 = vmatpush1.bf16.msra.mxu1 %v5044_v38 }
 0x26a   : > { %3957 = vmatprep.subr.bf16.mxu0 %v4986_v18  ;;  %3989 = vmatprep.subr.bf16.mxu1 %v5068_v46 }
 0x26d   : > { %3959 = vmatpush1.bf16.msra.mxu0 %v5011_v27  ;;  %3991 = vmatpush1.bf16.msra.mxu1 %v5077_v49 }
 0x26e   : > { %3961 = vmatprep.subr.bf16.mxu0 %v6257_v16  ;;  %3993 = vmatprep.subr.bf16.mxu1 %v6258_v37 }
 0x271   : > { %3963 = vmatpush1.bf16.msra.mxu0 %v6259_v1  ;;  %3995 = vmatpush1.bf16.msra.mxu1 %v6260_v42 }
 0x272   : > { %3965 = vmatprep.subr.bf16.mxu0 %v6261_v47  ;;  %3997 = vmatprep.subr.bf16.mxu1 %v6262_v33  ;;  %v3471_v47 = vld [vmem:[%s4919_s10 + $0x58] sm:$0xff] }
 0x275   : > { %3967 = vmatpush1.bf16.msra.mxu0 %v6263_v56  ;;  %3999 = vmatpush1.bf16.msra.mxu1 %v6264_v13 }
 0x276   : > { %3969 = vmatprep.subr.bf16.mxu0 %v6265_v43  ;;  %4001 = vmatprep.subr.bf16.mxu1 %v6266_v31  ;;  %v6276_v31 = vld [vmem:[#allocation26_spill] sm:$0xff] }
 0x279   : > { %3971 = vmatpush1.bf16.msra.mxu0 %v6267_v63  ;;  %4003 = vmatpush1.bf16.msra.mxu1 %v6268_v7  ;;  %v6277_v63 = vld [vmem:[#allocation23_spill] sm:$0xff] }
 0x27a   : > { %3973 = vmatprep.subr.bf16.mxu0 %v6269_v53  ;;  %4005 = vmatprep.subr.bf16.mxu1 %v6270_v58  ;;  %v6278_v7 = vld [vmem:[#allocation27_spill] sm:$0xff]  ;;  %v3468_v53 = vld [vmem:[%s4919_s10 + $0x40] sm:$0xff] }
 0x27b   : > { %v3469_v58 = vld [vmem:[%s4919_s10 + $0x48] sm:$0xff] }
 0x27d   : > { %3975 = vmatpush1.bf16.msra.mxu0 %v6271_v6  ;;  %4007 = vmatpush1.bf16.msra.mxu1 %v6272_v19 }
 0x27e   : > { %3977 = vmatprep.subr.bf16.mxu0 %v6273_v44  ;;  %4009 = vmatprep.subr.bf16.mxu1 %v6274_v20 }
 0x281   : > { %3979 = vmatpush1.bf16.msra.mxu0 %v6275_v11  ;;  %4011 = vmatpush1.bf16.msra.mxu1 %v6276_v31  ;;  %v3470_v31 = vld [vmem:[%s4919_s10 + $0x50] sm:$0xff] }
 0x282   : > { %4013 = vmatprep.subr.bf16.mxu0 %v6277_v63  ;;  %4045 = vmatprep.subr.bf16.mxu1 %v6278_v7 }
 0x317   : > { %v1247_v43 = vpop.f32.mrb[8].mxu0  ;;  %v1318_v6 = vpop.f32.mrb[8].mxu1 }
 0x318   : > { %v1323_v13 = vadd.f32 %v3468_v53, %v1247_v43  ;;  %v1249_v19 = vpop.f32.mrb[9].mxu0  ;;  %v1320_v56 = vpop.f32.mrb[9].mxu1  ;;  %v1325_v63 = vadd.f32 %v3470_v31, %v1318_v6  ;;  %v3477_v31 = vld [vmem:[%s4924_s14 + $0xa8] sm:$0xff] }
 0x319   : > { %v1324_v44 = vadd.f32 %v3469_v58, %v1249_v19  ;;  %v1326_v11 = vadd.f32 %v3471_v47, %v1320_v56  ;;  %v3476_v56 = vld [vmem:[%s4924_s14 + $0xa0] sm:$0xff] }
 0x31a   : > { %v3472_v33 = vmul.f32 -1.442695, %v1323_v13 }
 0x31b   : > { %v3473_v20 = vmul.f32 -1.442695, %v1324_v44  ;;  %v3474_v42 = vmul.f32 -1.442695, %v1326_v11 }
 0x31c   : > { %4662 = vpow2.f32 %v3472_v33 }
 0x31d   : > { %4664 = vpow2.f32 %v3473_v20 }
 0x31e   : > { %4666 = vpow2.f32 %v3474_v42 }
 0x31f   : > { %4668 = vtanh.f32 %v1325_v63 }
 0x326   : > { %v4663_v1 = vpop.eup %4662 }
 0x327   : > { %v4665_v7 = vpop.eup %4664  ;;  %v1330_v37 = vadd.f32 1.0, %v4663_v1 }
 0x328   : > { %v1336_v43 = vadd.f32 1.0, %v4665_v7  ;;  %v4667_v53 = vpop.eup %4666 }
 0x329   : > { %4670 = vrcp.f32 %v1330_v37  ;;  %v4669_v13 = vpop.eup %4668  ;;  %v1343_v44 = vadd.f32 1.0, %v4667_v53  ;;  %v3479_v53 = vld [vmem:[%s4924_s14 + $0xb8] sm:$0xff] }
 0x32a   : > { %4672 = vrcp.f32 %v1336_v43 }
 0x32b   : > { %4674 = vrcp.f32 %v1343_v44 }
 0x333   : > { %v4671_v58 = vpop.eup %4670 }
 0x334   : > { %v4673_v33 = vpop.eup %4672  ;;  %v1347_v19 = vmul.f32 %v4671_v58, %v4669_v13  ;;  %v3478_v13 = vld [vmem:[%s4924_s14 + $0xb0] sm:$0xff] }
 0x335   : > { %v1346_v47 = vmul.f32 %v4673_v33, %v5644_v55  ;;  %v4675_v58 = vpop.eup %4674 }
 0x337   : > { %v5730_v6 = vadd.f32 %v1347_v19, %v1346_v47  ;;  %v1424_v1 = vpop.f32.mrb[10].mxu0  ;;  %v1495_v42 = vpop.f32.mrb[10].mxu1 }
 0x338   : > { %v1500_v63 = vadd.f32 %v3476_v56, %v1424_v1  ;;  %v1426_v37 = vpop.f32.mrb[11].mxu0  ;;  %v1497_v7 = vpop.f32.mrb[11].mxu1  ;;  %v1502_v47 = vadd.f32 %v3478_v13, %v1495_v42  ;;  %v6279_v13 = vld [vmem:[#allocation6_spill] sm:$0xff] }
 0x339   : > { %v1501_v20 = vadd.f32 %v3477_v31, %v1426_v37  ;;  %4676 = vtanh.f32 %v5730_v6  ;;  %v1503_v55 = vadd.f32 %v3479_v53, %v1497_v7 }
 0x33a   : > { %v3480_v11 = vmul.f32 -1.442695, %v1500_v63 }
 0x33b   : > { %v3481_v43 = vmul.f32 -1.442695, %v1501_v20  ;;  %v3482_v19 = vmul.f32 -1.442695, %v1503_v55 }
 0x33c   : > { %4678 = vpow2.f32 %v3480_v11 }
 0x33d   : > { %4680 = vpow2.f32 %v3481_v43 }
 0x33e   : > { %4682 = vpow2.f32 %v3482_v19  ;;  %v6282_v19 = vld [vmem:[#allocation12_spill] sm:$0xff] }
 0x33f   : > { %4684 = vtanh.f32 %v1502_v47  ;;  %v6283_v47 = vld [vmem:[#allocation8_spill] sm:$0xff] }
 0x343   : > { %v4677_v33 = vpop.eup %4676 }
 0x344   : > { %v1350_v16 = vmul.f32 %v4677_v33, %v4675_v58  ;;  %v6280_v58 = vld [vmem:[#allocation9_spill] sm:$0xff]  ;;  %v6281_v33 = vld [vmem:[#allocation7_spill] sm:$0xff] }
 0x346   : > { %v4679_v44 = vpop.eup %4678  ;;  %3475 = vst [vmem:[%s4929_s17 + $0x10] sm:$0xff] %v1350_v16  ;;  %1600 = vmatmul.mubr.f32.vlgmr.msra.gmra.mrb[12].mxu0 %v1350_v16  ;;  %1671 = vmatmul.mubr.f32.vlgmr.msra.gmra.mrb[12].mxu1 %v1350_v16 }
 0x347   : > { %v4681_v56 = vpop.eup %4680  ;;  %v1507_v31 = vadd.f32 1.0, %v4679_v44  ;;  %4015 = vmatpush1.bf16.msra.mxu0 %v5248_v62  ;;  %4047 = vmatpush1.bf16.msra.mxu1 %v5300_v35  ;;  %v6284_v44 = vld [vmem:[#allocation13_spill] sm:$0xff] }
 0x348   : > { %v1513_v1 = vadd.f32 1.0, %v4681_v56  ;;  %4017 = vmatprep.subr.bf16.mxu0 %v5251_v0  ;;  %4049 = vmatprep.subr.bf16.mxu1 %v5306_v39  ;;  %v4683_v16 = vpop.eup %4682  ;;  %v6285_v56 = vld [vmem:[#allocation10_spill] sm:$0xff] }
 0x349   : > { %4686 = vrcp.f32 %v1507_v31  ;;  %1776 = vmatprep.mubr.f32.mxu0 %v6236_v57  ;;  %1847 = vmatprep.mubr.f32.mxu1 %v6236_v57  ;;  %v4685_v42 = vpop.eup %4684  ;;  %v1520_v20 = vadd.f32 1.0, %v4683_v16  ;;  %v6286_v31 = vld [vmem:[#allocation16_spill] sm:$0xff]  ;;  %v6288_v16 = vld [vmem:[#allocation17_spill] sm:$0xff] }
 0x34a   : > { %4688 = vrcp.f32 %v1513_v1  ;;  %v6287_v1 = vld [vmem:[#allocation11_spill] sm:$0xff] }
 0x34b   : > { %4019 = vmatpush1.bf16.msra.mxu0 %v5284_v22  ;;  %4051 = vmatpush1.bf16.msra.mxu1 %v5336_v60  ;;  %4690 = vrcp.f32 %v1520_v20  ;;  %v6293_v20 = vld [vmem:[#allocation18_spill] sm:$0xff] }
 0x34c   : > { %4021 = vmatprep.subr.bf16.mxu0 %v5288_v24  ;;  %4053 = vmatprep.subr.bf16.mxu1 %v5342_v2 }
 0x34f   : > { %4023 = vmatpush1.bf16.msra.mxu0 %v5321_v50  ;;  %4055 = vmatpush1.bf16.msra.mxu1 %v5373_v32 }
 0x350   : > { %4025 = vmatprep.subr.bf16.mxu0 %v5324_v52  ;;  %4057 = vmatprep.subr.bf16.mxu1 %v5379_v40 }
 0x353   : > { %v4687_v63 = vpop.eup %4686  ;;  %4027 = vmatpush1.bf16.msra.mxu0 %v5358_v17  ;;  %4059 = vmatpush1.bf16.msra.mxu1 %v6237_v48 }
 0x354   : > { %v4689_v37 = vpop.eup %4688  ;;  %v1524_v7 = vmul.f32 %v4687_v63, %v4685_v42  ;;  %4029 = vmatprep.subr.bf16.mxu0 %v6238_v28  ;;  %4061 = vmatprep.subr.bf16.mxu1 %v6239_v3  ;;  %v6289_v42 = vld [vmem:[#allocation14_spill] sm:$0xff]  ;;  %v6290_v63 = vld [vmem:[#allocation20_spill] sm:$0xff] }
 0x355   : > { %v1523_v11 = vmul.f32 %v4689_v37, %v5669_v59  ;;  %v4691_v59 = vpop.eup %4690  ;;  %v6291_v37 = vld [vmem:[#allocation15_spill] sm:$0xff] }
 0x357   : > { %v5755_v43 = vadd.f32 %v1524_v7, %v1523_v11  ;;  %4031 = vmatpush1.bf16.msra.mxu0 %v6240_v36  ;;  %4063 = vmatpush1.bf16.msra.mxu1 %v5445_v61  ;;  %v6292_v7 = vld [vmem:[#allocation21_spill] sm:$0xff]  ;;  %v6294_v11 = vld [vmem:[#allocation24_spill] sm:$0xff] }
 0x358   : > { %4033 = vmatprep.subr.bf16.mxu0 %v6241_v25  ;;  %4065 = vmatprep.subr.bf16.mxu1 %v5451_v5 }
 0x359   : > { %4692 = vtanh.f32 %v5755_v43 }
 0x35b   : > { %4035 = vmatpush1.bf16.msra.mxu0 %v5430_v45  ;;  %4067 = vmatpush1.bf16.msra.mxu1 %v5478_v12 }
 0x35c   : > { %4037 = vmatprep.subr.bf16.mxu0 %v6242_v51  ;;  %4069 = vmatprep.subr.bf16.mxu1 %v5481_v8 }
 0x35f   : > { %4039 = vmatpush1.bf16.msra.mxu0 %v6243_v54  ;;  %4071 = vmatpush1.bf16.msra.mxu1 %v5500_v29 }
 0x360   : > { %4041 = vmatprep.subr.bf16.mxu0 %v5469_v41  ;;  %4073 = vmatprep.subr.bf16.mxu1 %v5503_v30 }
 0x363   : > { %v4693_v53 = vpop.eup %4692  ;;  %4043 = vmatpush1.bf16.msra.mxu0 %v5496_v14  ;;  %4075 = vmatpush1.bf16.msra.mxu1 %v5513_v21 }
 0x364   : > { %v1527_v55 = vmul.f32 %v4693_v53, %v4691_v59  ;;  %4077 = vmatprep.subr.bf16.mxu0 %v4946_v4  ;;  %4109 = vmatprep.subr.bf16.mxu1 %v5000_v23  ;;  %v6295_v59 = vld [vmem:[#allocation19_spill] sm:$0xff]  ;;  %v6296_v53 = vld [vmem:[#allocation25_spill] sm:$0xff] }
 0x366   : > { %3483 = vst [vmem:[%s4934_s21 + $0x28] sm:$0xff] %v1527_v55  ;;  %1777 = vmatmul.mubr.f32.vlgmr.msra.gmra.mrb[14].mxu0 %v1527_v55  ;;  %1848 = vmatmul.mubr.f32.vlgmr.msra.gmra.mrb[14].mxu1 %v1527_v55  ;;  %v6297_v55 = vld [vmem:[#allocation22_spill] sm:$0xff] }
 0x367   : > { %4079 = vmatpush1.bf16.msra.mxu0 %v4959_v9  ;;  %4111 = vmatpush1.bf16.msra.mxu1 %v5008_v26 }
 0x368   : > { %4081 = vmatprep.subr.bf16.mxu0 %v4961_v10  ;;  %4113 = vmatprep.subr.bf16.mxu1 %v5033_v34 }
 0x369   : > { %1953 = vmatprep.mubr.f32.mxu0 %v6236_v57  ;;  %2024 = vmatprep.mubr.f32.mxu1 %v6236_v57 }
 0x36b   : > { %4083 = vmatpush1.bf16.msra.mxu0 %v4977_v15  ;;  %4115 = vmatpush1.bf16.msra.mxu1 %v5044_v38 }
 0x36c   : > { %4085 = vmatprep.subr.bf16.mxu0 %v4986_v18  ;;  %4117 = vmatprep.subr.bf16.mxu1 %v5068_v46 }
 0x36f   : > { %4087 = vmatpush1.bf16.msra.mxu0 %v5011_v27  ;;  %4119 = vmatpush1.bf16.msra.mxu1 %v5077_v49 }
 0x370   : > { %4089 = vmatprep.subr.bf16.mxu0 %v6279_v13  ;;  %4121 = vmatprep.subr.bf16.mxu1 %v6280_v58 }
 0x373   : > { %4091 = vmatpush1.bf16.msra.mxu0 %v6281_v33  ;;  %4123 = vmatpush1.bf16.msra.mxu1 %v6282_v19 }
 0x374   : > { %4093 = vmatprep.subr.bf16.mxu0 %v6283_v47  ;;  %4125 = vmatprep.subr.bf16.mxu1 %v6284_v44  ;;  %v3487_v47 = vld [vmem:[%s4919_s10 + $0x78] sm:$0xff] }
 0x377   : > { %4095 = vmatpush1.bf16.msra.mxu0 %v6285_v56  ;;  %4127 = vmatpush1.bf16.msra.mxu1 %v6286_v31 }
 0x378   : > { %4097 = vmatprep.subr.bf16.mxu0 %v6287_v1  ;;  %4129 = vmatprep.subr.bf16.mxu1 %v6288_v16  ;;  %v6298_v16 = vld [vmem:[#allocation26_spill] sm:$0xff] }
 0x37b   : > { %4099 = vmatpush1.bf16.msra.mxu0 %v6289_v42  ;;  %4131 = vmatpush1.bf16.msra.mxu1 %v6290_v63  ;;  %v6299_v42 = vld [vmem:[#allocation23_spill] sm:$0xff] }
 0x37c   : > { %4101 = vmatprep.subr.bf16.mxu0 %v6291_v37  ;;  %4133 = vmatprep.subr.bf16.mxu1 %v6292_v7  ;;  %v6300_v63 = vld [vmem:[#allocation27_spill] sm:$0xff]  ;;  %v3484_v37 = vld [vmem:[%s4919_s10 + $0x60] sm:$0xff] }
 0x37d   : > { %v3485_v7 = vld [vmem:[%s4919_s10 + $0x68] sm:$0xff] }
 0x37f   : > { %4103 = vmatpush1.bf16.msra.mxu0 %v6293_v20  ;;  %4135 = vmatpush1.bf16.msra.mxu1 %v6294_v11 }
 0x380   : > { %4105 = vmatprep.subr.bf16.mxu0 %v6295_v59  ;;  %4137 = vmatprep.subr.bf16.mxu1 %v6296_v53 }
 0x383   : > { %4107 = vmatpush1.bf16.msra.mxu0 %v6297_v55  ;;  %4139 = vmatpush1.bf16.msra.mxu1 %v6298_v16  ;;  %v3486_v16 = vld [vmem:[%s4919_s10 + $0x70] sm:$0xff] }
 0x384   : > { %4141 = vmatprep.subr.bf16.mxu0 %v6299_v42  ;;  %4173 = vmatprep.subr.bf16.mxu1 %v6300_v63 }
 0x419   : > { %v1601_v1 = vpop.f32.mrb[12].mxu0  ;;  %v1672_v20 = vpop.f32.mrb[12].mxu1 }
 0x41a   : > { %v1677_v31 = vadd.f32 %v3484_v37, %v1601_v1  ;;  %v1603_v11 = vpop.f32.mrb[13].mxu0  ;;  %v1674_v56 = vpop.f32.mrb[13].mxu1  ;;  %v1679_v42 = vadd.f32 %v3486_v16, %v1672_v20  ;;  %v3493_v16 = vld [vmem:[%s4924_s14 + $0x88] sm:$0xff] }
 0x41b   : > { %v1678_v59 = vadd.f32 %v3485_v7, %v1603_v11  ;;  %v1680_v55 = vadd.f32 %v3487_v47, %v1674_v56  ;;  %v3492_v56 = vld [vmem:[%s4924_s14 + $0x80] sm:$0xff] }
 0x41c   : > { %v3488_v44 = vmul.f32 -1.442695, %v1677_v31 }
 0x41d   : > { %v3489_v53 = vmul.f32 -1.442695, %v1678_v59  ;;  %v3490_v19 = vmul.f32 -1.442695, %v1680_v55 }
 0x41e   : > { %4694 = vpow2.f32 %v3488_v44 }
 0x41f   : > { %4696 = vpow2.f32 %v3489_v53 }
 0x420   : > { %4698 = vpow2.f32 %v3490_v19 }
 0x421   : > { %4700 = vtanh.f32 %v1679_v42 }
 0x428   : > { %v4695_v33 = vpop.eup %4694 }
 0x429   : > { %v4697_v63 = vpop.eup %4696  ;;  %v1684_v58 = vadd.f32 1.0, %v4695_v33 }
 0x42a   : > { %v1690_v1 = vadd.f32 1.0, %v4697_v63  ;;  %v4699_v37 = vpop.eup %4698 }
 0x42b   : > { %4702 = vrcp.f32 %v1684_v58  ;;  %v4701_v31 = vpop.eup %4700  ;;  %v1697_v59 = vadd.f32 1.0, %v4699_v37  ;;  %v3495_v37 = vld [vmem:[%s4924_s14 + $0x98] sm:$0xff] }
 0x42c   : > { %4704 = vrcp.f32 %v1690_v1 }
 0x42d   : > { %4706 = vrcp.f32 %v1697_v59 }
 0x435   : > { %v4703_v7 = vpop.eup %4702 }
 0x436   : > { %v4705_v44 = vpop.eup %4704  ;;  %v1701_v11 = vmul.f32 %v4703_v7, %v4701_v31  ;;  %v3494_v31 = vld [vmem:[%s4924_s14 + $0x90] sm:$0xff] }
 0x437   : > { %v1700_v47 = vmul.f32 %v4705_v44, %v5730_v6  ;;  %v4707_v7 = vpop.eup %4706 }
 0x439   : > { %v5816_v20 = vadd.f32 %v1701_v11, %v1700_v47  ;;  %v1778_v33 = vpop.f32.mrb[14].mxu0  ;;  %v1849_v19 = vpop.f32.mrb[14].mxu1 }
 0x43a   : > { %v1854_v42 = vadd.f32 %v3492_v56, %v1778_v33  ;;  %v1780_v58 = vpop.f32.mrb[15].mxu0  ;;  %v1851_v63 = vpop.f32.mrb[15].mxu1  ;;  %v1856_v47 = vadd.f32 %v3494_v31, %v1849_v19  ;;  %v6301_v31 = vld [vmem:[#allocation6_spill] sm:$0xff] }
 0x43b   : > { %v1855_v53 = vadd.f32 %v3493_v16, %v1780_v58  ;;  %4708 = vtanh.f32 %v5816_v20  ;;  %v1857_v6 = vadd.f32 %v3495_v37, %v1851_v63 }
 0x43c   : > { %v3496_v55 = vmul.f32 -1.442695, %v1854_v42 }
 0x43d   : > { %v3497_v1 = vmul.f32 -1.442695, %v1855_v53  ;;  %v3498_v11 = vmul.f32 -1.442695, %v1857_v6 }
 0x43e   : > { %4710 = vpow2.f32 %v3496_v55 }
 0x43f   : > { %4712 = vpow2.f32 %v3497_v1 }
 0x440   : > { %4714 = vpow2.f32 %v3498_v11  ;;  %v6304_v11 = vld [vmem:[#allocation12_spill] sm:$0xff] }
 0x441   : > { %4716 = vtanh.f32 %v1856_v47  ;;  %v6305_v47 = vld [vmem:[#allocation8_spill] sm:$0xff] }
 0x445   : > { %v4709_v44 = vpop.eup %4708 }
 0x446   : > { %v1704_v13 = vmul.f32 %v4709_v44, %v4707_v7  ;;  %v6302_v7 = vld [vmem:[#allocation9_spill] sm:$0xff]  ;;  %v6303_v44 = vld [vmem:[#allocation7_spill] sm:$0xff] }
 0x448   : > { %v4711_v59 = vpop.eup %4710  ;;  %3491 = vst [vmem:[%s4929_s17 + $0x18] sm:$0xff] %v1704_v13  ;;  %1954 = vmatmul.mubr.f32.vlgmr.msra.gmra.mrb[16].mxu0 %v1704_v13  ;;  %2025 = vmatmul.mubr.f32.vlgmr.msra.gmra.mrb[16].mxu1 %v1704_v13 }
 0x449   : > { %v4713_v56 = vpop.eup %4712  ;;  %v1861_v16 = vadd.f32 1.0, %v4711_v59  ;;  %4143 = vmatpush1.bf16.msra.mxu0 %v5248_v62  ;;  %4175 = vmatpush1.bf16.msra.mxu1 %v5300_v35  ;;  %v6306_v59 = vld [vmem:[#allocation13_spill] sm:$0xff] }
 0x44a   : > { %v1867_v33 = vadd.f32 1.0, %v4713_v56  ;;  %4145 = vmatprep.subr.bf16.mxu0 %v5251_v0  ;;  %4177 = vmatprep.subr.bf16.mxu1 %v5306_v39  ;;  %v4715_v13 = vpop.eup %4714  ;;  %v6307_v56 = vld [vmem:[#allocation10_spill] sm:$0xff] }
 0x44b   : > { %4718 = vrcp.f32 %v1861_v16  ;;  %2130 = vmatprep.mubr.f32.mxu0 %v6236_v57  ;;  %2201 = vmatprep.mubr.f32.mxu1 %v6236_v57  ;;  %v4717_v19 = vpop.eup %4716  ;;  %v1874_v53 = vadd.f32 1.0, %v4715_v13  ;;  %v6308_v16 = vld [vmem:[#allocation16_spill] sm:$0xff]  ;;  %v6310_v13 = vld [vmem:[#allocation17_spill] sm:$0xff] }
 0x44c   : > { %4720 = vrcp.f32 %v1867_v33  ;;  %v6309_v33 = vld [vmem:[#allocation11_spill] sm:$0xff] }
 0x44d   : > { %4147 = vmatpush1.bf16.msra.mxu0 %v5284_v22  ;;  %4179 = vmatpush1.bf16.msra.mxu1 %v5336_v60  ;;  %4722 = vrcp.f32 %v1874_v53  ;;  %v6315_v53 = vld [vmem:[#allocation18_spill] sm:$0xff] }
 0x44e   : > { %4149 = vmatprep.subr.bf16.mxu0 %v5288_v24  ;;  %4181 = vmatprep.subr.bf16.mxu1 %v5342_v2 }
 0x451   : > { %4151 = vmatpush1.bf16.msra.mxu0 %v5321_v50  ;;  %4183 = vmatpush1.bf16.msra.mxu1 %v5373_v32 }
 0x452   : > { %4153 = vmatprep.subr.bf16.mxu0 %v5324_v52  ;;  %4185 = vmatprep.subr.bf16.mxu1 %v5379_v40 }
 0x455   : > { %v4719_v42 = vpop.eup %4718  ;;  %4155 = vmatpush1.bf16.msra.mxu0 %v5358_v17  ;;  %4187 = vmatpush1.bf16.msra.mxu1 %v6237_v48 }
 0x456   : > { %v4721_v58 = vpop.eup %4720  ;;  %v1878_v63 = vmul.f32 %v4719_v42, %v4717_v19  ;;  %4157 = vmatprep.subr.bf16.mxu0 %v6238_v28  ;;  %4189 = vmatprep.subr.bf16.mxu1 %v6239_v3  ;;  %v6311_v19 = vld [vmem:[#allocation14_spill] sm:$0xff]  ;;  %v6312_v42 = vld [vmem:[#allocation20_spill] sm:$0xff] }
 0x457   : > { %v1877_v55 = vmul.f32 %v4721_v58, %v5755_v43  ;;  %v4723_v43 = vpop.eup %4722  ;;  %v6313_v58 = vld [vmem:[#allocation15_spill] sm:$0xff] }
 0x459   : > { %v5841_v1 = vadd.f32 %v1878_v63, %v1877_v55  ;;  %4159 = vmatpush1.bf16.msra.mxu0 %v6240_v36  ;;  %4191 = vmatpush1.bf16.msra.mxu1 %v5445_v61  ;;  %v6314_v63 = vld [vmem:[#allocation21_spill] sm:$0xff]  ;;  %v6316_v55 = vld [vmem:[#allocation24_spill] sm:$0xff] }
 0x45a   : > { %4161 = vmatprep.subr.bf16.mxu0 %v6241_v25  ;;  %4193 = vmatprep.subr.bf16.mxu1 %v5451_v5 }
 0x45b   : > { %4724 = vtanh.f32 %v5841_v1 }
 0x45d   : > { %4163 = vmatpush1.bf16.msra.mxu0 %v5430_v45  ;;  %4195 = vmatpush1.bf16.msra.mxu1 %v5478_v12 }
 0x45e   : > { %4165 = vmatprep.subr.bf16.mxu0 %v6242_v51  ;;  %4197 = vmatprep.subr.bf16.mxu1 %v5481_v8 }
 0x461   : > { %4167 = vmatpush1.bf16.msra.mxu0 %v6243_v54  ;;  %4199 = vmatpush1.bf16.msra.mxu1 %v5500_v29 }
 0x462   : > { %4169 = vmatprep.subr.bf16.mxu0 %v5469_v41  ;;  %4201 = vmatprep.subr.bf16.mxu1 %v5503_v30 }
 0x465   : > { %v4725_v37 = vpop.eup %4724  ;;  %4171 = vmatpush1.bf16.msra.mxu0 %v5496_v14  ;;  %4203 = vmatpush1.bf16.msra.mxu1 %v5513_v21 }
 0x466   : > { %v1881_v6 = vmul.f32 %v4725_v37, %v4723_v43  ;;  %4205 = vmatprep.subr.bf16.mxu0 %v4946_v4  ;;  %4237 = vmatprep.subr.bf16.mxu1 %v5000_v23  ;;  %v6317_v43 = vld [vmem:[#allocation19_spill] sm:$0xff]  ;;  %v6318_v37 = vld [vmem:[#allocation25_spill] sm:$0xff] }
 0x468   : > { %3499 = vst [vmem:[%s4934_s21 + $0x20] sm:$0xff] %v1881_v6  ;;  %2131 = vmatmul.mubr.f32.vlgmr.msra.gmra.mrb[18].mxu0 %v1881_v6  ;;  %2202 = vmatmul.mubr.f32.vlgmr.msra.gmra.mrb[18].mxu1 %v1881_v6  ;;  %v6319_v6 = vld [vmem:[#allocation22_spill] sm:$0xff] }
 0x469   : > { %4207 = vmatpush1.bf16.msra.mxu0 %v4959_v9  ;;  %4239 = vmatpush1.bf16.msra.mxu1 %v5008_v26 }
 0x46a   : > { %4209 = vmatprep.subr.bf16.mxu0 %v4961_v10  ;;  %4241 = vmatprep.subr.bf16.mxu1 %v5033_v34 }
 0x46b   : > { %2307 = vmatprep.mubr.f32.mxu0 %v6236_v57  ;;  %2378 = vmatprep.mubr.f32.mxu1 %v6236_v57 }
 0x46d   : > { %4211 = vmatpush1.bf16.msra.mxu0 %v4977_v15  ;;  %4243 = vmatpush1.bf16.msra.mxu1 %v5044_v38 }
 0x46e   : > { %4213 = vmatprep.subr.bf16.mxu0 %v4986_v18  ;;  %4245 = vmatprep.subr.bf16.mxu1 %v5068_v46 }
 0x471   : > { %4215 = vmatpush1.bf16.msra.mxu0 %v5011_v27  ;;  %4247 = vmatpush1.bf16.msra.mxu1 %v5077_v49 }
 0x472   : > { %4217 = vmatprep.subr.bf16.mxu0 %v6301_v31  ;;  %4249 = vmatprep.subr.bf16.mxu1 %v6302_v7 }
 0x475   : > { %4219 = vmatpush1.bf16.msra.mxu0 %v6303_v44  ;;  %4251 = vmatpush1.bf16.msra.mxu1 %v6304_v11 }
 0x476   : > { %4221 = vmatprep.subr.bf16.mxu0 %v6305_v47  ;;  %4253 = vmatprep.subr.bf16.mxu1 %v6306_v59  ;;  %v3503_v47 = vld [vmem:[%s4919_s10 + $0x98] sm:$0xff] }
 0x479   : > { %4223 = vmatpush1.bf16.msra.mxu0 %v6307_v56  ;;  %4255 = vmatpush1.bf16.msra.mxu1 %v6308_v16 }
 0x47a   : > { %4225 = vmatprep.subr.bf16.mxu0 %v6309_v33  ;;  %4257 = vmatprep.subr.bf16.mxu1 %v6310_v13  ;;  %v6320_v13 = vld [vmem:[#allocation26_spill] sm:$0xff] }
 0x47d   : > { %4227 = vmatpush1.bf16.msra.mxu0 %v6311_v19  ;;  %4259 = vmatpush1.bf16.msra.mxu1 %v6312_v42  ;;  %v6321_v19 = vld [vmem:[#allocation23_spill] sm:$0xff] }
 0x47e   : > { %4229 = vmatprep.subr.bf16.mxu0 %v6313_v58  ;;  %4261 = vmatprep.subr.bf16.mxu1 %v6314_v63  ;;  %v6322_v42 = vld [vmem:[#allocation27_spill] sm:$0xff]  ;;  %v3500_v58 = vld [vmem:[%s4919_s10 + $0x80] sm:$0xff] }
 0x47f   : > { %v3501_v63 = vld [vmem:[%s4919_s10 + $0x88] sm:$0xff] }
 0x481   : > { %4231 = vmatpush1.bf16.msra.mxu0 %v6315_v53  ;;  %4263 = vmatpush1.bf16.msra.mxu1 %v6316_v55 }
 0x482   : > { %4233 = vmatprep.subr.bf16.mxu0 %v6317_v43  ;;  %4265 = vmatprep.subr.bf16.mxu1 %v6318_v37 }
 0x485   : > { %4235 = vmatpush1.bf16.msra.mxu0 %v6319_v6  ;;  %4267 = vmatpush1.bf16.msra.mxu1 %v6320_v13  ;;  %v3502_v13 = vld [vmem:[%s4919_s10 + $0x90] sm:$0xff] }
 0x486   : > { %4269 = vmatprep.subr.bf16.mxu0 %v6321_v19  ;;  %4301 = vmatprep.subr.bf16.mxu1 %v6322_v42 }
 0x51b   : > { %v1955_v33 = vpop.f32.mrb[16].mxu0  ;;  %v2026_v53 = vpop.f32.mrb[16].mxu1 }
 0x51c   : > { %v2031_v16 = vadd.f32 %v3500_v58, %v1955_v33  ;;  %v1957_v55 = vpop.f32.mrb[17].mxu0  ;;  %v2028_v56 = vpop.f32.mrb[17].mxu1  ;;  %v2033_v19 = vadd.f32 %v3502_v13, %v2026_v53  ;;  %v3509_v13 = vld [vmem:[%s4924_s14 + $0x68] sm:$0xff] }
 0x51d   : > { %v2032_v43 = vadd.f32 %v3501_v63, %v1957_v55  ;;  %v2034_v6 = vadd.f32 %v3503_v47, %v2028_v56  ;;  %v3508_v56 = vld [vmem:[%s4924_s14 + $0x60] sm:$0xff] }
 0x51e   : > { %v3504_v59 = vmul.f32 -1.442695, %v2031_v16 }
 0x51f   : > { %v3505_v37 = vmul.f32 -1.442695, %v2032_v43  ;;  %v3506_v11 = vmul.f32 -1.442695, %v2034_v6 }
 0x520   : > { %4726 = vpow2.f32 %v3504_v59 }
 0x521   : > { %4728 = vpow2.f32 %v3505_v37 }
 0x522   : > { %4730 = vpow2.f32 %v3506_v11 }
 0x523   : > { %4732 = vtanh.f32 %v2033_v19 }
 0x52a   : > { %v4727_v44 = vpop.eup %4726 }
 0x52b   : > { %v4729_v42 = vpop.eup %4728  ;;  %v2038_v7 = vadd.f32 1.0, %v4727_v44 }
 0x52c   : > { %v2044_v33 = vadd.f32 1.0, %v4729_v42  ;;  %v4731_v58 = vpop.eup %4730 }
 0x52d   : > { %4734 = vrcp.f32 %v2038_v7  ;;  %v4733_v16 = vpop.eup %4732  ;;  %v2051_v43 = vadd.f32 1.0, %v4731_v58  ;;  %v3511_v58 = vld [vmem:[%s4924_s14 + $0x78] sm:$0xff] }
 0x52e   : > { %4736 = vrcp.f32 %v2044_v33 }
 0x52f   : > { %4738 = vrcp.f32 %v2051_v43 }
 0x537   : > { %v4735_v63 = vpop.eup %4734 }
 0x538   : > { %v4737_v59 = vpop.eup %4736  ;;  %v2055_v55 = vmul.f32 %v4735_v63, %v4733_v16  ;;  %v3510_v16 = vld [vmem:[%s4924_s14 + $0x70] sm:$0xff] }
 0x539   : > { %v2054_v47 = vmul.f32 %v4737_v59, %v5816_v20  ;;  %v4739_v63 = vpop.eup %4738 }
 0x53b   : > { %v5902_v53 = vadd.f32 %v2055_v55, %v2054_v47  ;;  %v2132_v44 = vpop.f32.mrb[18].mxu0  ;;  %v2203_v11 = vpop.f32.mrb[18].mxu1 }
 0x53c   : > { %v2208_v19 = vadd.f32 %v3508_v56, %v2132_v44  ;;  %v2134_v7 = vpop.f32.mrb[19].mxu0  ;;  %v2205_v42 = vpop.f32.mrb[19].mxu1  ;;  %v2210_v47 = vadd.f32 %v3510_v16, %v2203_v11  ;;  %v6323_v16 = vld [vmem:[#allocation6_spill] sm:$0xff] }
 0x53d   : > { %v2209_v37 = vadd.f32 %v3509_v13, %v2134_v7  ;;  %4740 = vtanh.f32 %v5902_v53  ;;  %v2211_v20 = vadd.f32 %v3511_v58, %v2205_v42 }
 0x53e   : > { %v3512_v6 = vmul.f32 -1.442695, %v2208_v19 }
 0x53f   : > { %v3513_v33 = vmul.f32 -1.442695, %v2209_v37  ;;  %v3514_v55 = vmul.f32 -1.442695, %v2211_v20 }
 0x540   : > { %4742 = vpow2.f32 %v3512_v6 }
 0x541   : > { %4744 = vpow2.f32 %v3513_v33 }
 0x542   : > { %4746 = vpow2.f32 %v3514_v55  ;;  %v6326_v55 = vld [vmem:[#allocation12_spill] sm:$0xff] }
 0x543   : > { %4748 = vtanh.f32 %v2210_v47  ;;  %v6327_v47 = vld [vmem:[#allocation8_spill] sm:$0xff] }
 0x547   : > { %v4741_v59 = vpop.eup %4740 }
 0x548   : > { %v2058_v31 = vmul.f32 %v4741_v59, %v4739_v63  ;;  %v6324_v63 = vld [vmem:[#allocation9_spill] sm:$0xff]  ;;  %v6325_v59 = vld [vmem:[#allocation7_spill] sm:$0xff] }
 0x54a   : > { %v4743_v43 = vpop.eup %4742  ;;  %3507 = vst [vmem:[%s4929_s17 + $0x20] sm:$0xff] %v2058_v31  ;;  %2308 = vmatmul.mubr.f32.vlgmr.msra.gmra.mrb[20].mxu0 %v2058_v31  ;;  %2379 = vmatmul.mubr.f32.vlgmr.msra.gmra.mrb[20].mxu1 %v2058_v31 }
 0x54b   : > { %v4745_v56 = vpop.eup %4744  ;;  %v2215_v13 = vadd.f32 1.0, %v4743_v43  ;;  %4271 = vmatpush1.bf16.msra.mxu0 %v5248_v62  ;;  %4303 = vmatpush1.bf16.msra.mxu1 %v5300_v35  ;;  %v6328_v43 = vld [vmem:[#allocation13_spill] sm:$0xff] }
 0x54c   : > { %v2221_v44 = vadd.f32 1.0, %v4745_v56  ;;  %4273 = vmatprep.subr.bf16.mxu0 %v5251_v0  ;;  %4305 = vmatprep.subr.bf16.mxu1 %v5306_v39  ;;  %v4747_v31 = vpop.eup %4746  ;;  %v6329_v56 = vld [vmem:[#allocation10_spill] sm:$0xff] }
 0x54d   : > { %4750 = vrcp.f32 %v2215_v13  ;;  %2484 = vmatprep.mubr.f32.mxu0 %v6236_v57  ;;  %2555 = vmatprep.mubr.f32.mxu1 %v6236_v57  ;;  %v4749_v11 = vpop.eup %4748  ;;  %v2228_v37 = vadd.f32 1.0, %v4747_v31  ;;  %v6330_v13 = vld [vmem:[#allocation16_spill] sm:$0xff]  ;;  %v6332_v31 = vld [vmem:[#allocation17_spill] sm:$0xff] }
 0x54e   : > { %4752 = vrcp.f32 %v2221_v44  ;;  %v6331_v44 = vld [vmem:[#allocation11_spill] sm:$0xff] }
 0x54f   : > { %4275 = vmatpush1.bf16.msra.mxu0 %v5284_v22  ;;  %4307 = vmatpush1.bf16.msra.mxu1 %v5336_v60  ;;  %4754 = vrcp.f32 %v2228_v37  ;;  %v6337_v37 = vld [vmem:[#allocation18_spill] sm:$0xff] }
 0x550   : > { %4277 = vmatprep.subr.bf16.mxu0 %v5288_v24  ;;  %4309 = vmatprep.subr.bf16.mxu1 %v5342_v2 }
 0x553   : > { %4279 = vmatpush1.bf16.msra.mxu0 %v5321_v50  ;;  %4311 = vmatpush1.bf16.msra.mxu1 %v5373_v32 }
 0x554   : > { %4281 = vmatprep.subr.bf16.mxu0 %v5324_v52  ;;  %4313 = vmatprep.subr.bf16.mxu1 %v5379_v40 }
 0x557   : > { %v4751_v19 = vpop.eup %4750  ;;  %4283 = vmatpush1.bf16.msra.mxu0 %v5358_v17  ;;  %4315 = vmatpush1.bf16.msra.mxu1 %v6237_v48 }
 0x558   : > { %v4753_v7 = vpop.eup %4752  ;;  %v2232_v42 = vmul.f32 %v4751_v19, %v4749_v11  ;;  %4285 = vmatprep.subr.bf16.mxu0 %v6238_v28  ;;  %4317 = vmatprep.subr.bf16.mxu1 %v6239_v3  ;;  %v6333_v11 = vld [vmem:[#allocation14_spill] sm:$0xff]  ;;  %v6334_v19 = vld [vmem:[#allocation20_spill] sm:$0xff] }
 0x559   : > { %v2231_v6 = vmul.f32 %v4753_v7, %v5841_v1  ;;  %v4755_v1 = vpop.eup %4754  ;;  %v6335_v7 = vld [vmem:[#allocation15_spill] sm:$0xff] }
 0x55b   : > { %v5927_v33 = vadd.f32 %v2232_v42, %v2231_v6  ;;  %4287 = vmatpush1.bf16.msra.mxu0 %v6240_v36  ;;  %4319 = vmatpush1.bf16.msra.mxu1 %v5445_v61  ;;  %v6336_v42 = vld [vmem:[#allocation21_spill] sm:$0xff]  ;;  %v6338_v6 = vld [vmem:[#allocation24_spill] sm:$0xff] }
 0x55c   : > { %4289 = vmatprep.subr.bf16.mxu0 %v6241_v25  ;;  %4321 = vmatprep.subr.bf16.mxu1 %v5451_v5 }
 0x55d   : > { %4756 = vtanh.f32 %v5927_v33 }
 0x55f   : > { %4291 = vmatpush1.bf16.msra.mxu0 %v5430_v45  ;;  %4323 = vmatpush1.bf16.msra.mxu1 %v5478_v12 }
 0x560   : > { %4293 = vmatprep.subr.bf16.mxu0 %v6242_v51  ;;  %4325 = vmatprep.subr.bf16.mxu1 %v5481_v8 }
 0x563   : > { %4295 = vmatpush1.bf16.msra.mxu0 %v6243_v54  ;;  %4327 = vmatpush1.bf16.msra.mxu1 %v5500_v29 }
 0x564   : > { %4297 = vmatprep.subr.bf16.mxu0 %v5469_v41  ;;  %4329 = vmatprep.subr.bf16.mxu1 %v5503_v30 }
 0x567   : > { %v4757_v58 = vpop.eup %4756  ;;  %4299 = vmatpush1.bf16.msra.mxu0 %v5496_v14  ;;  %4331 = vmatpush1.bf16.msra.mxu1 %v5513_v21 }
 0x568   : > { %v2235_v20 = vmul.f32 %v4757_v58, %v4755_v1  ;;  %4333 = vmatprep.subr.bf16.mxu0 %v4946_v4  ;;  %4365 = vmatprep.subr.bf16.mxu1 %v5000_v23  ;;  %v6339_v1 = vld [vmem:[#allocation19_spill] sm:$0xff]  ;;  %v6340_v58 = vld [vmem:[#allocation25_spill] sm:$0xff] }
 0x56a   : > { %3515 = vst [vmem:[%s4934_s21 + $0x18] sm:$0xff] %v2235_v20  ;;  %2485 = vmatmul.mubr.f32.vlgmr.msra.gmra.mrb[22].mxu0 %v2235_v20  ;;  %2556 = vmatmul.mubr.f32.vlgmr.msra.gmra.mrb[22].mxu1 %v2235_v20  ;;  %v6341_v20 = vld [vmem:[#allocation22_spill] sm:$0xff] }
 0x56b   : > { %4335 = vmatpush1.bf16.msra.mxu0 %v4959_v9  ;;  %4367 = vmatpush1.bf16.msra.mxu1 %v5008_v26 }
 0x56c   : > { %4337 = vmatprep.subr.bf16.mxu0 %v4961_v10  ;;  %4369 = vmatprep.subr.bf16.mxu1 %v5033_v34 }
 0x56d   : > { %2661 = vmatprep.mubr.f32.mxu0 %v6236_v57  ;;  %2732 = vmatprep.mubr.f32.mxu1 %v6236_v57 }
 0x56f   : > { %4339 = vmatpush1.bf16.msra.mxu0 %v4977_v15  ;;  %4371 = vmatpush1.bf16.msra.mxu1 %v5044_v38 }
 0x570   : > { %4341 = vmatprep.subr.bf16.mxu0 %v4986_v18  ;;  %4373 = vmatprep.subr.bf16.mxu1 %v5068_v46 }
 0x573   : > { %4343 = vmatpush1.bf16.msra.mxu0 %v5011_v27  ;;  %4375 = vmatpush1.bf16.msra.mxu1 %v5077_v49 }
 0x574   : > { %4345 = vmatprep.subr.bf16.mxu0 %v6323_v16  ;;  %4377 = vmatprep.subr.bf16.mxu1 %v6324_v63 }
 0x577   : > { %4347 = vmatpush1.bf16.msra.mxu0 %v6325_v59  ;;  %4379 = vmatpush1.bf16.msra.mxu1 %v6326_v55 }
 0x578   : > { %4349 = vmatprep.subr.bf16.mxu0 %v6327_v47  ;;  %4381 = vmatprep.subr.bf16.mxu1 %v6328_v43  ;;  %v3519_v47 = vld [vmem:[%s4919_s10 + $0xb8] sm:$0xff] }
 0x57b   : > { %4351 = vmatpush1.bf16.msra.mxu0 %v6329_v56  ;;  %4383 = vmatpush1.bf16.msra.mxu1 %v6330_v13 }
 0x57c   : > { %4353 = vmatprep.subr.bf16.mxu0 %v6331_v44  ;;  %4385 = vmatprep.subr.bf16.mxu1 %v6332_v31  ;;  %v6342_v31 = vld [vmem:[#allocation26_spill] sm:$0xff] }
 0x57f   : > { %4355 = vmatpush1.bf16.msra.mxu0 %v6333_v11  ;;  %4387 = vmatpush1.bf16.msra.mxu1 %v6334_v19  ;;  %v6343_v11 = vld [vmem:[#allocation23_spill] sm:$0xff] }
 0x580   : > { %4357 = vmatprep.subr.bf16.mxu0 %v6335_v7  ;;  %4389 = vmatprep.subr.bf16.mxu1 %v6336_v42  ;;  %v6344_v19 = vld [vmem:[#allocation27_spill] sm:$0xff]  ;;  %v3516_v7 = vld [vmem:[%s4919_s10 + $0xa0] sm:$0xff] }
 0x581   : > { %v3517_v42 = vld [vmem:[%s4919_s10 + $0xa8] sm:$0xff] }
 0x583   : > { %4359 = vmatpush1.bf16.msra.mxu0 %v6337_v37  ;;  %4391 = vmatpush1.bf16.msra.mxu1 %v6338_v6 }
 0x584   : > { %4361 = vmatprep.subr.bf16.mxu0 %v6339_v1  ;;  %4393 = vmatprep.subr.bf16.mxu1 %v6340_v58 }
 0x587   : > { %4363 = vmatpush1.bf16.msra.mxu0 %v6341_v20  ;;  %4395 = vmatpush1.bf16.msra.mxu1 %v6342_v31  ;;  %v3518_v31 = vld [vmem:[%s4919_s10 + $0xb0] sm:$0xff] }
 0x588   : > { %4397 = vmatprep.subr.bf16.mxu0 %v6343_v11  ;;  %4429 = vmatprep.subr.bf16.mxu1 %v6344_v19 }
 0x61d   : > { %v2309_v44 = vpop.f32.mrb[20].mxu0  ;;  %v2380_v37 = vpop.f32.mrb[20].mxu1 }
 0x61e   : > { %v2385_v13 = vadd.f32 %v3516_v7, %v2309_v44  ;;  %v2311_v6 = vpop.f32.mrb[21].mxu0  ;;  %v2382_v56 = vpop.f32.mrb[21].mxu1  ;;  %v2387_v11 = vadd.f32 %v3518_v31, %v2380_v37  ;;  %v3525_v31 = vld [vmem:[%s4924_s14 + $0x48] sm:$0xff] }
 0x61f   : > { %v2386_v1 = vadd.f32 %v3517_v42, %v2311_v6  ;;  %v2388_v20 = vadd.f32 %v3519_v47, %v2382_v56  ;;  %v3524_v56 = vld [vmem:[%s4924_s14 + $0x40] sm:$0xff] }
 0x620   : > { %v3520_v43 = vmul.f32 -1.442695, %v2385_v13 }
 0x621   : > { %v3521_v58 = vmul.f32 -1.442695, %v2386_v1  ;;  %v3522_v55 = vmul.f32 -1.442695, %v2388_v20 }
 0x622   : > { %4758 = vpow2.f32 %v3520_v43 }
 0x623   : > { %4760 = vpow2.f32 %v3521_v58 }
 0x624   : > { %4762 = vpow2.f32 %v3522_v55 }
 0x625   : > { %4764 = vtanh.f32 %v2387_v11 }
 0x62c   : > { %v4759_v59 = vpop.eup %4758 }
 0x62d   : > { %v4761_v19 = vpop.eup %4760  ;;  %v2392_v63 = vadd.f32 1.0, %v4759_v59 }
 0x62e   : > { %v2398_v44 = vadd.f32 1.0, %v4761_v19  ;;  %v4763_v7 = vpop.eup %4762 }
 0x62f   : > { %4766 = vrcp.f32 %v2392_v63  ;;  %v4765_v13 = vpop.eup %4764  ;;  %v2405_v1 = vadd.f32 1.0, %v4763_v7  ;;  %v3527_v7 = vld [vmem:[%s4924_s14 + $0x58] sm:$0xff] }
 0x630   : > { %4768 = vrcp.f32 %v2398_v44 }
 0x631   : > { %4770 = vrcp.f32 %v2405_v1 }
 0x639   : > { %v4767_v42 = vpop.eup %4766 }
 0x63a   : > { %v4769_v43 = vpop.eup %4768  ;;  %v2409_v6 = vmul.f32 %v4767_v42, %v4765_v13  ;;  %v3526_v13 = vld [vmem:[%s4924_s14 + $0x50] sm:$0xff] }
 0x63b   : > { %v2408_v47 = vmul.f32 %v4769_v43, %v5902_v53  ;;  %v4771_v42 = vpop.eup %4770 }
 0x63d   : > { %v5988_v37 = vadd.f32 %v2409_v6, %v2408_v47  ;;  %v2486_v59 = vpop.f32.mrb[22].mxu0  ;;  %v2557_v55 = vpop.f32.mrb[22].mxu1 }
 0x63e   : > { %v2562_v11 = vadd.f32 %v3524_v56, %v2486_v59  ;;  %v2488_v63 = vpop.f32.mrb[23].mxu0  ;;  %v2559_v19 = vpop.f32.mrb[23].mxu1  ;;  %v2564_v47 = vadd.f32 %v3526_v13, %v2557_v55  ;;  %v6357_v13 = vld [vmem:[#allocation15_spill] sm:$0xff] }
 0x63f   : > { %v2563_v58 = vadd.f32 %v3525_v31, %v2488_v63  ;;  %4772 = vtanh.f32 %v5988_v37  ;;  %v2565_v53 = vadd.f32 %v3527_v7, %v2559_v19 }
 0x640   : > { %v3528_v20 = vmul.f32 -1.442695, %v2562_v11 }
 0x641   : > { %v3529_v44 = vmul.f32 -1.442695, %v2563_v58  ;;  %v3530_v6 = vmul.f32 -1.442695, %v2565_v53 }
 0x642   : > { %4774 = vpow2.f32 %v3528_v20 }
 0x643   : > { %4776 = vpow2.f32 %v3529_v44 }
 0x644   : > { %4778 = vpow2.f32 %v3530_v6  ;;  %v6360_v6 = vld [vmem:[#allocation24_spill] sm:$0xff] }
 0x645   : > { %4780 = vtanh.f32 %v2564_v47  ;;  %v6361_v47 = vld [vmem:[#allocation19_spill] sm:$0xff] }
 0x649   : > { %v4773_v43 = vpop.eup %4772 }
 0x64a   : > { %v2412_v16 = vmul.f32 %v4773_v43, %v4771_v42  ;;  %v6358_v42 = vld [vmem:[#allocation21_spill] sm:$0xff]  ;;  %v6359_v43 = vld [vmem:[#allocation18_spill] sm:$0xff] }
 0x64c   : > { %v4775_v1 = vpop.eup %4774  ;;  %3523 = vst [vmem:[%s4929_s17 + $0x28] sm:$0xff] %v2412_v16  ;;  %2662 = vmatmul.mubr.f32.vlgmr.msra.gmra.mrb[24].mxu0 %v2412_v16  ;;  %2733 = vmatmul.mubr.f32.vlgmr.msra.gmra.mrb[24].mxu1 %v2412_v16 }
 0x64d   : > { %v4777_v56 = vpop.eup %4776  ;;  %v2569_v31 = vadd.f32 1.0, %v4775_v1  ;;  %4399 = vmatpush1.bf16.msra.mxu0 %v5248_v62  ;;  %4431 = vmatpush1.bf16.msra.mxu1 %v5300_v35  ;;  %v6362_v1 = vld [vmem:[#allocation25_spill] sm:$0xff] }
 0x64e   : > { %v2575_v59 = vadd.f32 1.0, %v4777_v56  ;;  %4401 = vmatprep.subr.bf16.mxu0 %v5251_v0  ;;  %4433 = vmatprep.subr.bf16.mxu1 %v5306_v39  ;;  %v4779_v16 = vpop.eup %4778  ;;  %v6363_v56 = vld [vmem:[#allocation22_spill] sm:$0xff] }
 0x64f   : > { %4782 = vrcp.f32 %v2569_v31  ;;  %2838 = vmatprep.mubr.f32.mxu0 %v6236_v57  ;;  %2909 = vmatprep.mubr.f32.mxu1 %v6236_v57  ;;  %v4781_v55 = vpop.eup %4780  ;;  %v2582_v58 = vadd.f32 1.0, %v4779_v16  ;;  %v6364_v31 = vld [vmem:[#allocation26_spill] sm:$0xff]  ;;  %v6366_v16 = vld [vmem:[#allocation27_spill] sm:$0xff] }
 0x650   : > { %4784 = vrcp.f32 %v2575_v59  ;;  %v6365_v59 = vld [vmem:[#allocation23_spill] sm:$0xff] }
 0x651   : > { %4403 = vmatpush1.bf16.msra.mxu0 %v5284_v22  ;;  %4435 = vmatpush1.bf16.msra.mxu1 %v5336_v60  ;;  %4786 = vrcp.f32 %v2582_v58 }
 0x652   : > { %4405 = vmatprep.subr.bf16.mxu0 %v5288_v24  ;;  %4437 = vmatprep.subr.bf16.mxu1 %v5342_v2 }
 0x655   : > { %4407 = vmatpush1.bf16.msra.mxu0 %v5321_v50  ;;  %4439 = vmatpush1.bf16.msra.mxu1 %v5373_v32 }
 0x656   : > { %4409 = vmatprep.subr.bf16.mxu0 %v5324_v52  ;;  %4441 = vmatprep.subr.bf16.mxu1 %v5379_v40 }
 0x659   : > { %v4783_v11 = vpop.eup %4782  ;;  %4411 = vmatpush1.bf16.msra.mxu0 %v5358_v17  ;;  %4443 = vmatpush1.bf16.msra.mxu1 %v6237_v48 }
 0x65a   : > { %v4785_v63 = vpop.eup %4784  ;;  %v2586_v19 = vmul.f32 %v4783_v11, %v4781_v55  ;;  %4413 = vmatprep.subr.bf16.mxu0 %v6238_v28  ;;  %4445 = vmatprep.subr.bf16.mxu1 %v6239_v3  ;;  %v3532_v55 = vld [vmem:[%s4919_s10 + $0xc0] sm:$0xff]  ;;  %v3533_v11 = vld [vmem:[%s4919_s10 + $0xc8] sm:$0xff] }
 0x65b   : > { %v2585_v20 = vmul.f32 %v4785_v63, %v5927_v33  ;;  %v4787_v33 = vpop.eup %4786 }
 0x65d   : > { %v6013_v44 = vadd.f32 %v2586_v19, %v2585_v20  ;;  %4415 = vmatpush1.bf16.msra.mxu0 %v6240_v36  ;;  %4447 = vmatpush1.bf16.msra.mxu1 %v5445_v61 }
 0x65e   : > { %4417 = vmatprep.subr.bf16.mxu0 %v6241_v25  ;;  %4449 = vmatprep.subr.bf16.mxu1 %v5451_v5 }
 0x65f   : > { %4788 = vtanh.f32 %v6013_v44 }
 0x661   : > { %4419 = vmatpush1.bf16.msra.mxu0 %v5430_v45  ;;  %4451 = vmatpush1.bf16.msra.mxu1 %v5478_v12 }
 0x662   : > { %4421 = vmatprep.subr.bf16.mxu0 %v6242_v51  ;;  %4453 = vmatprep.subr.bf16.mxu1 %v5481_v8 }
 0x665   : > { %4423 = vmatpush1.bf16.msra.mxu0 %v6243_v54  ;;  %4455 = vmatpush1.bf16.msra.mxu1 %v5500_v29 }
 0x666   : > { %4425 = vmatprep.subr.bf16.mxu0 %v5469_v41  ;;  %4457 = vmatprep.subr.bf16.mxu1 %v5503_v30 }
 0x669   : > { %v4789_v7 = vpop.eup %4788  ;;  %4427 = vmatpush1.bf16.msra.mxu0 %v5496_v14  ;;  %4459 = vmatpush1.bf16.msra.mxu1 %v5513_v21 }
 0x66a   : > { %v2589_v53 = vmul.f32 %v4789_v7, %v4787_v33  ;;  %4461 = vmatprep.subr.bf16.mxu0 %v4946_v4  ;;  %4493 = vmatprep.subr.bf16.mxu1 %v5000_v23  ;;  %v6345_v4 = vld [vmem:[#allocation6_spill] sm:$0xff]  ;;  %v6348_v23 = vld [vmem:[#allocation12_spill] sm:$0xff] }
 0x66c   : > { %3531 = vst [vmem:[%s4934_s21 + $0x10] sm:$0xff] %v2589_v53  ;;  %2839 = vmatmul.mubr.f32.vlgmr.msra.gmra.mrb[26].mxu0 %v2589_v53  ;;  %2910 = vmatmul.mubr.f32.vlgmr.msra.gmra.mrb[26].mxu1 %v2589_v53 }
 0x66d   : > { %4463 = vmatpush1.bf16.msra.mxu0 %v4959_v9  ;;  %4495 = vmatpush1.bf16.msra.mxu1 %v5008_v26  ;;  %v6346_v9 = vld [vmem:[#allocation9_spill] sm:$0xff]  ;;  %v6349_v26 = vld [vmem:[#allocation8_spill] sm:$0xff] }
 0x66e   : > { %4465 = vmatprep.subr.bf16.mxu0 %v4961_v10  ;;  %4497 = vmatprep.subr.bf16.mxu1 %v5033_v34  ;;  %v6347_v10 = vld [vmem:[#allocation7_spill] sm:$0xff]  ;;  %v6351_v34 = vld [vmem:[#allocation10_spill] sm:$0xff] }
 0x66f   : > { %3015 = vmatprep.mubr.f32.mxu0 %v6236_v57  ;;  %3086 = vmatprep.mubr.f32.mxu1 %v6236_v57 }
 0x671   : > { %4467 = vmatpush1.bf16.msra.mxu0 %v4977_v15  ;;  %4499 = vmatpush1.bf16.msra.mxu1 %v5044_v38  ;;  %v6350_v15 = vld [vmem:[#allocation13_spill] sm:$0xff] }
 0x672   : > { %4469 = vmatprep.subr.bf16.mxu0 %v4986_v18  ;;  %4501 = vmatprep.subr.bf16.mxu1 %v5068_v46  ;;  %v6352_v18 = vld [vmem:[#allocation16_spill] sm:$0xff]  ;;  %v6354_v38 = vld [vmem:[#allocation17_spill] sm:$0xff]  ;;  %v6355_v46 = vld [vmem:[#allocation14_spill] sm:$0xff] }
 0x675   : > { %4471 = vmatpush1.bf16.msra.mxu0 %v5011_v27  ;;  %4503 = vmatpush1.bf16.msra.mxu1 %v5077_v49  ;;  %v6353_v27 = vld [vmem:[#allocation11_spill] sm:$0xff]  ;;  %v6356_v49 = vld [vmem:[#allocation20_spill] sm:$0xff] }
 0x676   : > { %4473 = vmatprep.subr.bf16.mxu0 %v6345_v4  ;;  %4505 = vmatprep.subr.bf16.mxu1 %v6346_v9  ;;  %v3535_v9 = vld [vmem:[%s4919_s10 + $0xd8] sm:$0xff] }
 0x679   : > { %4475 = vmatpush1.bf16.msra.mxu0 %v6347_v10  ;;  %4507 = vmatpush1.bf16.msra.mxu1 %v6348_v23  ;;  %v3534_v23 = vld [vmem:[%s4919_s10 + $0xd0] sm:$0xff] }
 0x67a   : > { %4477 = vmatprep.subr.bf16.mxu0 %v6349_v26  ;;  %4509 = vmatprep.subr.bf16.mxu1 %v6350_v15 }
 0x67d   : > { %4479 = vmatpush1.bf16.msra.mxu0 %v6351_v34  ;;  %4511 = vmatpush1.bf16.msra.mxu1 %v6352_v18 }
 0x67e   : > { %4481 = vmatprep.subr.bf16.mxu0 %v6353_v27  ;;  %4513 = vmatprep.subr.bf16.mxu1 %v6354_v38 }
 0x681   : > { %4483 = vmatpush1.bf16.msra.mxu0 %v6355_v46  ;;  %4515 = vmatpush1.bf16.msra.mxu1 %v6356_v49 }
 0x682   : > { %4485 = vmatprep.subr.bf16.mxu0 %v6357_v13  ;;  %4517 = vmatprep.subr.bf16.mxu1 %v6358_v42 }
 0x685   : > { %4487 = vmatpush1.bf16.msra.mxu0 %v6359_v43  ;;  %4519 = vmatpush1.bf16.msra.mxu1 %v6360_v6 }
 0x686   : > { %4489 = vmatprep.subr.bf16.mxu0 %v6361_v47  ;;  %4521 = vmatprep.subr.bf16.mxu1 %v6362_v1  ;;  %v3540_v1 = vld [vmem:[%s4924_s14 + $0x20] sm:$0xff] }
 0x689   : > { %4491 = vmatpush1.bf16.msra.mxu0 %v6363_v56  ;;  %4523 = vmatpush1.bf16.msra.mxu1 %v6364_v31  ;;  %v3541_v56 = vld [vmem:[%s4924_s14 + $0x28] sm:$0xff] }
 0x68a   : > { %4525 = vmatprep.subr.bf16.mxu0 %v6365_v59  ;;  %4557 = vmatprep.subr.bf16.mxu1 %v6366_v16 }
 0x71f   : > { %v2663_v63 = vpop.f32.mrb[24].mxu0  ;;  %v2734_v19 = vpop.f32.mrb[24].mxu1 }
 0x720   : > { %v2739_v58 = vadd.f32 %v3532_v55, %v2663_v63  ;;  %v2665_v20 = vpop.f32.mrb[25].mxu0  ;;  %v2736_v33 = vpop.f32.mrb[25].mxu1  ;;  %v2741_v15 = vadd.f32 %v3534_v23, %v2734_v19 }
 0x721   : > { %v2740_v7 = vadd.f32 %v3533_v11, %v2665_v20  ;;  %v2742_v10 = vadd.f32 %v3535_v9, %v2736_v33  ;;  %v3543_v33 = vld [vmem:[%s4924_s14 + $0x38] sm:$0xff] }
 0x722   : > { %v3536_v53 = vmul.f32 -1.442695, %v2739_v58 }
 0x723   : > { %v3537_v4 = vmul.f32 -1.442695, %v2740_v7  ;;  %v3538_v26 = vmul.f32 -1.442695, %v2742_v10  ;;  %v3542_v7 = vld [vmem:[%s4924_s14 + $0x30] sm:$0xff] }
 0x724   : > { %4790 = vpow2.f32 %v3536_v53 }
 0x725   : > { %4792 = vpow2.f32 %v3537_v4 }
 0x726   : > { %4794 = vpow2.f32 %v3538_v26 }
 0x727   : > { %4796 = vtanh.f32 %v2741_v15 }
 0x72e   : > { %v4791_v34 = vpop.eup %4790 }
 0x72f   : > { %v4793_v18 = vpop.eup %4792  ;;  %v2746_v27 = vadd.f32 1.0, %v4791_v34 }
 0x730   : > { %v2752_v38 = vadd.f32 1.0, %v4793_v18  ;;  %v4795_v46 = vpop.eup %4794 }
 0x731   : > { %4798 = vrcp.f32 %v2746_v27  ;;  %v4797_v49 = vpop.eup %4796  ;;  %v2759_v6 = vadd.f32 1.0, %v4795_v46 }
 0x732   : > { %4800 = vrcp.f32 %v2752_v38 }
 0x733   : > { %4802 = vrcp.f32 %v2759_v6 }
 0x73b   : > { %v4799_v13 = vpop.eup %4798 }
 0x73c   : > { %v4801_v42 = vpop.eup %4800  ;;  %v2763_v43 = vmul.f32 %v4799_v13, %v4797_v49 }
 0x73d   : > { %v2762_v47 = vmul.f32 %v4801_v42, %v5988_v37  ;;  %v4803_v53 = vpop.eup %4802  ;;  %v3123_v42 = vld [vmem:[%s4924_s14] sm:$0xff] }
 0x73f   : > { %v6074_v31 = vadd.f32 %v2763_v43, %v2762_v47  ;;  %v2840_v59 = vpop.f32.mrb[26].mxu0  ;;  %v2911_v16 = vpop.f32.mrb[26].mxu1  ;;  %v3124_v43 = vld [vmem:[%s4924_s14 + $0x8] sm:$0xff] }
 0x740   : > { %v2916_v55 = vadd.f32 %v3540_v1, %v2840_v59  ;;  %v2842_v11 = vpop.f32.mrb[27].mxu0  ;;  %v2913_v63 = vpop.f32.mrb[27].mxu1  ;;  %v2918_v10 = vadd.f32 %v3542_v7, %v2911_v16 }
 0x741   : > { %v2917_v19 = vadd.f32 %v3541_v56, %v2842_v11  ;;  %4804 = vtanh.f32 %v6074_v31  ;;  %v2919_v37 = vadd.f32 %v3543_v33, %v2913_v63 }
 0x742   : > { %v3544_v58 = vmul.f32 -1.442695, %v2916_v55 }
 0x743   : > { %v3545_v20 = vmul.f32 -1.442695, %v2917_v19  ;;  %v3546_v9 = vmul.f32 -1.442695, %v2919_v37  ;;  %v3126_v19 = vld [vmem:[%s4924_s14 + $0x18] sm:$0xff] }
 0x744   : > { %4806 = vpow2.f32 %v3544_v58  ;;  %v3125_v58 = vld [vmem:[%s4924_s14 + $0x10] sm:$0xff] }
 0x745   : > { %4808 = vpow2.f32 %v3545_v20 }
 0x746   : > { %4810 = vpow2.f32 %v3546_v9 }
 0x747   : > { %4812 = vtanh.f32 %v2918_v10 }
 0x74b   : > { %v4805_v4 = vpop.eup %4804 }
 0x74c   : > { %v2766_v23 = vmul.f32 %v4805_v4, %v4803_v53 }
 0x74e   : > { %v4807_v26 = vpop.eup %4806  ;;  %3539 = vst [vmem:[%s4929_s17 + $0x30] sm:$0xff] %v2766_v23  ;;  %3016 = vmatmul.mubr.f32.vlgmr.msra.gmra.mrb[28].mxu0 %v2766_v23  ;;  %3087 = vmatmul.mubr.f32.vlgmr.msra.gmra.mrb[28].mxu1 %v2766_v23 }
 0x74f   : > { %v4809_v15 = vpop.eup %4808  ;;  %v2923_v34 = vadd.f32 1.0, %v4807_v26  ;;  %4527 = vmatpush1.bf16.msra.mxu0 %v5248_v62  ;;  %4559 = vmatpush1.bf16.msra.mxu1 %v5300_v35 }
 0x750   : > { %v2929_v18 = vadd.f32 1.0, %v4809_v15  ;;  %4529 = vmatprep.subr.bf16.mxu0 %v5251_v0  ;;  %4561 = vmatprep.subr.bf16.mxu1 %v5306_v39  ;;  %v4811_v62 = vpop.eup %4810 }
 0x751   : > { %4814 = vrcp.f32 %v2923_v34  ;;  %3191 = vmatprep.mubr.f32.mxu0 %v6236_v57  ;;  %3262 = vmatprep.mubr.f32.mxu1 %v6236_v57  ;;  %v4813_v0 = vpop.eup %4812  ;;  %v3550_v57 = vld [vmem:[%s4919_s10 + $0xf0] sm:$0xff] }
 0x752   : > { %4816 = vrcp.f32 %v2929_v18 }
 0x753   : > { %4531 = vmatpush1.bf16.msra.mxu0 %v5284_v22  ;;  %4563 = vmatpush1.bf16.msra.mxu1 %v5336_v60 }
 0x754   : > { %4533 = vmatprep.subr.bf16.mxu0 %v5288_v24  ;;  %4565 = vmatprep.subr.bf16.mxu1 %v5342_v2  ;;  %v2936_v24 = vadd.f32 1.0, %v4811_v62 }
 0x756   : > { %4818 = vrcp.f32 %v2936_v24 }
 0x757   : > { %4535 = vmatpush1.bf16.msra.mxu0 %v5321_v50  ;;  %4567 = vmatpush1.bf16.msra.mxu1 %v5373_v32  ;;  %v3548_v32 = vld [vmem:[%s4919_s10 + $0xe0] sm:$0xff] }
 0x758   : > { %4537 = vmatprep.subr.bf16.mxu0 %v5324_v52  ;;  %4569 = vmatprep.subr.bf16.mxu1 %v5379_v40  ;;  %v3549_v40 = vld [vmem:[%s4919_s10 + $0xe8] sm:$0xff] }
 0x75b   : > { %v4815_v35 = vpop.eup %4814  ;;  %4539 = vmatpush1.bf16.msra.mxu0 %v5358_v17  ;;  %4571 = vmatpush1.bf16.msra.mxu1 %v6237_v48 }
 0x75c   : > { %v4817_v22 = vpop.eup %4816  ;;  %v2940_v39 = vmul.f32 %v4815_v35, %v4813_v0  ;;  %4541 = vmatprep.subr.bf16.mxu0 %v6238_v28  ;;  %4573 = vmatprep.subr.bf16.mxu1 %v6239_v3 }
 0x75d   : > { %v2939_v50 = vmul.f32 %v4817_v22, %v6013_v44 }
 0x75f   : > { %v6099_v60 = vadd.f32 %v2940_v39, %v2939_v50  ;;  %4543 = vmatpush1.bf16.msra.mxu0 %v6240_v36  ;;  %4575 = vmatpush1.bf16.msra.mxu1 %v5445_v61 }
 0x760   : > { %4545 = vmatprep.subr.bf16.mxu0 %v6241_v25  ;;  %4577 = vmatprep.subr.bf16.mxu1 %v5451_v5  ;;  %v4819_v52 = vpop.eup %4818 }
 0x761   : > { %4820 = vtanh.f32 %v6099_v60 }
 0x763   : > { %4547 = vmatpush1.bf16.msra.mxu0 %v5430_v45  ;;  %4579 = vmatpush1.bf16.msra.mxu1 %v5478_v12 }
 0x764   : > { %4549 = vmatprep.subr.bf16.mxu0 %v6242_v51  ;;  %4581 = vmatprep.subr.bf16.mxu1 %v5481_v8 }
 0x767   : > { %4551 = vmatpush1.bf16.msra.mxu0 %v6243_v54  ;;  %4583 = vmatpush1.bf16.msra.mxu1 %v5500_v29 }
 0x768   : > { %4553 = vmatprep.subr.bf16.mxu0 %v5469_v41  ;;  %4585 = vmatprep.subr.bf16.mxu1 %v5503_v30 }
 0x76b   : > { %v4821_v2 = vpop.eup %4820  ;;  %4555 = vmatpush1.bf16.msra.mxu0 %v5496_v14  ;;  %4587 = vmatpush1.bf16.msra.mxu1 %v5513_v21  ;;  %v3551_v14 = vld [vmem:[%s4919_s10 + $0xf8] sm:$0xff] }
 0x76c   : > { %v2943_v17 = vmul.f32 %v4821_v2, %v4819_v52 }
 0x76e   : > { %3547 = vst [vmem:[%s4934_s21 + $0x8] sm:$0xff] %v2943_v17  ;;  %3192 = vmatmul.mubr.f32.vlgmr.msra.gmra.mrb[30].mxu0 %v2943_v17  ;;  %3263 = vmatmul.mubr.f32.vlgmr.msra.gmra.mrb[30].mxu1 %v2943_v17 }
 0x821   : > { %v3017_v12 = vpop.f32.mrb[28].mxu0  ;;  %v3088_v45 = vpop.f32.mrb[28].mxu1 }
 0x822   : > { %v3093_v61 = vadd.f32 %v3548_v32, %v3017_v12  ;;  %v3019_v5 = vpop.f32.mrb[29].mxu0  ;;  %v3090_v41 = vpop.f32.mrb[29].mxu1  ;;  %v3095_v28 = vadd.f32 %v3550_v57, %v3088_v45 }
 0x823   : > { %v3094_v8 = vadd.f32 %v3549_v40, %v3019_v5  ;;  %v3096_v21 = vadd.f32 %v3551_v14, %v3090_v41 }
 0x824   : > { %v3552_v29 = vmul.f32 -1.442695, %v3093_v61 }
 0x825   : > { %v3553_v30 = vmul.f32 -1.442695, %v3094_v8  ;;  %v3554_v48 = vmul.f32 -1.442695, %v3096_v21 }
 0x826   : > { %4822 = vpow2.f32 %v3552_v29 }
 0x827   : > { %4824 = vpow2.f32 %v3553_v30 }
 0x828   : > { %4826 = vpow2.f32 %v3554_v48 }
 0x829   : > { %4828 = vtanh.f32 %v3095_v28 }
 0x830   : > { %v4823_v3 = vpop.eup %4822 }
 0x831   : > { %v4825_v36 = vpop.eup %4824  ;;  %v3100_v25 = vadd.f32 1.0, %v4823_v3 }
 0x832   : > { %v3106_v51 = vadd.f32 1.0, %v4825_v36  ;;  %v4827_v54 = vpop.eup %4826 }
 0x833   : > { %4830 = vrcp.f32 %v3100_v25  ;;  %v4829_v44 = vpop.eup %4828  ;;  %v3113_v49 = vadd.f32 1.0, %v4827_v54 }
 0x834   : > { %4832 = vrcp.f32 %v3106_v51 }
 0x835   : > { %4834 = vrcp.f32 %v3113_v49 }
 0x83d   : > { %v4831_v27 = vpop.eup %4830 }
 0x83e   : > { %v4833_v38 = vpop.eup %4832  ;;  %v3117_v46 = vmul.f32 %v4831_v27, %v4829_v44 }
 0x83f   : > { %v3116_v13 = vmul.f32 %v4833_v38, %v6074_v31  ;;  %v4835_v20 = vpop.eup %4834 }
 0x841   : > { %v3118_v6 = vadd.f32 %v3117_v46, %v3116_v13  ;;  %v3193_v47 = vpop.f32.mrb[30].mxu0  ;;  %v3264_v1 = vpop.f32.mrb[30].mxu1 }
 0x842   : > { %v3269_v56 = vadd.f32 %v3193_v47, %v3123_v42  ;;  %v3195_v59 = vpop.f32.mrb[31].mxu0  ;;  %v3266_v16 = vpop.f32.mrb[31].mxu1  ;;  %v3271_v53 = vadd.f32 %v3264_v1, %v3125_v58 }
 0x843   : > { %4836 = vtanh.f32 %v3118_v6  ;;  %3299 = vst [vmem:[#allocation3] sm:$0xff] %v3118_v6  ;;  %v3270_v55 = vadd.f32 %v3195_v59, %v3124_v43  ;;  %v3272_v31 = vadd.f32 %v3266_v16, %v3126_v19 }
 0x844   : > { %v3556_v11 = vmul.f32 -1.442695, %v3269_v56 }
 0x845   : > { %v3557_v63 = vmul.f32 -1.442695, %v3270_v55  ;;  %v3558_v37 = vmul.f32 -1.442695, %v3272_v31 }
 0x846   : > { %4838 = vpow2.f32 %v3556_v11 }
 0x847   : > { %4840 = vpow2.f32 %v3557_v63 }
 0x848   : > { %4842 = vpow2.f32 %v3558_v37 }
 0x849   : > { %4844 = vtanh.f32 %v3271_v53 }
 0x84d   : > { %v4837_v33 = vpop.eup %4836 }
 0x84e   : > { %v3120_v7 = vmul.f32 %v4837_v33, %v4835_v20 }
 0x850   : > { %v4839_v4 = vpop.eup %4838  ;;  %3555 = vst [vmem:[%s4929_s17 + $0x38] sm:$0xff] %v3120_v7  ;;  %3298 = vst [vmem:[#allocation2] sm:$0xff] %v3120_v7 }
 0x851   : > { %v4841_v9 = vpop.eup %4840  ;;  %v3276_v10 = vadd.f32 1.0, %v4839_v4  ;;  %3306 = vst [vmem:[%s6145_s6] sm:$0xff] (!%p3559_p6), %v3120_v7 }
 0x852   : > { %v3282_v23 = vadd.f32 1.0, %v4841_v9  ;;  %v4843_v26 = vpop.eup %4842 }
 0x853   : > { %4846 = vrcp.f32 %v3276_v10  ;;  %v4845_v15 = vpop.eup %4844  ;;  %v3289_v0 = vadd.f32 1.0, %v4843_v26 }
 0x854   : > { %4848 = vrcp.f32 %v3282_v23 }
 0x855   : > { %4850 = vrcp.f32 %v3289_v0 }
 0x85d   : > { %v4847_v34 = vpop.eup %4846 }
 0x85e   : > { %v4849_v18 = vpop.eup %4848  ;;  %v3293_v62 = vmul.f32 %v4847_v34, %v4845_v15 }
 0x85f   : > { %v3292_v35 = vmul.f32 %v4849_v18, %v6099_v60  ;;  %v4851_v39 = vpop.eup %4850 }
 0x861   : > { %v3294_v22 = vadd.f32 %v3293_v62, %v3292_v35 }
 0x863   : > { %4852 = vtanh.f32 %v3294_v22  ;;  %3301 = vst [vmem:[#allocation5] sm:$0xff] %v3294_v22 }
 0x86a   : > { %3305 = sbr.rel (%p3559_p6) target bundleno = 2162 (0x872), region = 44 }
 0x86d   : > { %v4853_v24 = vpop.eup %4852 }
 0x86e   : > { %v3296_v50 = vmul.f32 %v4853_v24, %v4851_v39 }
 0x870   : > { %3297 = vst [vmem:[%s4934_s21] sm:$0xff] %v3296_v50  ;;  %3300 = vst [vmem:[#allocation4] sm:$0xff] %v3296_v50 }
 0x871   : > { %3307 = vst [vmem:[%s6146_s7] sm:$0xff] %v3296_v50 }
 0x872 PF: > { %s18_s24 = sadd.s32 1, %s4860_s24  }
 0x873   : > { %p15_p7 = scmp.ge.s32.totalorder %s18_s24, 4  }
 0x875   :  { %17 = sbr.rel (!%p15_p7) target bundleno = 1 (0x1), region = 133 }

</bundles_post_ra>
